<compile_context>
chip_gen: v5e
topology: v5e:2x2
jax: 0.10.0
libtpu: 0.0.40
codegen_flags: <defaults>
</compile_context>

<pallas_src>
import functools
import math

import jax
import jax.numpy as jnp
from jax.experimental import pallas as pl
from jax.experimental.pallas import tpu as pltpu


def _round_up(x, m):
    return ((x + m - 1) // m) * m


# ----------------------------------------------------------------------------
# Fused tiled matmul kernel:
#   out = act( layernorm?(x) @ w + b ) [+ residual]
# ----------------------------------------------------------------------------
def _mm_kernel(*refs, act, fuse_ln, has_residual, single_k, eps):
    # Unpack refs: x, w, b, [gamma, beta], [residual], out, [acc scratch]
    x_ref, w_ref, b_ref = refs[0], refs[1], refs[2]
    idx = 3
    if fuse_ln:
        g_ref, bt_ref = refs[idx], refs[idx + 1]
        idx += 2
    if has_residual:
        r_ref = refs[idx]
        idx += 1
    o_ref = refs[idx]
    idx += 1
    acc_ref = None if single_k else refs[idx]

    x = x_ref[...]
    if fuse_ln:
        # Pre-LN on the full feature dim (guaranteed tk == K by the wrapper).
        xf = x.astype(jnp.float32)
        mu = jnp.mean(xf, axis=-1, keepdims=True)
        xc = xf - mu
        var = jnp.mean(xc * xc, axis=-1, keepdims=True)
        xf = xc * jax.lax.rsqrt(var + eps) * g_ref[...] + bt_ref[...]
        xb = xf.astype(jnp.bfloat16)
    else:
        xb = x.astype(jnp.bfloat16)          # no-op if producer already emitted bf16

    part = jnp.dot(xb, w_ref[...], preferred_element_type=jnp.float32)

    def epilogue(acc):
        acc = acc + b_ref[...]
        if act == "quick_gelu":
            # x * sigmoid(1.702 x) == x / (1 + exp(-1.702 x))   (exact, fp32)
            acc = acc / (1.0 + jnp.exp(-1.702 * acc))
        if has_residual:
            acc = acc + r_ref[...].astype(jnp.float32)
        o_ref[...] = acc.astype(o_ref.dtype)

    if single_k:
        epilogue(part)
    else:
        @pl.when(pl.program_id(2) == 0)
        def _init():
            acc_ref[...] = jnp.zeros_like(acc_ref)

        acc_ref[...] += part

        @pl.when(pl.program_id(2) == pl.num_programs(2) - 1)
        def _finish():
            epilogue(acc_ref[...])


def matmul_fused(x, w, b=None, *, act=None, residual=None, ln=None, ln_eps=1e-5,
                 out_dtype=jnp.bfloat16):
    """out = act(LN?(x) @ w + b) [+ residual]; bf16 MXU inputs, fp32 accumulation."""
    M, K = x.shape
    K2, N = w.shape
    assert K2 == K

    Kp = _round_up(K, 128)
    Np = _round_up(N, 128)

    # LN fusion needs the whole (unpadded) feature dim inside a single K tile.
    fuse_ln = (ln is not None) and (Kp == K) and (K <= 2048)
    if ln is not None and not fuse_ln:
        x = layer_norm(x, ln[0], ln[1], eps=ln_eps, out_dtype=jnp.bfloat16)
        ln = None

    # ---- tile selection ----------------------------------------------------
    # M padded only to a multiple of 16 (bf16 sublane packing); pick tm with
    # minimal over-padding instead of blindly rounding M up to 256/512.
    Mb = _round_up(M, 16)
    if Mb <= 512:
        tm = Mb
    else:
        tm, best_pad = 512, None
        for cand in range(512, 255, -16):
            padr = _round_up(Mb, cand) - Mb
            if best_pad is None or padr < best_pad:
                tm, best_pad = cand, padr
    Mp = _round_up(Mb, tm)

    tn = next(t for t in (512, 256, 128) if Np % t == 0)
    tk = Kp if fuse_ln else next(t for t in (1024, 512, 256, 128) if Kp % t == 0)
    nk = Kp // tk
    single_k = (nk == 1)

    def pad2(a, rows, cols):
        pr, pc = rows - a.shape[0], cols - a.shape[1]
        if pr or pc:
            a = jnp.pad(a, ((0, pr), (0, pc)))
        return a

    xp = pad2(x, Mp, Kp)                              # dtype preserved; cast in-kernel
    wp = pad2(w.astype(jnp.bfloat16), Kp, Np)         # no-op for pre-cast bf16 weights
    if b is None:
        bp = jnp.zeros((1, Np), jnp.float32)
    else:
        bp = pad2(b.reshape(1, N).astype(jnp.float32), 1, Np)

    args = [xp, wp, bp]
    in_specs = [
        pl.BlockSpec((tm, tk), lambda i, j, k: (i, k)),
        pl.BlockSpec((tk, tn), lambda i, j, k: (k, j)),
        pl.BlockSpec((1, tn), lambda i, j, k: (0, j)),
    ]
    if fuse_ln:
        gamma, beta = ln
        args += [gamma.reshape(1, K).astype(jnp.float32),
                 beta.reshape(1, K).astype(jnp.float32)]
        in_specs += [pl.BlockSpec((1, tk), lambda i, j, k: (0, 0)),
                     pl.BlockSpec((1, tk), lambda i, j, k: (0, 0))]
    if residual is not None:
        args.append(pad2(residual, Mp, Np))           # residual stays bf16 (cheap buffer)
        in_specs.append(pl.BlockSpec((tm, tn), lambda i, j, k: (i, j)))

    kernel = functools.partial(_mm_kernel, act=act, fuse_ln=fuse_ln,
                               has_residual=residual is not None,
                               single_k=single_k, eps=ln_eps)
    scratch = [] if single_k else [pltpu.VMEM((tm, tn), jnp.float32)]

    out = pl.pallas_call(
        kernel,
        grid=(Mp // tm, Np // tn, nk),
        in_specs=in_specs,
        out_specs=pl.BlockSpec((tm, tn), lambda i, j, k: (i, j)),
        out_shape=jax.ShapeDtypeStruct((Mp, Np), out_dtype),
        scratch_shapes=scratch,
        compiler_params=pltpu.CompilerParams(
            dimension_semantics=("parallel", "parallel", "arbitrary")),
    )(*args)
    if (Mp, Np) != (M, N):
        out = out[:M, :N]
    return out


# ----------------------------------------------------------------------------
# Standalone LayerNorm kernel (only used for ln_pre / LN-fusion fallback)
# ----------------------------------------------------------------------------
def _ln_kernel(x_ref, g_ref, b_ref, o_ref, *, eps):
    x = x_ref[...].astype(jnp.float32)
    mu = jnp.mean(x, axis=-1, keepdims=True)
    xc = x - mu
    var = jnp.mean(xc * xc, axis=-1, keepdims=True)
    o_ref[...] = (xc * jax.lax.rsqrt(var + eps) * g_ref[...] + b_ref[...]).astype(o_ref.dtype)


def layer_norm(x, gamma, beta, *, eps=1e-5, out_dtype=jnp.bfloat16):
    M, C = x.shape
    Mb = _round_up(M, 16)
    tm = min(1024, Mb)
    Mp = _round_up(Mb, tm)
    xp = jnp.pad(x, ((0, Mp - M), (0, 0))) if Mp != M else x
    out = pl.pallas_call(
        functools.partial(_ln_kernel, eps=eps),
        grid=(Mp // tm,),
        in_specs=[
            pl.BlockSpec((tm, C), lambda i: (i, 0)),
            pl.BlockSpec((1, C), lambda i: (0, 0)),
            pl.BlockSpec((1, C), lambda i: (0, 0)),
        ],
        out_specs=pl.BlockSpec((tm, C), lambda i: (i, 0)),
        out_shape=jax.ShapeDtypeStruct((Mp, C), out_dtype),
        compiler_params=pltpu.CompilerParams(dimension_semantics=("parallel",)),
    )(xp, gamma.reshape(1, C).astype(jnp.float32),
      beta.reshape(1, C).astype(jnp.float32))
    return out[:M] if Mp != M else out


# ----------------------------------------------------------------------------
# Multi-head attention kernel — consumes the fused QKV activation directly.
# qkv: (B, Lp, 3C) bf16 with the standard [q | k | v], head-contiguous column
# layout of nn.MultiheadAttention's in_proj.  Padded key positions are masked.
# ----------------------------------------------------------------------------
def _mha_kernel(qkv_ref, o_ref, *, heads, head_dim, width, scale, l_valid):
    lp = qkv_ref.shape[1]
    if l_valid < lp:
        key_idx = jax.lax.broadcasted_iota(jnp.int32, (lp, lp), 1)
        key_mask = key_idx < l_valid
    else:
        key_mask = None

    for h in range(heads):
        q = qkv_ref[0, :, h * head_dim:(h + 1) * head_dim] * scale        # (Lp, hd) bf16
        k = qkv_ref[0, :, width + h * head_dim: width + (h + 1) * head_dim]
        v = qkv_ref[0, :, 2 * width + h * head_dim: 2 * width + (h + 1) * head_dim]

        s = jax.lax.dot_general(q, k, (((1,), (1,)), ((), ())),
                                preferred_element_type=jnp.float32)        # (Lp, Lp) MXU
        if key_mask is not None:
            s = jnp.where(key_mask, s, -1e30)
        m = jnp.max(s, axis=-1, keepdims=True)
        p = jnp.exp(s - m)
        denom = jnp.sum(p, axis=-1, keepdims=True)
        o = jnp.dot(p.astype(jnp.bfloat16), v,
                    preferred_element_type=jnp.float32)                    # (Lp, hd) MXU
        o = o / denom                                                      # O(L*hd), not O(L^2)
        # Store each head immediately (bounds live ranges; HBM writeback of the
        # whole (1, Lp, C) block stays lane-dense).
        o_ref[0, :, h * head_dim:(h + 1) * head_dim] = o.astype(o_ref.dtype)


def multi_head_attention(qkv, *, heads, seq_len):
    """qkv: (B, Lp, 3C) bf16 -> (B, Lp, C) bf16."""
    B, Lp, threeC = qkv.shape
    C = threeC // 3
    hd = C // heads
    scale = float(hd) ** -0.5
    return pl.pallas_call(
        functools.partial(_mha_kernel, heads=heads, head_dim=hd, width=C,
                          scale=scale, l_valid=seq_len),
        grid=(B,),
        in_specs=[pl.BlockSpec((1, Lp, threeC), lambda b: (b, 0, 0))],
        out_specs=pl.BlockSpec((1, Lp, C), lambda b: (b, 0, 0)),
        out_shape=jax.ShapeDtypeStruct((B, Lp, C), jnp.bfloat16),
        compiler_params=pltpu.CompilerParams(dimension_semantics=("parallel",)),
    )(qkv)


# ----------------------------------------------------------------------------
# Model forward
# ----------------------------------------------------------------------------
def residual_attention_block(x2, p, *, heads, batch, lp, seq_len):
    """x2: (batch*lp, C) bf16 residual stream (lp = padded sequence length)."""
    M, C = x2.shape

    # attention branch: ln_1 fused into the QKV matmul; (B*Lp, 3C) feeds attention
    # directly (free reshape), out_proj fuses bias + residual.
    qkv = matmul_fused(x2, p['w_qkv'], p['b_qkv'], ln=(p['ln1_g'], p['ln1_b']))
    attn = multi_head_attention(qkv.reshape(batch, lp, 3 * C),
                                heads=heads, seq_len=seq_len)               # (B, Lp, C)
    x2 = matmul_fused(attn.reshape(M, C), p['w_o'], p['b_o'], residual=x2)

    # MLP branch: ln_2 fused into c_fc (+ QuickGELU); c_proj fuses bias + residual.
    h = matmul_fused(x2, p['w_fc'], p['b_fc'], act="quick_gelu",
                     ln=(p['ln2_g'], p['ln2_b']))
    x2 = matmul_fused(h, p['w_proj'], p['b_proj'], residual=x2)
    return x2


def vision_transformer_forward(x_nchw, params, *, patch_size, heads):
    B, Cin, H, W = x_nchw.shape
    g = H // patch_size
    width = params['class_embedding'].shape[0]

    # conv1 (kernel==stride, bias=False) == non-overlapping patchify + matmul.
    # conv1_w stored pre-flattened as (p*p*cin, width) with (ph, pw, cin) ordering.
    x = jnp.transpose(x_nchw, (0, 2, 3, 1))                               # NHWC
    x = x.reshape(B, g, patch_size, g, patch_size, Cin)
    x = x.transpose(0, 1, 3, 2, 4, 5).reshape(B * g * g,
                                              patch_size * patch_size * Cin)
    x = matmul_fused(x, params['conv1_w'], out_dtype=jnp.float32)          # (B*g*g, width)
    x = x.reshape(B, g * g, width)

    cls = jnp.broadcast_to(
        params['class_embedding'].reshape(1, 1, width).astype(jnp.float32),
        (B, 1, width))
    x = jnp.concatenate([cls, x], axis=1) + params['positional_embedding'][None]
    L = x.shape[1]
    Lp = _round_up(L, 16)                 # pad tokens once; padded keys masked in attn
    if Lp != L:
        x = jnp.pad(x, ((0, 0), (0, Lp - L), (0, 0)))

    # ln_pre: standalone LN, its bf16 output is the residual stream entering blocks.
    x2 = layer_norm(x.reshape(B * Lp, width), params['ln_pre_g'], params['ln_pre_b'])

    for blk in params['blocks']:
        x2 = residual_attention_block(x2, blk, heads=heads, batch=B, lp=Lp, seq_len=L)

    cls_tok = x2.reshape(B, Lp, width)[:, 0, :]                            # (B, width)
    # ln_post fused into the output projection's prologue.
    return matmul_fused(cls_tok, params['proj'],
                        ln=(params['ln_post_g'], params['ln_post_b']),
                        out_dtype=jnp.float32)                             # (B, output_dim)


# ----------------------------------------------------------------------------
# Deterministic parameter construction (weights pre-cast to bf16 once, outside jit)
# ----------------------------------------------------------------------------
def _keygen(key):
    while True:
        key, sub = jax.random.split(key)
        yield sub


def _normal(kg, shape, std):
    return std * jax.random.normal(next(kg), shape, jnp.float32)


def make_params(key, *, input_resolution, patch_size, width, layers, heads, output_dim):
    kg = _keygen(key)
    g = input_resolution // patch_size
    scale = width ** -0.5
    fan_patch = patch_size * patch_size * 3
    bf = jnp.bfloat16
    params = {
        'conv1_w': _normal(kg, (fan_patch, width), 1.0 / math.sqrt(fan_patch)).astype(bf),
        'class_embedding': _normal(kg, (width,), scale),
        'positional_embedding': _normal(kg, (g * g + 1, width), scale),
        'ln_pre_g': 1.0 + _normal(kg, (width,), 0.1),
        'ln_pre_b': _normal(kg, (width,), 0.1),
        'ln_post_g': 1.0 + _normal(kg, (width,), 0.1),
        'ln_post_b': _normal(kg, (width,), 0.1),
        'proj': _normal(kg, (width, output_dim), scale).astype(bf),
    }
    blocks = []
    for _ in range(layers):
        blocks.append({
            'ln1_g': 1.0 + _normal(kg, (width,), 0.1),
            'ln1_b': _normal(kg, (width,), 0.1),
            'w_qkv': _normal(kg, (width, 3 * width), 1.0 / math.sqrt(width)).astype(bf),
            'b_qkv': _normal(kg, (3 * width,), 0.01),
            'w_o': _normal(kg, (width, width), 1.0 / math.sqrt(width)).astype(bf),
            'b_o': _normal(kg, (width,), 0.01),
            'ln2_g': 1.0 + _normal(kg, (width,), 0.1),
            'ln2_b': _normal(kg, (width,), 0.1),
            'w_fc': _normal(kg, (width, 4 * width), 1.0 / math.sqrt(width)).astype(bf),
            'b_fc': _normal(kg, (4 * width,), 0.01),
            'w_proj': _normal(kg, (4 * width, width), 1.0 / math.sqrt(4 * width)).astype(bf),
            'b_proj': _normal(kg, (width,), 0.01),
        })
    params['blocks'] = blocks
    return params


# ----------------------------------------------------------------------------
if __name__ == "__main__":
    input_resolution = 32
    patch_size = 8          # -> 4x4 = 16 patches, seq len L = 17 (padded to 32)
    width = 128             # lane-dense embedding dim
    layers = 2
    heads = 4               # head_dim = 32
    output_dim = 64
    batch = 2

    key = jax.random.PRNGKey(0)
    pkey, xkey = jax.random.split(key)
    params = make_params(pkey, input_resolution=input_resolution, patch_size=patch_size,
                         width=width, layers=layers, heads=heads, output_dim=output_dim)
    x = jax.random.normal(xkey, (batch, 3, input_resolution, input_resolution),
                          jnp.float32)

    fwd = jax.jit(functools.partial(vision_transformer_forward,
                                    patch_size=patch_size, heads=heads))
    out = jax.block_until_ready(fwd(x, params))
    assert out.shape == (batch, output_dim), out.shape
    assert bool(jnp.all(jnp.isfinite(out)))
    print("KERNEL_OK")
</pallas_src>

<mosaic_0001>
module attributes {stable_mosaic.version = 11 : i64} {
  func.func @_mm_kernel(%arg0: i32, %arg1: i32, %arg2: i32, %arg3: memref<32x256xf32, #tpu.memory_space<vmem>>, %arg4: memref<256x128xbf16, #tpu.memory_space<vmem>>, %arg5: memref<1x128xf32, #tpu.memory_space<vmem>>, %arg6: memref<32x128xf32, #tpu.memory_space<vmem>>) attributes {dimension_semantics = [#tpu.dimension_semantics<parallel>, #tpu.dimension_semantics<parallel>, #tpu.dimension_semantics<arbitrary>], iteration_bounds = array<i64: 1, 1, 1>, scalar_prefetch = 0 : i64, scratch_operands = 0 : i64, tpu.core_type = #tpu.core_type<tc>, window_params = [{transform_indices = @transform_0, window_bounds = array<i64: 32, 256>}, {transform_indices = @transform_1, window_bounds = array<i64: 256, 128>}, {transform_indices = @transform_2, window_bounds = array<i64: 1, 128>}, {transform_indices = @transform_3, window_bounds = array<i64: 32, 128>}]} {
    %c0 = arith.constant 0 : index
    %c0_0 = arith.constant 0 : index
    %0 = vector.load %arg3[%c0, %c0_0] : memref<32x256xf32, #tpu.memory_space<vmem>>, vector<32x256xf32>
    %1 = arith.truncf %0 : vector<32x256xf32> to vector<32x256xbf16>
    %c0_1 = arith.constant 0 : index
    %c0_2 = arith.constant 0 : index
    %2 = vector.load %arg4[%c0_1, %c0_2] : memref<256x128xbf16, #tpu.memory_space<vmem>>, vector<256x128xbf16>
    %cst = arith.constant dense<0.000000e+00> : vector<32x128xf32>
    %3 = tpu.matmul %1, %2, %cst {dimension_numbers = #tpu.dot_dimension_numbers<[1], [0], [0], [1], [0, 0, 1, 1], [], []>} : vector<32x256xbf16>, vector<256x128xbf16>, vector<32x128xf32> -> vector<32x128xf32>
    %c0_3 = arith.constant 0 : index
    %c0_4 = arith.constant 0 : index
    %4 = vector.load %arg5[%c0_3, %c0_4] : memref<1x128xf32, #tpu.memory_space<vmem>>, vector<1x128xf32>
    %5 = vector.broadcast %4 : vector<1x128xf32> to vector<32x128xf32>
    %6 = arith.addf %3, %5 : vector<32x128xf32>
    %c0_5 = arith.constant 0 : index
    %c0_6 = arith.constant 0 : index
    %7 = vector.load %arg6[%c0_5, %c0_6] : memref<32x128xf32, #tpu.memory_space<vmem>>, vector<32x128xf32>
    tpu.vector_store %arg6[%c0_5, %c0_6], %6 {strides = array<i32>} : memref<32x128xf32, #tpu.memory_space<vmem>>, vector<32x128xf32>,
    return
  }
  func.func @transform_0(%arg0: i32, %arg1: i32, %arg2: i32) -> (i32, i32) {
    %c0_i32 = arith.constant 0 : i32
    return %arg0, %arg2 : i32, i32
  }
  func.func @transform_1(%arg0: i32, %arg1: i32, %arg2: i32) -> (i32, i32) {
    %c0_i32 = arith.constant 0 : i32
    return %arg2, %arg1 : i32, i32
  }
  func.func @transform_2(%arg0: i32, %arg1: i32, %arg2: i32) -> (i32, i32) {
    %c0_i32 = arith.constant 0 : i32
    %c0_i32_0 = arith.constant 0 : i32
    return %c0_i32, %arg1 : i32, i32
  }
  func.func @transform_3(%arg0: i32, %arg1: i32, %arg2: i32) -> (i32, i32) {
    %c0_i32 = arith.constant 0 : i32
    return %arg0, %arg1 : i32, i32
  }
}

module attributes {stable_mosaic.version = 11 : i64} {
  func.func @_ln_kernel(%arg0: i32, %arg1: memref<64x128xf32, #tpu.memory_space<vmem>>, %arg2: memref<1x128xf32, #tpu.memory_space<vmem>>, %arg3: memref<1x128xf32, #tpu.memory_space<vmem>>, %arg4: memref<64x128xbf16, #tpu.memory_space<vmem>>) attributes {dimension_semantics = [#tpu.dimension_semantics<parallel>], iteration_bounds = array<i64: 1>, scalar_prefetch = 0 : i64, scratch_operands = 0 : i64, tpu.core_type = #tpu.core_type<tc>, window_params = [{transform_indices = @transform_0, window_bounds = array<i64: 64, 128>}, {pipeline_mode = #tpu.pipeline_mode<synchronous>, transform_indices = @transform_1, window_bounds = array<i64: 1, 128>}, {pipeline_mode = #tpu.pipeline_mode<synchronous>, transform_indices = @transform_2, window_bounds = array<i64: 1, 128>}, {transform_indices = @transform_3, window_bounds = array<i64: 64, 128>}]} {
    %c0 = arith.constant 0 : index
    %c0_0 = arith.constant 0 : index
    %0 = vector.load %arg1[%c0, %c0_0] : memref<64x128xf32, #tpu.memory_space<vmem>>, vector<64x128xf32>
    %cst = arith.constant dense<0.000000e+00> : vector<64xf32>
    %1 = vector.multi_reduction <add>, %0, %cst [1] : vector<64x128xf32> to vector<64xf32>
    %2 = vector.shape_cast %1 : vector<64xf32> to vector<64x1xf32>
    %cst_1 = arith.constant 1.280000e+02 : f32
    %3 = vector.broadcast %cst_1 : f32 to vector<64x1xf32>
    %4 = arith.divf %2, %3 : vector<64x1xf32>
    %5 = vector.broadcast %4 : vector<64x1xf32> to vector<64x128xf32>
    %6 = arith.subf %0, %5 : vector<64x128xf32>
    %7 = arith.mulf %6, %6 : vector<64x128xf32>
    %cst_2 = arith.constant dense<0.000000e+00> : vector<64xf32>
    %8 = vector.multi_reduction <add>, %7, %cst_2 [1] : vector<64x128xf32> to vector<64xf32>
    %9 = vector.shape_cast %8 : vector<64xf32> to vector<64x1xf32>
    %cst_3 = arith.constant 1.280000e+02 : f32
    %10 = vector.broadcast %cst_3 : f32 to vector<64x1xf32>
    %11 = arith.divf %9, %10 : vector<64x1xf32>
    %cst_4 = arith.constant 9.99999974E-6 : f32
    %12 = vector.broadcast %cst_4 : f32 to vector<64x1xf32>
    %13 = arith.addf %11, %12 : vector<64x1xf32>
    %14 = math.rsqrt %13 : vector<64x1xf32>
    %15 = vector.broadcast %14 : vector<64x1xf32> to vector<64x128xf32>
    %16 = arith.mulf %6, %15 : vector<64x128xf32>
    %c0_5 = arith.constant 0 : index
    %c0_6 = arith.constant 0 : index
    %17 = vector.load %arg2[%c0_5, %c0_6] : memref<1x128xf32, #tpu.memory_space<vmem>>, vector<1x128xf32>
    %18 = vector.broadcast %17 : vector<1x128xf32> to vector<64x128xf32>
    %19 = arith.mulf %16, %18 : vector<64x128xf32>
    %c0_7 = arith.constant 0 : index
    %c0_8 = arith.constant 0 : index
    %20 = vector.load %arg3[%c0_7, %c0_8] : memref<1x128xf32, #tpu.memory_space<vmem>>, vector<1x128xf32>
    %21 = vector.broadcast %20 : vector<1x128xf32> to vector<64x128xf32>
    %22 = arith.addf %19, %21 : vector<64x128xf32>
    %23 = arith.truncf %22 : vector<64x128xf32> to vector<64x128xbf16>
    %c0_9 = arith.constant 0 : index
    %c0_10 = arith.constant 0 : index
    %24 = vector.load %arg4[%c0_9, %c0_10] : memref<64x128xbf16, #tpu.memory_space<vmem>>, vector<64x128xbf16>
    tpu.vector_store %arg4[%c0_9, %c0_10], %23 {strides = array<i32>} : memref<64x128xbf16, #tpu.memory_space<vmem>>, vector<64x128xbf16>,
    return
  }
  func.func @transform_0(%arg0: i32) -> (i32, i32) {
    %c0_i32 = arith.constant 0 : i32
    %c0_i32_0 = arith.constant 0 : i32
    return %arg0, %c0_i32 : i32, i32
  }
  func.func @transform_1(%arg0: i32) -> (i32, i32) {
    %c0_i32 = arith.constant 0 : i32
    %c0_i32_0 = arith.constant 0 : i32
    %c0_i32_1 = arith.constant 0 : i32
    return %c0_i32, %c0_i32_0 : i32, i32
  }
  func.func @transform_2(%arg0: i32) -> (i32, i32) {
    %c0_i32 = arith.constant 0 : i32
    %c0_i32_0 = arith.constant 0 : i32
    %c0_i32_1 = arith.constant 0 : i32
    return %c0_i32, %c0_i32_0 : i32, i32
  }
  func.func @transform_3(%arg0: i32) -> (i32, i32) {
    %c0_i32 = arith.constant 0 : i32
    %c0_i32_0 = arith.constant 0 : i32
    return %arg0, %c0_i32 : i32, i32
  }
}

module attributes {stable_mosaic.version = 11 : i64} {
  func.func @_mm_kernel(%arg0: i32, %arg1: i32, %arg2: i32, %arg3: memref<64x128xbf16, #tpu.memory_space<vmem>>, %arg4: memref<128x128xbf16, #tpu.memory_space<vmem>>, %arg5: memref<1x128xf32, #tpu.memory_space<vmem>>, %arg6: memref<1x128xf32, #tpu.memory_space<vmem>>, %arg7: memref<1x128xf32, #tpu.memory_space<vmem>>, %arg8: memref<64x128xbf16, #tpu.memory_space<vmem>>) attributes {dimension_semantics = [#tpu.dimension_semantics<parallel>, #tpu.dimension_semantics<parallel>, #tpu.dimension_semantics<arbitrary>], iteration_bounds = array<i64: 1, 3, 1>, scalar_prefetch = 0 : i64, scratch_operands = 0 : i64, tpu.core_type = #tpu.core_type<tc>, window_params = [{transform_indices = @transform_0, window_bounds = array<i64: 64, 128>}, {transform_indices = @transform_1, window_bounds = array<i64: 128, 128>}, {transform_indices = @transform_2, window_bounds = array<i64: 1, 128>}, {pipeline_mode = #tpu.pipeline_mode<synchronous>, transform_indices = @transform_3, window_bounds = array<i64: 1, 128>}, {pipeline_mode = #tpu.pipeline_mode<synchronous>, transform_indices = @transform_4, window_bounds = array<i64: 1, 128>}, {transform_indices = @transform_5, window_bounds = array<i64: 64, 128>}]} {
    %c0 = arith.constant 0 : index
    %c0_0 = arith.constant 0 : index
    %0 = vector.load %arg3[%c0, %c0_0] : memref<64x128xbf16, #tpu.memory_space<vmem>>, vector<64x128xbf16>
    %1 = arith.extf %0 : vector<64x128xbf16> to vector<64x128xf32>
    %cst = arith.constant dense<0.000000e+00> : vector<64xf32>
    %2 = vector.multi_reduction <add>, %1, %cst [1] : vector<64x128xf32> to vector<64xf32>
    %3 = vector.shape_cast %2 : vector<64xf32> to vector<64x1xf32>
    %cst_1 = arith.constant 1.280000e+02 : f32
    %4 = vector.broadcast %cst_1 : f32 to vector<64x1xf32>
    %5 = arith.divf %3, %4 : vector<64x1xf32>
    %6 = vector.broadcast %5 : vector<64x1xf32> to vector<64x128xf32>
    %7 = arith.subf %1, %6 : vector<64x128xf32>
    %8 = arith.mulf %7, %7 : vector<64x128xf32>
    %cst_2 = arith.constant dense<0.000000e+00> : vector<64xf32>
    %9 = vector.multi_reduction <add>, %8, %cst_2 [1] : vector<64x128xf32> to vector<64xf32>
    %10 = vector.shape_cast %9 : vector<64xf32> to vector<64x1xf32>
    %cst_3 = arith.constant 1.280000e+02 : f32
    %11 = vector.broadcast %cst_3 : f32 to vector<64x1xf32>
    %12 = arith.divf %10, %11 : vector<64x1xf32>
    %cst_4 = arith.constant 9.99999974E-6 : f32
    %13 = vector.broadcast %cst_4 : f32 to vector<64x1xf32>
    %14 = arith.addf %12, %13 : vector<64x1xf32>
    %15 = math.rsqrt %14 : vector<64x1xf32>
    %16 = vector.broadcast %15 : vector<64x1xf32> to vector<64x128xf32>
    %17 = arith.mulf %7, %16 : vector<64x128xf32>
    %c0_5 = arith.constant 0 : index
    %c0_6 = arith.constant 0 : index
    %18 = vector.load %arg6[%c0_5, %c0_6] : memref<1x128xf32, #tpu.memory_space<vmem>>, vector<1x128xf32>
    %19 = vector.broadcast %18 : vector<1x128xf32> to vector<64x128xf32>
    %20 = arith.mulf %17, %19 : vector<64x128xf32>
    %c0_7 = arith.constant 0 : index
    %c0_8 = arith.constant 0 : index
    %21 = vector.load %arg7[%c0_7, %c0_8] : memref<1x128xf32, #tpu.memory_space<vmem>>, vector<1x128xf32>
    %22 = vector.broadcast %21 : vector<1x128xf32> to vector<64x128xf32>
    %23 = arith.addf %20, %22 : vector<64x128xf32>
    %24 = arith.truncf %23 : vector<64x128xf32> to vector<64x128xbf16>
    %c0_9 = arith.constant 0 : index
    %c0_10 = arith.constant 0 : index
    %25 = vector.load %arg4[%c0_9, %c0_10] : memref<128x128xbf16, #tpu.memory_space<vmem>>, vector<128x128xbf16>
    %cst_11 = arith.constant dense<0.000000e+00> : vector<64x128xf32>
    %26 = tpu.matmul %24, %25, %cst_11 {dimension_numbers = #tpu.dot_dimension_numbers<[1], [0], [0], [1], [0, 0, 1, 1], [], []>} : vector<64x128xbf16>, vector<128x128xbf16>, vector<64x128xf32> -> vector<64x128xf32>
    %c0_12 = arith.constant 0 : index
    %c0_13 = arith.constant 0 : index
    %27 = vector.load %arg5[%c0_12, %c0_13] : memref<1x128xf32, #tpu.memory_space<vmem>>, vector<1x128xf32>
    %28 = vector.broadcast %27 : vector<1x128xf32> to vector<64x128xf32>
    %29 = arith.addf %26, %28 : vector<64x128xf32>
    %30 = arith.truncf %29 : vector<64x128xf32> to vector<64x128xbf16>
    %c0_14 = arith.constant 0 : index
    %c0_15 = arith.constant 0 : index
    %31 = vector.load %arg8[%c0_14, %c0_15] : memref<64x128xbf16, #tpu.memory_space<vmem>>, vector<64x128xbf16>
    tpu.vector_store %arg8[%c0_14, %c0_15], %30 {strides = array<i32>} : memref<64x128xbf16, #tpu.memory_space<vmem>>, vector<64x128xbf16>,
    return
  }
  func.func @transform_0(%arg0: i32, %arg1: i32, %arg2: i32) -> (i32, i32) {
    %c0_i32 = arith.constant 0 : i32
    return %arg0, %arg2 : i32, i32
  }
  func.func @transform_1(%arg0: i32, %arg1: i32, %arg2: i32) -> (i32, i32) {
    %c0_i32 = arith.constant 0 : i32
    return %arg2, %arg1 : i32, i32
  }
  func.func @transform_2(%arg0: i32, %arg1: i32, %arg2: i32) -> (i32, i32) {
    %c0_i32 = arith.constant 0 : i32
    %c0_i32_0 = arith.constant 0 : i32
    return %c0_i32, %arg1 : i32, i32
  }
  func.func @transform_3(%arg0: i32, %arg1: i32, %arg2: i32) -> (i32, i32) {
    %c0_i32 = arith.constant 0 : i32
    %c0_i32_0 = arith.constant 0 : i32
    %c0_i32_1 = arith.constant 0 : i32
    return %c0_i32, %c0_i32_0 : i32, i32
  }
  func.func @transform_4(%arg0: i32, %arg1: i32, %arg2: i32) -> (i32, i32) {
    %c0_i32 = arith.constant 0 : i32
    %c0_i32_0 = arith.constant 0 : i32
    %c0_i32_1 = arith.constant 0 : i32
    return %c0_i32, %c0_i32_0 : i32, i32
  }
  func.func @transform_5(%arg0: i32, %arg1: i32, %arg2: i32) -> (i32, i32) {
    %c0_i32 = arith.constant 0 : i32
    return %arg0, %arg1 : i32, i32
  }
}

module attributes {stable_mosaic.version = 11 : i64} {
  func.func @_mha_kernel(%arg0: i32, %arg1: memref<1x32x384xbf16, #tpu.memory_space<vmem>>, %arg2: memref<1x32x128xbf16, #tpu.memory_space<vmem>>) attributes {dimension_semantics = [#tpu.dimension_semantics<parallel>], iteration_bounds = array<i64: 2>, scalar_prefetch = 0 : i64, scratch_operands = 0 : i64, tpu.core_type = #tpu.core_type<tc>, window_params = [{transform_indices = @transform_0, window_bounds = array<i64: 1, 32, 384>}, {transform_indices = @transform_1, window_bounds = array<i64: 1, 32, 128>}]} {
    %0 = tpu.iota {dimensions = array<i32: 1>} : vector<32x32xi32>
    %c17_i32 = arith.constant 17 : i32
    %1 = vector.broadcast %c17_i32 : i32 to vector<32x32xi32>
    %2 = arith.cmpi slt, %0, %1 : vector<32x32xi32>
    %c0 = arith.constant 0 : index
    %c0_0 = arith.constant 0 : index
    %c0_1 = arith.constant 0 : index
    %3 = vector.load %arg1[%c0, %c0_0, %c0_1] : memref<1x32x384xbf16, #tpu.memory_space<vmem>>, vector<1x32x32xbf16>
    %4 = vector.shape_cast %3 : vector<1x32x32xbf16> to vector<32x32xbf16>
    %cst = arith.constant 1.767580e-01 : bf16
    %5 = vector.broadcast %cst : bf16 to vector<32x32xbf16>
    %6 = arith.mulf %4, %5 : vector<32x32xbf16>
    %c0_2 = arith.constant 0 : index
    %c0_3 = arith.constant 0 : index
    %c128 = arith.constant 128 : index
    %7 = vector.load %arg1[%c0_2, %c0_3, %c128] : memref<1x32x384xbf16, #tpu.memory_space<vmem>>, vector<1x32x32xbf16>
    %8 = vector.shape_cast %7 : vector<1x32x32xbf16> to vector<32x32xbf16>
    %c0_4 = arith.constant 0 : index
    %c0_5 = arith.constant 0 : index
    %c256 = arith.constant 256 : index
    %9 = vector.load %arg1[%c0_4, %c0_5, %c256] : memref<1x32x384xbf16, #tpu.memory_space<vmem>>, vector<1x32x32xbf16>
    %10 = vector.shape_cast %9 : vector<1x32x32xbf16> to vector<32x32xbf16>
    %cst_6 = arith.constant dense<0.000000e+00> : vector<32x32xf32>
    %11 = tpu.matmul %6, %8, %cst_6 {dimension_numbers = #tpu.dot_dimension_numbers<[1], [1], [0], [0], [0, 0, 1, 0], [], []>} : vector<32x32xbf16>, vector<32x32xbf16>, vector<32x32xf32> -> vector<32x32xf32>
    %cst_7 = arith.constant -1.000000e+30 : f32
    %12 = vector.broadcast %cst_7 : f32 to vector<32x32xf32>
    %13 = arith.select %2, %11, %12 : vector<32x32xi1>, vector<32x32xf32>
    %cst_8 = arith.constant dense<0xFF800000> : vector<32xf32>
    %14 = vector.multi_reduction <maximumf>, %13, %cst_8 [1] : vector<32x32xf32> to vector<32xf32>
    %15 = vector.shape_cast %14 : vector<32xf32> to vector<32x1xf32>
    %16 = vector.broadcast %15 : vector<32x1xf32> to vector<32x32xf32>
    %17 = arith.subf %13, %16 : vector<32x32xf32>
    %18 = math.exp %17 : vector<32x32xf32>
    %cst_9 = arith.constant dense<0.000000e+00> : vector<32xf32>
    %19 = vector.multi_reduction <add>, %18, %cst_9 [1] : vector<32x32xf32> to vector<32xf32>
    %20 = vector.shape_cast %19 : vector<32xf32> to vector<32x1xf32>
    %21 = arith.truncf %18 : vector<32x32xf32> to vector<32x32xbf16>
    %cst_10 = arith.constant dense<0.000000e+00> : vector<32x32xf32>
    %22 = tpu.matmul %21, %10, %cst_10 {dimension_numbers = #tpu.dot_dimension_numbers<[1], [0], [0], [1], [0, 0, 1, 1], [], []>} : vector<32x32xbf16>, vector<32x32xbf16>, vector<32x32xf32> -> vector<32x32xf32>
    %23 = vector.broadcast %20 : vector<32x1xf32> to vector<32x32xf32>
    %24 = arith.divf %22, %23 : vector<32x32xf32>
    %25 = arith.truncf %24 : vector<32x32xf32> to vector<32x32xbf16>
    %c0_11 = arith.constant 0 : index
    %c0_12 = arith.constant 0 : index
    %c0_13 = arith.constant 0 : index
    %26 = vector.load %arg2[%c0_11, %c0_12, %c0_13] : memref<1x32x128xbf16, #tpu.memory_space<vmem>>, vector<1x32x32xbf16>
    %27 = vector.shape_cast %26 : vector<1x32x32xbf16> to vector<32x32xbf16>
    %28 = vector.shape_cast %25 : vector<32x32xbf16> to vector<1x32x32xbf16>
    tpu.vector_store %arg2[%c0_11, %c0_12, %c0_13], %28 {strides = array<i32>} : memref<1x32x128xbf16, #tpu.memory_space<vmem>>, vector<1x32x32xbf16>,
    %c0_14 = arith.constant 0 : index
    %c0_15 = arith.constant 0 : index
    %c32 = arith.constant 32 : index
    %29 = vector.load %arg1[%c0_14, %c0_15, %c32] : memref<1x32x384xbf16, #tpu.memory_space<vmem>>, vector<1x32x32xbf16>
    %30 = vector.shape_cast %29 : vector<1x32x32xbf16> to vector<32x32xbf16>
    %cst_16 = arith.constant 1.767580e-01 : bf16
    %31 = vector.broadcast %cst_16 : bf16 to vector<32x32xbf16>
    %32 = arith.mulf %30, %31 : vector<32x32xbf16>
    %c0_17 = arith.constant 0 : index
    %c0_18 = arith.constant 0 : index
    %c160 = arith.constant 160 : index
    %33 = vector.load %arg1[%c0_17, %c0_18, %c160] : memref<1x32x384xbf16, #tpu.memory_space<vmem>>, vector<1x32x32xbf16>
    %34 = vector.shape_cast %33 : vector<1x32x32xbf16> to vector<32x32xbf16>
    %c0_19 = arith.constant 0 : index
    %c0_20 = arith.constant 0 : index
    %c288 = arith.constant 288 : index
    %35 = vector.load %arg1[%c0_19, %c0_20, %c288] : memref<1x32x384xbf16, #tpu.memory_space<vmem>>, vector<1x32x32xbf16>
    %36 = vector.shape_cast %35 : vector<1x32x32xbf16> to vector<32x32xbf16>
    %cst_21 = arith.constant dense<0.000000e+00> : vector<32x32xf32>
    %37 = tpu.matmul %32, %34, %cst_21 {dimension_numbers = #tpu.dot_dimension_numbers<[1], [1], [0], [0], [0, 0, 1, 0], [], []>} : vector<32x32xbf16>, vector<32x32xbf16>, vector<32x32xf32> -> vector<32x32xf32>
    %cst_22 = arith.constant -1.000000e+30 : f32
    %38 = vector.broadcast %cst_22 : f32 to vector<32x32xf32>
    %39 = arith.select %2, %37, %38 : vector<32x32xi1>, vector<32x32xf32>
    %cst_23 = arith.constant dense<0xFF800000> : vector<32xf32>
    %40 = vector.multi_reduction <maximumf>, %39, %cst_23 [1] : vector<32x32xf32> to vector<32xf32>
    %41 = vector.shape_cast %40 : vector<32xf32> to vector<32x1xf32>
    %42 = vector.broadcast %41 : vector<32x1xf32> to vector<32x32xf32>
    %43 = arith.subf %39, %42 : vector<32x32xf32>
    %44 = math.exp %43 : vector<32x32xf32>
    %cst_24 = arith.constant dense<0.000000e+00> : vector<32xf32>
    %45 = vector.multi_reduction <add>, %44, %cst_24 [1] : vector<32x32xf32> to vector<32xf32>
    %46 = vector.shape_cast %45 : vector<32xf32> to vector<32x1xf32>
    %47 = arith.truncf %44 : vector<32x32xf32> to vector<32x32xbf16>
    %cst_25 = arith.constant dense<0.000000e+00> : vector<32x32xf32>
    %48 = tpu.matmul %47, %36, %cst_25 {dimension_numbers = #tpu.dot_dimension_numbers<[1], [0], [0], [1], [0, 0, 1, 1], [], []>} : vector<32x32xbf16>, vector<32x32xbf16>, vector<32x32xf32> -> vector<32x32xf32>
    %49 = vector.broadcast %46 : vector<32x1xf32> to vector<32x32xf32>
    %50 = arith.divf %48, %49 : vector<32x32xf32>
    %51 = arith.truncf %50 : vector<32x32xf32> to vector<32x32xbf16>
    %c0_26 = arith.constant 0 : index
    %c0_27 = arith.constant 0 : index
    %c32_28 = arith.constant 32 : index
    %52 = vector.load %arg2[%c0_26, %c0_27, %c32_28] : memref<1x32x128xbf16, #tpu.memory_space<vmem>>, vector<1x32x32xbf16>
    %53 = vector.shape_cast %52 : vector<1x32x32xbf16> to vector<32x32xbf16>
    %54 = vector.shape_cast %51 : vector<32x32xbf16> to vector<1x32x32xbf16>
    tpu.vector_store %arg2[%c0_26, %c0_27, %c32_28], %54 {strides = array<i32>} : memref<1x32x128xbf16, #tpu.memory_space<vmem>>, vector<1x32x32xbf16>,
    %c0_29 = arith.constant 0 : index
    %c0_30 = arith.constant 0 : index
    %c64 = arith.constant 64 : index
    %55 = vector.load %arg1[%c0_29, %c0_30, %c64] : memref<1x32x384xbf16, #tpu.memory_space<vmem>>, vector<1x32x32xbf16>
    %56 = vector.shape_cast %55 : vector<1x32x32xbf16> to vector<32x32xbf16>
    %cst_31 = arith.constant 1.767580e-01 : bf16
    %57 = vector.broadcast %cst_31 : bf16 to vector<32x32xbf16>
    %58 = arith.mulf %56, %57 : vector<32x32xbf16>
    %c0_32 = arith.constant 0 : index
    %c0_33 = arith.constant 0 : index
    %c192 = arith.constant 192 : index
    %59 = vector.load %arg1[%c0_32, %c0_33, %c192] : memref<1x32x384xbf16, #tpu.memory_space<vmem>>, vector<1x32x32xbf16>
    %60 = vector.shape_cast %59 : vector<1x32x32xbf16> to vector<32x32xbf16>
    %c0_34 = arith.constant 0 : index
    %c0_35 = arith.constant 0 : index
    %c320 = arith.constant 320 : index
    %61 = vector.load %arg1[%c0_34, %c0_35, %c320] : memref<1x32x384xbf16, #tpu.memory_space<vmem>>, vector<1x32x32xbf16>
    %62 = vector.shape_cast %61 : vector<1x32x32xbf16> to vector<32x32xbf16>
    %cst_36 = arith.constant dense<0.000000e+00> : vector<32x32xf32>
    %63 = tpu.matmul %58, %60, %cst_36 {dimension_numbers = #tpu.dot_dimension_numbers<[1], [1], [0], [0], [0, 0, 1, 0], [], []>} : vector<32x32xbf16>, vector<32x32xbf16>, vector<32x32xf32> -> vector<32x32xf32>
    %cst_37 = arith.constant -1.000000e+30 : f32
    %64 = vector.broadcast %cst_37 : f32 to vector<32x32xf32>
    %65 = arith.select %2, %63, %64 : vector<32x32xi1>, vector<32x32xf32>
    %cst_38 = arith.constant dense<0xFF800000> : vector<32xf32>
    %66 = vector.multi_reduction <maximumf>, %65, %cst_38 [1] : vector<32x32xf32> to vector<32xf32>
    %67 = vector.shape_cast %66 : vector<32xf32> to vector<32x1xf32>
    %68 = vector.broadcast %67 : vector<32x1xf32> to vector<32x32xf32>
    %69 = arith.subf %65, %68 : vector<32x32xf32>
    %70 = math.exp %69 : vector<32x32xf32>
    %cst_39 = arith.constant dense<0.000000e+00> : vector<32xf32>
    %71 = vector.multi_reduction <add>, %70, %cst_39 [1] : vector<32x32xf32> to vector<32xf32>
    %72 = vector.shape_cast %71 : vector<32xf32> to vector<32x1xf32>
    %73 = arith.truncf %70 : vector<32x32xf32> to vector<32x32xbf16>
    %cst_40 = arith.constant dense<0.000000e+00> : vector<32x32xf32>
    %74 = tpu.matmul %73, %62, %cst_40 {dimension_numbers = #tpu.dot_dimension_numbers<[1], [0], [0], [1], [0, 0, 1, 1], [], []>} : vector<32x32xbf16>, vector<32x32xbf16>, vector<32x32xf32> -> vector<32x32xf32>
    %75 = vector.broadcast %72 : vector<32x1xf32> to vector<32x32xf32>
    %76 = arith.divf %74, %75 : vector<32x32xf32>
    %77 = arith.truncf %76 : vector<32x32xf32> to vector<32x32xbf16>
    %c0_41 = arith.constant 0 : index
    %c0_42 = arith.constant 0 : index
    %c64_43 = arith.constant 64 : index
    %78 = vector.load %arg2[%c0_41, %c0_42, %c64_43] : memref<1x32x128xbf16, #tpu.memory_space<vmem>>, vector<1x32x32xbf16>
    %79 = vector.shape_cast %78 : vector<1x32x32xbf16> to vector<32x32xbf16>
    %80 = vector.shape_cast %77 : vector<32x32xbf16> to vector<1x32x32xbf16>
    tpu.vector_store %arg2[%c0_41, %c0_42, %c64_43], %80 {strides = array<i32>} : memref<1x32x128xbf16, #tpu.memory_space<vmem>>, vector<1x32x32xbf16>,
    %c0_44 = arith.constant 0 : index
    %c0_45 = arith.constant 0 : index
    %c96 = arith.constant 96 : index
    %81 = vector.load %arg1[%c0_44, %c0_45, %c96] : memref<1x32x384xbf16, #tpu.memory_space<vmem>>, vector<1x32x32xbf16>
    %82 = vector.shape_cast %81 : vector<1x32x32xbf16> to vector<32x32xbf16>
    %cst_46 = arith.constant 1.767580e-01 : bf16
    %83 = vector.broadcast %cst_46 : bf16 to vector<32x32xbf16>
    %84 = arith.mulf %82, %83 : vector<32x32xbf16>
    %c0_47 = arith.constant 0 : index
    %c0_48 = arith.constant 0 : index
    %c224 = arith.constant 224 : index
    %85 = vector.load %arg1[%c0_47, %c0_48, %c224] : memref<1x32x384xbf16, #tpu.memory_space<vmem>>, vector<1x32x32xbf16>
    %86 = vector.shape_cast %85 : vector<1x32x32xbf16> to vector<32x32xbf16>
    %c0_49 = arith.constant 0 : index
    %c0_50 = arith.constant 0 : index
    %c352 = arith.constant 352 : index
    %87 = vector.load %arg1[%c0_49, %c0_50, %c352] : memref<1x32x384xbf16, #tpu.memory_space<vmem>>, vector<1x32x32xbf16>
    %88 = vector.shape_cast %87 : vector<1x32x32xbf16> to vector<32x32xbf16>
    %cst_51 = arith.constant dense<0.000000e+00> : vector<32x32xf32>
    %89 = tpu.matmul %84, %86, %cst_51 {dimension_numbers = #tpu.dot_dimension_numbers<[1], [1], [0], [0], [0, 0, 1, 0], [], []>} : vector<32x32xbf16>, vector<32x32xbf16>, vector<32x32xf32> -> vector<32x32xf32>
    %cst_52 = arith.constant -1.000000e+30 : f32
    %90 = vector.broadcast %cst_52 : f32 to vector<32x32xf32>
    %91 = arith.select %2, %89, %90 : vector<32x32xi1>, vector<32x32xf32>
    %cst_53 = arith.constant dense<0xFF800000> : vector<32xf32>
    %92 = vector.multi_reduction <maximumf>, %91, %cst_53 [1] : vector<32x32xf32> to vector<32xf32>
    %93 = vector.shape_cast %92 : vector<32xf32> to vector<32x1xf32>
    %94 = vector.broadcast %93 : vector<32x1xf32> to vector<32x32xf32>
    %95 = arith.subf %91, %94 : vector<32x32xf32>
    %96 = math.exp %95 : vector<32x32xf32>
    %cst_54 = arith.constant dense<0.000000e+00> : vector<32xf32>
    %97 = vector.multi_reduction <add>, %96, %cst_54 [1] : vector<32x32xf32> to vector<32xf32>
    %98 = vector.shape_cast %97 : vector<32xf32> to vector<32x1xf32>
    %99 = arith.truncf %96 : vector<32x32xf32> to vector<32x32xbf16>
    %cst_55 = arith.constant dense<0.000000e+00> : vector<32x32xf32>
    %100 = tpu.matmul %99, %88, %cst_55 {dimension_numbers = #tpu.dot_dimension_numbers<[1], [0], [0], [1], [0, 0, 1, 1], [], []>} : vector<32x32xbf16>, vector<32x32xbf16>, vector<32x32xf32> -> vector<32x32xf32>
    %101 = vector.broadcast %98 : vector<32x1xf32> to vector<32x32xf32>
    %102 = arith.divf %100, %101 : vector<32x32xf32>
    %103 = arith.truncf %102 : vector<32x32xf32> to vector<32x32xbf16>
    %c0_56 = arith.constant 0 : index
    %c0_57 = arith.constant 0 : index
    %c96_58 = arith.constant 96 : index
    %104 = vector.load %arg2[%c0_56, %c0_57, %c96_58] : memref<1x32x128xbf16, #tpu.memory_space<vmem>>, vector<1x32x32xbf16>
    %105 = vector.shape_cast %104 : vector<1x32x32xbf16> to vector<32x32xbf16>
    %106 = vector.shape_cast %103 : vector<32x32xbf16> to vector<1x32x32xbf16>
    tpu.vector_store %arg2[%c0_56, %c0_57, %c96_58], %106 {strides = array<i32>} : memref<1x32x128xbf16, #tpu.memory_space<vmem>>, vector<1x32x32xbf16>,
    return
  }
  func.func @transform_0(%arg0: i32) -> (i32, i32, i32) {
    %c0_i32 = arith.constant 0 : i32
    %c0_i32_0 = arith.constant 0 : i32
    %c0_i32_1 = arith.constant 0 : i32
    return %arg0, %c0_i32, %c0_i32_0 : i32, i32, i32
  }
  func.func @transform_1(%arg0: i32) -> (i32, i32, i32) {
    %c0_i32 = arith.constant 0 : i32
    %c0_i32_0 = arith.constant 0 : i32
    %c0_i32_1 = arith.constant 0 : i32
    return %arg0, %c0_i32, %c0_i32_0 : i32, i32, i32
  }
}

module attributes {stable_mosaic.version = 11 : i64} {
  func.func @_mm_kernel(%arg0: i32, %arg1: i32, %arg2: i32, %arg3: memref<64x128xbf16, #tpu.memory_space<vmem>>, %arg4: memref<128x512xbf16, #tpu.memory_space<vmem>>, %arg5: memref<1x512xf32, #tpu.memory_space<vmem>>, %arg6: memref<1x128xf32, #tpu.memory_space<vmem>>, %arg7: memref<1x128xf32, #tpu.memory_space<vmem>>, %arg8: memref<64x512xbf16, #tpu.memory_space<vmem>>) attributes {dimension_semantics = [#tpu.dimension_semantics<parallel>, #tpu.dimension_semantics<parallel>, #tpu.dimension_semantics<arbitrary>], iteration_bounds = array<i64: 1, 1, 1>, scalar_prefetch = 0 : i64, scratch_operands = 0 : i64, tpu.core_type = #tpu.core_type<tc>, window_params = [{transform_indices = @transform_0, window_bounds = array<i64: 64, 128>}, {transform_indices = @transform_1, window_bounds = array<i64: 128, 512>}, {transform_indices = @transform_2, window_bounds = array<i64: 1, 512>}, {pipeline_mode = #tpu.pipeline_mode<synchronous>, transform_indices = @transform_3, window_bounds = array<i64: 1, 128>}, {pipeline_mode = #tpu.pipeline_mode<synchronous>, transform_indices = @transform_4, window_bounds = array<i64: 1, 128>}, {transform_indices = @transform_5, window_bounds = array<i64: 64, 512>}]} {
    %c0 = arith.constant 0 : index
    %c0_0 = arith.constant 0 : index
    %0 = vector.load %arg3[%c0, %c0_0] : memref<64x128xbf16, #tpu.memory_space<vmem>>, vector<64x128xbf16>
    %1 = arith.extf %0 : vector<64x128xbf16> to vector<64x128xf32>
    %cst = arith.constant dense<0.000000e+00> : vector<64xf32>
    %2 = vector.multi_reduction <add>, %1, %cst [1] : vector<64x128xf32> to vector<64xf32>
    %3 = vector.shape_cast %2 : vector<64xf32> to vector<64x1xf32>
    %cst_1 = arith.constant 1.280000e+02 : f32
    %4 = vector.broadcast %cst_1 : f32 to vector<64x1xf32>
    %5 = arith.divf %3, %4 : vector<64x1xf32>
    %6 = vector.broadcast %5 : vector<64x1xf32> to vector<64x128xf32>
    %7 = arith.subf %1, %6 : vector<64x128xf32>
    %8 = arith.mulf %7, %7 : vector<64x128xf32>
    %cst_2 = arith.constant dense<0.000000e+00> : vector<64xf32>
    %9 = vector.multi_reduction <add>, %8, %cst_2 [1] : vector<64x128xf32> to vector<64xf32>
    %10 = vector.shape_cast %9 : vector<64xf32> to vector<64x1xf32>
    %cst_3 = arith.constant 1.280000e+02 : f32
    %11 = vector.broadcast %cst_3 : f32 to vector<64x1xf32>
    %12 = arith.divf %10, %11 : vector<64x1xf32>
    %cst_4 = arith.constant 9.99999974E-6 : f32
    %13 = vector.broadcast %cst_4 : f32 to vector<64x1xf32>
    %14 = arith.addf %12, %13 : vector<64x1xf32>
    %15 = math.rsqrt %14 : vector<64x1xf32>
    %16 = vector.broadcast %15 : vector<64x1xf32> to vector<64x128xf32>
    %17 = arith.mulf %7, %16 : vector<64x128xf32>
    %c0_5 = arith.constant 0 : index
    %c0_6 = arith.constant 0 : index
    %18 = vector.load %arg6[%c0_5, %c0_6] : memref<1x128xf32, #tpu.memory_space<vmem>>, vector<1x128xf32>
    %19 = vector.broadcast %18 : vector<1x128xf32> to vector<64x128xf32>
    %20 = arith.mulf %17, %19 : vector<64x128xf32>
    %c0_7 = arith.constant 0 : index
    %c0_8 = arith.constant 0 : index
    %21 = vector.load %arg7[%c0_7, %c0_8] : memref<1x128xf32, #tpu.memory_space<vmem>>, vector<1x128xf32>
    %22 = vector.broadcast %21 : vector<1x128xf32> to vector<64x128xf32>
    %23 = arith.addf %20, %22 : vector<64x128xf32>
    %24 = arith.truncf %23 : vector<64x128xf32> to vector<64x128xbf16>
    %c0_9 = arith.constant 0 : index
    %c0_10 = arith.constant 0 : index
    %25 = vector.load %arg4[%c0_9, %c0_10] : memref<128x512xbf16, #tpu.memory_space<vmem>>, vector<128x512xbf16>
    %cst_11 = arith.constant dense<0.000000e+00> : vector<64x512xf32>
    %26 = tpu.matmul %24, %25, %cst_11 {dimension_numbers = #tpu.dot_dimension_numbers<[1], [0], [0], [1], [0, 0, 1, 1], [], []>} : vector<64x128xbf16>, vector<128x512xbf16>, vector<64x512xf32> -> vector<64x512xf32>
    %c0_12 = arith.constant 0 : index
    %c0_13 = arith.constant 0 : index
    %27 = vector.load %arg5[%c0_12, %c0_13] : memref<1x512xf32, #tpu.memory_space<vmem>>, vector<1x512xf32>
    %28 = vector.broadcast %27 : vector<1x512xf32> to vector<64x512xf32>
    %29 = arith.addf %26, %28 : vector<64x512xf32>
    %cst_14 = arith.constant -1.702000e+00 : f32
    %30 = vector.broadcast %cst_14 : f32 to vector<64x512xf32>
    %31 = arith.mulf %30, %29 : vector<64x512xf32>
    %32 = math.exp %31 : vector<64x512xf32>
    %cst_15 = arith.constant 1.000000e+00 : f32
    %33 = vector.broadcast %cst_15 : f32 to vector<64x512xf32>
    %34 = arith.addf %33, %32 : vector<64x512xf32>
    %35 = arith.divf %29, %34 : vector<64x512xf32>
    %36 = arith.truncf %35 : vector<64x512xf32> to vector<64x512xbf16>
    %c0_16 = arith.constant 0 : index
    %c0_17 = arith.constant 0 : index
    %37 = vector.load %arg8[%c0_16, %c0_17] : memref<64x512xbf16, #tpu.memory_space<vmem>>, vector<64x512xbf16>
    tpu.vector_store %arg8[%c0_16, %c0_17], %36 {strides = array<i32>} : memref<64x512xbf16, #tpu.memory_space<vmem>>, vector<64x512xbf16>,
    return
  }
  func.func @transform_0(%arg0: i32, %arg1: i32, %arg2: i32) -> (i32, i32) {
    %c0_i32 = arith.constant 0 : i32
    return %arg0, %arg2 : i32, i32
  }
  func.func @transform_1(%arg0: i32, %arg1: i32, %arg2: i32) -> (i32, i32) {
    %c0_i32 = arith.constant 0 : i32
    return %arg2, %arg1 : i32, i32
  }
  func.func @transform_2(%arg0: i32, %arg1: i32, %arg2: i32) -> (i32, i32) {
    %c0_i32 = arith.constant 0 : i32
    %c0_i32_0 = arith.constant 0 : i32
    return %c0_i32, %arg1 : i32, i32
  }
  func.func @transform_3(%arg0: i32, %arg1: i32, %arg2: i32) -> (i32, i32) {
    %c0_i32 = arith.constant 0 : i32
    %c0_i32_0 = arith.constant 0 : i32
    %c0_i32_1 = arith.constant 0 : i32
    return %c0_i32, %c0_i32_0 : i32, i32
  }
  func.func @transform_4(%arg0: i32, %arg1: i32, %arg2: i32) -> (i32, i32) {
    %c0_i32 = arith.constant 0 : i32
    %c0_i32_0 = arith.constant 0 : i32
    %c0_i32_1 = arith.constant 0 : i32
    return %c0_i32, %c0_i32_0 : i32, i32
  }
  func.func @transform_5(%arg0: i32, %arg1: i32, %arg2: i32) -> (i32, i32) {
    %c0_i32 = arith.constant 0 : i32
    return %arg0, %arg1 : i32, i32
  }
}

module attributes {stable_mosaic.version = 11 : i64} {
  func.func @_mm_kernel(%arg0: i32, %arg1: i32, %arg2: i32, %arg3: memref<64x512xbf16, #tpu.memory_space<vmem>>, %arg4: memref<512x128xbf16, #tpu.memory_space<vmem>>, %arg5: memref<1x128xf32, #tpu.memory_space<vmem>>, %arg6: memref<64x128xbf16, #tpu.memory_space<vmem>>, %arg7: memref<64x128xbf16, #tpu.memory_space<vmem>>) attributes {dimension_semantics = [#tpu.dimension_semantics<parallel>, #tpu.dimension_semantics<parallel>, #tpu.dimension_semantics<arbitrary>], iteration_bounds = array<i64: 1, 1, 1>, scalar_prefetch = 0 : i64, scratch_operands = 0 : i64, tpu.core_type = #tpu.core_type<tc>, window_params = [{transform_indices = @transform_0, window_bounds = array<i64: 64, 512>}, {transform_indices = @transform_1, window_bounds = array<i64: 512, 128>}, {transform_indices = @transform_2, window_bounds = array<i64: 1, 128>}, {transform_indices = @transform_3, window_bounds = array<i64: 64, 128>}, {transform_indices = @transform_4, window_bounds = array<i64: 64, 128>}]} {
    %c0 = arith.constant 0 : index
    %c0_0 = arith.constant 0 : index
    %0 = vector.load %arg3[%c0, %c0_0] : memref<64x512xbf16, #tpu.memory_space<vmem>>, vector<64x512xbf16>
    %c0_1 = arith.constant 0 : index
    %c0_2 = arith.constant 0 : index
    %1 = vector.load %arg4[%c0_1, %c0_2] : memref<512x128xbf16, #tpu.memory_space<vmem>>, vector<512x128xbf16>
    %cst = arith.constant dense<0.000000e+00> : vector<64x128xf32>
    %2 = tpu.matmul %0, %1, %cst {dimension_numbers = #tpu.dot_dimension_numbers<[1], [0], [0], [1], [0, 0, 1, 1], [], []>} : vector<64x512xbf16>, vector<512x128xbf16>, vector<64x128xf32> -> vector<64x128xf32>
    %c0_3 = arith.constant 0 : index
    %c0_4 = arith.constant 0 : index
    %3 = vector.load %arg5[%c0_3, %c0_4] : memref<1x128xf32, #tpu.memory_space<vmem>>, vector<1x128xf32>
    %4 = vector.broadcast %3 : vector<1x128xf32> to vector<64x128xf32>
    %5 = arith.addf %2, %4 : vector<64x128xf32>
    %c0_5 = arith.constant 0 : index
    %c0_6 = arith.constant 0 : index
    %6 = vector.load %arg6[%c0_5, %c0_6] : memref<64x128xbf16, #tpu.memory_space<vmem>>, vector<64x128xbf16>
    %7 = arith.extf %6 : vector<64x128xbf16> to vector<64x128xf32>
    %8 = arith.addf %5, %7 : vector<64x128xf32>
    %9 = arith.truncf %8 : vector<64x128xf32> to vector<64x128xbf16>
    %c0_7 = arith.constant 0 : index
    %c0_8 = arith.constant 0 : index
    %10 = vector.load %arg7[%c0_7, %c0_8] : memref<64x128xbf16, #tpu.memory_space<vmem>>, vector<64x128xbf16>
    tpu.vector_store %arg7[%c0_7, %c0_8], %9 {strides = array<i32>} : memref<64x128xbf16, #tpu.memory_space<vmem>>, vector<64x128xbf16>,
    return
  }
  func.func @transform_0(%arg0: i32, %arg1: i32, %arg2: i32) -> (i32, i32) {
    %c0_i32 = arith.constant 0 : i32
    return %arg0, %arg2 : i32, i32
  }
  func.func @transform_1(%arg0: i32, %arg1: i32, %arg2: i32) -> (i32, i32) {
    %c0_i32 = arith.constant 0 : i32
    return %arg2, %arg1 : i32, i32
  }
  func.func @transform_2(%arg0: i32, %arg1: i32, %arg2: i32) -> (i32, i32) {
    %c0_i32 = arith.constant 0 : i32
    %c0_i32_0 = arith.constant 0 : i32
    return %c0_i32, %arg1 : i32, i32
  }
  func.func @transform_3(%arg0: i32, %arg1: i32, %arg2: i32) -> (i32, i32) {
    %c0_i32 = arith.constant 0 : i32
    return %arg0, %arg1 : i32, i32
  }
  func.func @transform_4(%arg0: i32, %arg1: i32, %arg2: i32) -> (i32, i32) {
    %c0_i32 = arith.constant 0 : i32
    return %arg0, %arg1 : i32, i32
  }
}

module attributes {stable_mosaic.version = 11 : i64} {
  func.func @_mm_kernel(%arg0: i32, %arg1: i32, %arg2: i32, %arg3: memref<64x128xbf16, #tpu.memory_space<vmem>>, %arg4: memref<128x128xbf16, #tpu.memory_space<vmem>>, %arg5: memref<1x128xf32, #tpu.memory_space<vmem>>, %arg6: memref<64x128xbf16, #tpu.memory_space<vmem>>, %arg7: memref<64x128xbf16, #tpu.memory_space<vmem>>) attributes {dimension_semantics = [#tpu.dimension_semantics<parallel>, #tpu.dimension_semantics<parallel>, #tpu.dimension_semantics<arbitrary>], iteration_bounds = array<i64: 1, 1, 1>, scalar_prefetch = 0 : i64, scratch_operands = 0 : i64, tpu.core_type = #tpu.core_type<tc>, window_params = [{transform_indices = @transform_0, window_bounds = array<i64: 64, 128>}, {transform_indices = @transform_1, window_bounds = array<i64: 128, 128>}, {transform_indices = @transform_2, window_bounds = array<i64: 1, 128>}, {transform_indices = @transform_3, window_bounds = array<i64: 64, 128>}, {transform_indices = @transform_4, window_bounds = array<i64: 64, 128>}]} {
    %c0 = arith.constant 0 : index
    %c0_0 = arith.constant 0 : index
    %0 = vector.load %arg3[%c0, %c0_0] : memref<64x128xbf16, #tpu.memory_space<vmem>>, vector<64x128xbf16>
    %c0_1 = arith.constant 0 : index
    %c0_2 = arith.constant 0 : index
    %1 = vector.load %arg4[%c0_1, %c0_2] : memref<128x128xbf16, #tpu.memory_space<vmem>>, vector<128x128xbf16>
    %cst = arith.constant dense<0.000000e+00> : vector<64x128xf32>
    %2 = tpu.matmul %0, %1, %cst {dimension_numbers = #tpu.dot_dimension_numbers<[1], [0], [0], [1], [0, 0, 1, 1], [], []>} : vector<64x128xbf16>, vector<128x128xbf16>, vector<64x128xf32> -> vector<64x128xf32>
    %c0_3 = arith.constant 0 : index
    %c0_4 = arith.constant 0 : index
    %3 = vector.load %arg5[%c0_3, %c0_4] : memref<1x128xf32, #tpu.memory_space<vmem>>, vector<1x128xf32>
    %4 = vector.broadcast %3 : vector<1x128xf32> to vector<64x128xf32>
    %5 = arith.addf %2, %4 : vector<64x128xf32>
    %c0_5 = arith.constant 0 : index
    %c0_6 = arith.constant 0 : index
    %6 = vector.load %arg6[%c0_5, %c0_6] : memref<64x128xbf16, #tpu.memory_space<vmem>>, vector<64x128xbf16>
    %7 = arith.extf %6 : vector<64x128xbf16> to vector<64x128xf32>
    %8 = arith.addf %5, %7 : vector<64x128xf32>
    %9 = arith.truncf %8 : vector<64x128xf32> to vector<64x128xbf16>
    %c0_7 = arith.constant 0 : index
    %c0_8 = arith.constant 0 : index
    %10 = vector.load %arg7[%c0_7, %c0_8] : memref<64x128xbf16, #tpu.memory_space<vmem>>, vector<64x128xbf16>
    tpu.vector_store %arg7[%c0_7, %c0_8], %9 {strides = array<i32>} : memref<64x128xbf16, #tpu.memory_space<vmem>>, vector<64x128xbf16>,
    return
  }
  func.func @transform_0(%arg0: i32, %arg1: i32, %arg2: i32) -> (i32, i32) {
    %c0_i32 = arith.constant 0 : i32
    return %arg0, %arg2 : i32, i32
  }
  func.func @transform_1(%arg0: i32, %arg1: i32, %arg2: i32) -> (i32, i32) {
    %c0_i32 = arith.constant 0 : i32
    return %arg2, %arg1 : i32, i32
  }
  func.func @transform_2(%arg0: i32, %arg1: i32, %arg2: i32) -> (i32, i32) {
    %c0_i32 = arith.constant 0 : i32
    %c0_i32_0 = arith.constant 0 : i32
    return %c0_i32, %arg1 : i32, i32
  }
  func.func @transform_3(%arg0: i32, %arg1: i32, %arg2: i32) -> (i32, i32) {
    %c0_i32 = arith.constant 0 : i32
    return %arg0, %arg1 : i32, i32
  }
  func.func @transform_4(%arg0: i32, %arg1: i32, %arg2: i32) -> (i32, i32) {
    %c0_i32 = arith.constant 0 : i32
    return %arg0, %arg1 : i32, i32
  }
}

module attributes {stable_mosaic.version = 11 : i64} {
  func.func @_mm_kernel(%arg0: i32, %arg1: i32, %arg2: i32, %arg3: memref<16x128xbf16, #tpu.memory_space<vmem>>, %arg4: memref<128x128xbf16, #tpu.memory_space<vmem>>, %arg5: memref<1x128xf32, #tpu.memory_space<vmem>>, %arg6: memref<1x128xf32, #tpu.memory_space<vmem>>, %arg7: memref<1x128xf32, #tpu.memory_space<vmem>>, %arg8: memref<16x128xf32, #tpu.memory_space<vmem>>) attributes {dimension_semantics = [#tpu.dimension_semantics<parallel>, #tpu.dimension_semantics<parallel>, #tpu.dimension_semantics<arbitrary>], iteration_bounds = array<i64: 1, 1, 1>, scalar_prefetch = 0 : i64, scratch_operands = 0 : i64, tpu.core_type = #tpu.core_type<tc>, window_params = [{transform_indices = @transform_0, window_bounds = array<i64: 16, 128>}, {transform_indices = @transform_1, window_bounds = array<i64: 128, 128>}, {transform_indices = @transform_2, window_bounds = array<i64: 1, 128>}, {pipeline_mode = #tpu.pipeline_mode<synchronous>, transform_indices = @transform_3, window_bounds = array<i64: 1, 128>}, {pipeline_mode = #tpu.pipeline_mode<synchronous>, transform_indices = @transform_4, window_bounds = array<i64: 1, 128>}, {transform_indices = @transform_5, window_bounds = array<i64: 16, 128>}]} {
    %c0 = arith.constant 0 : index
    %c0_0 = arith.constant 0 : index
    %0 = vector.load %arg3[%c0, %c0_0] : memref<16x128xbf16, #tpu.memory_space<vmem>>, vector<16x128xbf16>
    %1 = arith.extf %0 : vector<16x128xbf16> to vector<16x128xf32>
    %cst = arith.constant dense<0.000000e+00> : vector<16xf32>
    %2 = vector.multi_reduction <add>, %1, %cst [1] : vector<16x128xf32> to vector<16xf32>
    %3 = vector.shape_cast %2 : vector<16xf32> to vector<16x1xf32>
    %cst_1 = arith.constant 1.280000e+02 : f32
    %4 = vector.broadcast %cst_1 : f32 to vector<16x1xf32>
    %5 = arith.divf %3, %4 : vector<16x1xf32>
    %6 = vector.broadcast %5 : vector<16x1xf32> to vector<16x128xf32>
    %7 = arith.subf %1, %6 : vector<16x128xf32>
    %8 = arith.mulf %7, %7 : vector<16x128xf32>
    %cst_2 = arith.constant dense<0.000000e+00> : vector<16xf32>
    %9 = vector.multi_reduction <add>, %8, %cst_2 [1] : vector<16x128xf32> to vector<16xf32>
    %10 = vector.shape_cast %9 : vector<16xf32> to vector<16x1xf32>
    %cst_3 = arith.constant 1.280000e+02 : f32
    %11 = vector.broadcast %cst_3 : f32 to vector<16x1xf32>
    %12 = arith.divf %10, %11 : vector<16x1xf32>
    %cst_4 = arith.constant 9.99999974E-6 : f32
    %13 = vector.broadcast %cst_4 : f32 to vector<16x1xf32>
    %14 = arith.addf %12, %13 : vector<16x1xf32>
    %15 = math.rsqrt %14 : vector<16x1xf32>
    %16 = vector.broadcast %15 : vector<16x1xf32> to vector<16x128xf32>
    %17 = arith.mulf %7, %16 : vector<16x128xf32>
    %c0_5 = arith.constant 0 : index
    %c0_6 = arith.constant 0 : index
    %18 = vector.load %arg6[%c0_5, %c0_6] : memref<1x128xf32, #tpu.memory_space<vmem>>, vector<1x128xf32>
    %19 = vector.broadcast %18 : vector<1x128xf32> to vector<16x128xf32>
    %20 = arith.mulf %17, %19 : vector<16x128xf32>
    %c0_7 = arith.constant 0 : index
    %c0_8 = arith.constant 0 : index
    %21 = vector.load %arg7[%c0_7, %c0_8] : memref<1x128xf32, #tpu.memory_space<vmem>>, vector<1x128xf32>
    %22 = vector.broadcast %21 : vector<1x128xf32> to vector<16x128xf32>
    %23 = arith.addf %20, %22 : vector<16x128xf32>
    %24 = arith.truncf %23 : vector<16x128xf32> to vector<16x128xbf16>
    %c0_9 = arith.constant 0 : index
    %c0_10 = arith.constant 0 : index
    %25 = vector.load %arg4[%c0_9, %c0_10] : memref<128x128xbf16, #tpu.memory_space<vmem>>, vector<128x128xbf16>
    %cst_11 = arith.constant dense<0.000000e+00> : vector<16x128xf32>
    %26 = tpu.matmul %24, %25, %cst_11 {dimension_numbers = #tpu.dot_dimension_numbers<[1], [0], [0], [1], [0, 0, 1, 1], [], []>} : vector<16x128xbf16>, vector<128x128xbf16>, vector<16x128xf32> -> vector<16x128xf32>
    %c0_12 = arith.constant 0 : index
    %c0_13 = arith.constant 0 : index
    %27 = vector.load %arg5[%c0_12, %c0_13] : memref<1x128xf32, #tpu.memory_space<vmem>>, vector<1x128xf32>
    %28 = vector.broadcast %27 : vector<1x128xf32> to vector<16x128xf32>
    %29 = arith.addf %26, %28 : vector<16x128xf32>
    %c0_14 = arith.constant 0 : index
    %c0_15 = arith.constant 0 : index
    %30 = vector.load %arg8[%c0_14, %c0_15] : memref<16x128xf32, #tpu.memory_space<vmem>>, vector<16x128xf32>
    tpu.vector_store %arg8[%c0_14, %c0_15], %29 {strides = array<i32>} : memref<16x128xf32, #tpu.memory_space<vmem>>, vector<16x128xf32>,
    return
  }
  func.func @transform_0(%arg0: i32, %arg1: i32, %arg2: i32) -> (i32, i32) {
    %c0_i32 = arith.constant 0 : i32
    return %arg0, %arg2 : i32, i32
  }
  func.func @transform_1(%arg0: i32, %arg1: i32, %arg2: i32) -> (i32, i32) {
    %c0_i32 = arith.constant 0 : i32
    return %arg2, %arg1 : i32, i32
  }
  func.func @transform_2(%arg0: i32, %arg1: i32, %arg2: i32) -> (i32, i32) {
    %c0_i32 = arith.constant 0 : i32
    %c0_i32_0 = arith.constant 0 : i32
    return %c0_i32, %arg1 : i32, i32
  }
  func.func @transform_3(%arg0: i32, %arg1: i32, %arg2: i32) -> (i32, i32) {
    %c0_i32 = arith.constant 0 : i32
    %c0_i32_0 = arith.constant 0 : i32
    %c0_i32_1 = arith.constant 0 : i32
    return %c0_i32, %c0_i32_0 : i32, i32
  }
  func.func @transform_4(%arg0: i32, %arg1: i32, %arg2: i32) -> (i32, i32) {
    %c0_i32 = arith.constant 0 : i32
    %c0_i32_0 = arith.constant 0 : i32
    %c0_i32_1 = arith.constant 0 : i32
    return %c0_i32, %c0_i32_0 : i32, i32
  }
  func.func @transform_5(%arg0: i32, %arg1: i32, %arg2: i32) -> (i32, i32) {
    %c0_i32 = arith.constant 0 : i32
    return %arg0, %arg1 : i32, i32
  }
}

</mosaic_0001>

<bundles_post_ra>
// kernel: vision_transformer_forward.14
= control target key start
LH: loop header
LB: loop body
LE: loop exit
PB: predicated region body
PF: predicated region fallthrough
CT: control target
= control target key end

     0   :  { %v277_v8 = vmov 128.0   ;;  %s476_s0 = inlined_call_operand.vmem [shape: f32[64,128], index: 0, kind: input, shape index: {}]   ;;  %s477_s1 = inlined_call_operand.vmem [shape: f32[1,128], index: 1, kind: input, shape index: {}]   ;;  %s478_s2 = inlined_call_operand.vmem [shape: f32[1,128], index: 2, kind: input, shape index: {}]   ;;  %s479_s3 = inlined_call_operand.vmem [shape: bf16[64,128], index: 3, kind: output, shape index: {}]  }
   0x1   :  { %v18_v0 = vld [vmem:[%s476_s0 + $0x20] sm:$0xff]  ;;  %v16_v1 = vld [vmem:[%s476_s0 + $0x10] sm:$0xff]  ;;  %v19_v3 = vld [vmem:[%s476_s0 + $0x28] sm:$0xff]  ;;  %259 = vrcp.f32 %v277_v8 }
   0x2   :  { %v14_v2 = vld [vmem:[%s476_s0] sm:$0xff]  ;;  %30 = vadd.xlane.f32.xlu2 %v18_v0  ;;  %26 = vadd.xlane.f32.xlu1 %v16_v1  ;;  %v17_v4 = vld [vmem:[%s476_s0 + $0x18] sm:$0xff]  ;;  %v15_v5 = vld [vmem:[%s476_s0 + $0x8] sm:$0xff] }
   0x3   :  { %22 = vadd.xlane.f32.xlu0 %v14_v2  ;;  %v21_v6 = vld [vmem:[%s476_s0 + $0x38] sm:$0xff]  ;;  %v20_v7 = vld [vmem:[%s476_s0 + $0x30] sm:$0xff] }
   0x7   :  { %v260_v9 = vpop.eup %259 }
   0x8   :  { %v39_v10 = vmul.f32 128.0, %v260_v9  ;;  %vm43_vm0 = vweird.f32 %v260_v9 }
   0xa   :  { %32 = vadd.xlane.f32.xlu2 %v19_v3  ;;  %28 = vadd.xlane.f32.xlu1 %v17_v4  ;;  %v40_v11 = vsub.f32 1.0, %v39_v10 }
   0xb   :  { %24 = vadd.xlane.f32.xlu0 %v15_v5 }
   0xc   :  { %v41_v12 = vmul.f32 %v260_v9, %v40_v11 }
   0xe   :  { %v42_v13 = vadd.f32 %v260_v9, %v41_v12 }
  0x10   :  { %v322_v14 = vsel %vm43_vm0, %v260_v9, %v42_v13 }
  0x12   :  { %36 = vadd.xlane.f32.xlu1 %v21_v6 }
  0x13   :  { %34 = vadd.xlane.f32.xlu0 %v20_v7 }
  0x75   :  { %v31_v15 = vpop.xlane.xlu2 %30  ;;  %v27_v16 = vpop.xlane.xlu1 %26 }
  0x76   :  { %v47_v17 = vmul.f32 %v322_v14, %v27_v16  ;;  %v23_v18 = vpop.xlane.xlu0 %22  ;;  %v49_v32 = vmul.f32 %v322_v14, %v31_v15 }
  0x77   :  { %v45_v19 = vmul.f32 %v322_v14, %v23_v18 }
  0x78   :  { %v326_v20 = vsub.f32 %v16_v1, %v47_v17  ;;  %v350_v37 = vsub.f32 %v18_v0, %v49_v32 }
  0x79   :  { %v328_v21 = vsub.f32 %v14_v2, %v45_v19 }
  0x7a   :  { %v63_v22 = vmul.f32 %v326_v20, %v326_v20  ;;  %v65_v42 = vmul.f32 %v350_v37, %v350_v37 }
  0x7b   :  { %v61_v23 = vmul.f32 %v328_v21, %v328_v21 }
  0x7c   :  { %73 = vadd.xlane.f32.xlu1 %v63_v22 }
  0x7d   :  { %69 = vadd.xlane.f32.xlu2 %v61_v23  ;;  %v33_v24 = vpop.xlane.xlu2 %32  ;;  %v29_v25 = vpop.xlane.xlu1 %28 }
  0x7e   :  { %v50_v26 = vmul.f32 %v322_v14, %v33_v24  ;;  %v48_v27 = vmul.f32 %v322_v14, %v29_v25  ;;  %v25_v28 = vpop.xlane.xlu0 %24 }
  0x7f   :  { %v46_v29 = vmul.f32 %v322_v14, %v25_v28 }
  0x80   :  { %v337_v30 = vsub.f32 %v19_v3, %v50_v26  ;;  %v339_v31 = vsub.f32 %v17_v4, %v48_v27 }
  0x81   :  { %v342_v33 = vsub.f32 %v15_v5, %v46_v29 }
  0x82   :  { %v66_v34 = vmul.f32 %v337_v30, %v337_v30  ;;  %v64_v35 = vmul.f32 %v339_v31, %v339_v31 }
  0x83   :  { %v62_v36 = vmul.f32 %v342_v33, %v342_v33 }
  0x84   :  { %79 = vadd.xlane.f32.xlu1 %v66_v34 }
  0x85   :  { %75 = vadd.xlane.f32.xlu2 %v64_v35  ;;  %71 = vadd.xlane.f32.xlu0 %v62_v36  ;;  %v37_v39 = vpop.xlane.xlu1 %36 }
  0x86   :  { %v35_v38 = vpop.xlane.xlu0 %34  ;;  %v52_v43 = vmul.f32 %v322_v14, %v37_v39 }
  0x87   :  { %v51_v40 = vmul.f32 %v322_v14, %v35_v38 }
  0x88   :  { %v360_v45 = vsub.f32 %v21_v6, %v52_v43 }
  0x89   :  { %v353_v41 = vsub.f32 %v20_v7, %v51_v40 }
  0x8a   :  { %v68_v46 = vmul.f32 %v360_v45, %v360_v45 }
  0x8b   :  { %v67_v44 = vmul.f32 %v353_v41, %v353_v41 }
  0x8d   :  { %77 = vadd.xlane.f32.xlu0 %v65_v42  ;;  %81 = vadd.xlane.f32.xlu2 %v67_v44  ;;  %v405_v42 = vld [vmem:[%s477_s1] ss:$0 sm:$0xff] }
  0x95   :  { %83 = vadd.xlane.f32.xlu0 %v68_v46 }
  0xef   :  { %v74_v47 = vpop.xlane.xlu1 %73 }
  0xf0   :  { %v87_v48 = vmul.f32 %v74_v47, %v322_v14  ;;  %v70_v49 = vpop.xlane.xlu2 %69 }
  0xf1   :  { %v85_v50 = vmul.f32 %v70_v49, %v322_v14 }
  0xf2   :  { %v95_v51 = vadd.f32 1e-05, %v87_v48 }
  0xf3   :  { %v93_v52 = vadd.f32 1e-05, %v85_v50 }
  0xf4   :  { %261 = vrsqrt.f32 %v95_v51  ;;  %vm127_vm1 = vweird.f32 %v95_v51 }
  0xf5   :  { %263 = vrsqrt.f32 %v93_v52  ;;  %vm107_vm5 = vweird.f32 %v93_v52 }
  0xf7   :  { %v80_v53 = vpop.xlane.xlu1 %79 }
  0xf8   :  { %v90_v54 = vmul.f32 %v80_v53, %v322_v14  ;;  %v76_v55 = vpop.xlane.xlu2 %75  ;;  %v72_v56 = vpop.xlane.xlu0 %71  ;;  %v419_v53 = vld [vmem:[%s478_s2] ss:$0 sm:$0xff] }
  0xf9   :  { %v88_v57 = vmul.f32 %v76_v55, %v322_v14  ;;  %v86_v58 = vmul.f32 %v72_v56, %v322_v14 }
  0xfa   :  { %v262_v59 = vpop.eup %261  ;;  %v369_v60 = vadd.f32 1e-05, %v90_v54 }
  0xfb   :  { %v264_v61 = vpop.eup %263  ;;  %v122_v62 = vmul.f32 %v262_v59, %v95_v51  ;;  %v96_v63 = vadd.f32 1e-05, %v88_v57  ;;  %v371_v0 = vadd.f32 1e-05, %v86_v58  ;;  %vm128_vm2 = vweird.f32 %v262_v59 }
  0xfc   :  { %v102_v1 = vmul.f32 %v264_v61, %v93_v52  ;;  %265 = vrsqrt.f32 %v369_v60  ;;  %vm108_vm3 = vweird.f32 %v264_v61  ;;  %vm387_vm4 = vmor %vm127_vm1, %vm128_vm2  ;;  %vm157_vm10 = vweird.f32 %v369_v60 }
  0xfd   :  { %v123_v2 = vmul.f32 %v262_v59, %v122_v62  ;;  %267 = vrsqrt.f32 %v96_v63  ;;  %vm394_vm6 = vmor %vm107_vm5, %vm108_vm3  ;;  %vm137_vm7 = vweird.f32 %v96_v63  ;;  %vm117_vm13 = vweird.f32 %v371_v0 }
  0xfe   :  { %v103_v3 = vmul.f32 %v264_v61, %v102_v1  ;;  %269 = vrsqrt.f32 %v371_v0 }
  0xff   :  { %v124_v4 = vmul.f32 0.5, %v123_v2 }
 0x100   :  { %v104_v5 = vmul.f32 0.5, %v103_v3  ;;  %v82_v6 = vpop.xlane.xlu2 %81  ;;  %v78_v7 = vpop.xlane.xlu0 %77 }
 0x101   :  { %v125_v8 = vsub.f32 1.5, %v124_v4  ;;  %v91_v9 = vmul.f32 %v82_v6, %v322_v14  ;;  %v89_v10 = vmul.f32 %v78_v7, %v322_v14 }
 0x102   :  { %v377_v11 = vpop.eup %265  ;;  %v105_v12 = vsub.f32 1.5, %v104_v5 }
 0x103   :  { %v268_v13 = vpop.eup %267  ;;  %v126_v15 = vmul.f32 %v262_v59, %v125_v8  ;;  %v152_v16 = vmul.f32 %v377_v11, %v369_v60  ;;  %v381_v17 = vadd.f32 1e-05, %v91_v9  ;;  %v383_v22 = vadd.f32 1e-05, %v89_v10 }
 0x104   :  { %v270_v18 = vpop.eup %269  ;;  %v132_v19 = vmul.f32 %v268_v13, %v96_v63  ;;  %v106_v23 = vmul.f32 %v264_v61, %v105_v12  ;;  %vm138_vm8 = vweird.f32 %v268_v13  ;;  %vm158_vm11 = vweird.f32 %v377_v11 }
 0x105   :  { %v153_v24 = vmul.f32 %v377_v11, %v152_v16  ;;  %v112_v25 = vmul.f32 %v270_v18, %v371_v0  ;;  %271 = vrsqrt.f32 %v381_v17  ;;  %v130_v28 = vsel %vm387_vm4, %v262_v59, %v126_v15  ;;  %vm139_vm12 = vmor %vm137_vm7, %vm138_vm8 }
 0x106   :  { %v133_v27 = vmul.f32 %v268_v13, %v132_v19  ;;  %273 = vrsqrt.f32 %v383_v22  ;;  %v110_v38 = vsel %vm394_vm6, %v264_v61, %v106_v23  ;;  %v183_v43 = vmul.f32 %v130_v28, %v326_v20  ;;  %vm432_vm15 = vmor %vm157_vm10, %vm158_vm11 }
 0x107   :  { %v154_v29 = vmul.f32 0.5, %v153_v24  ;;  %v113_v32 = vmul.f32 %v270_v18, %v112_v25  ;;  %vm118_vm9 = vweird.f32 %v270_v18  ;;  %v181_v50 = vmul.f32 %v110_v38, %v328_v21 }
 0x108   :  { %v134_v35 = vmul.f32 0.5, %v133_v27  ;;  %v84_v36 = vpop.xlane.xlu0 %83  ;;  %v195_v21 = vmul.f32 %v405_v42, %v183_v43  ;;  %vm119_vm14 = vmor %vm117_vm13, %vm118_vm9  ;;  %vm167_vm0 = vweird.f32 %v381_v17  ;;  %vm147_vm4 = vweird.f32 %v383_v22 }
 0x109   :  { %v114_v39 = vmul.f32 0.5, %v113_v32  ;;  %v92_v40 = vmul.f32 %v84_v36, %v322_v14  ;;  %v155_v44 = vsub.f32 1.5, %v154_v29  ;;  %v193_v61 = vmul.f32 %v405_v42, %v181_v50 }
 0x10a   :  { %v135_v46 = vsub.f32 1.5, %v134_v35  ;;  %v207_v2 = vadd.f32 %v419_v53, %v195_v21 }
 0x10b   :  { %v115_v47 = vsub.f32 1.5, %v114_v39  ;;  %v408_v48 = vadd.f32 1e-05, %v92_v40  ;;  %v272_v49 = vpop.eup %271  ;;  %v156_v54 = vmul.f32 %v377_v11, %v155_v44 }
 0x10c   :  { %v136_v14 = vmul.f32 %v268_v13, %v135_v46  ;;  %v162_v20 = vmul.f32 %v272_v49, %v381_v17  ;;  %v274_v52 = vpop.eup %273  ;;  %vm168_vm1 = vweird.f32 %v272_v49 }
 0x10d   :  { %v116_v51 = vmul.f32 %v270_v18, %v115_v47  ;;  %275 = vrsqrt.f32 %v408_v48  ;;  %v142_v59 = vmul.f32 %v274_v52, %v383_v22  ;;  %v160_v60 = vsel %vm432_vm15, %v377_v11, %v156_v54  ;;  %vm169_vm3 = vmor %vm167_vm0, %vm168_vm1 }
 0x10e   :  { %v140_v55 = vsel %vm139_vm12, %v268_v13, %v136_v14  ;;  %v163_v58 = vmul.f32 %v272_v49, %v162_v20  ;;  %vm148_vm2 = vweird.f32 %v274_v52  ;;  %v186_v15 = vmul.f32 %v160_v60, %v337_v30 }
 0x10f   :  { %v184_v56 = vmul.f32 %v140_v55, %v339_v31  ;;  %v120_v57 = vsel %vm119_vm14, %v270_v18, %v116_v51  ;;  %v143_v31 = vmul.f32 %v274_v52, %v142_v59  ;;  %vm149_vm5 = vmor %vm147_vm4, %vm148_vm2  ;;  %vm177_vm7 = vweird.f32 %v408_v48 }
 0x110   :  { %v182_v63 = vmul.f32 %v120_v57, %v342_v33  ;;  %v164_v1 = vmul.f32 0.5, %v163_v58  ;;  %v205_v33 = vadd.f32 %v419_v53, %v193_v61  ;;  %v198_v24 = vmul.f32 %v405_v42, %v186_v15 }
 0x111   :  { %v196_v0 = vmul.f32 %v405_v42, %v184_v56  ;;  %v144_v6 = vmul.f32 0.5, %v143_v31 }
 0x112   :  { %v194_v3 = vmul.f32 %v405_v42, %v182_v63  ;;  %v165_v5 = vsub.f32 1.5, %v164_v1  ;;  %v210_v28 = vadd.f32 %v419_v53, %v198_v24 }
 0x113   :  { %v208_v4 = vadd.f32 %v419_v53, %v196_v0  ;;  %v276_v7 = vpop.eup %275  ;;  %v145_v12 = vsub.f32 1.5, %v144_v6 }
 0x114   :  { %v206_v8 = vadd.f32 %v419_v53, %v194_v3  ;;  %v166_v10 = vmul.f32 %v272_v49, %v165_v5  ;;  %v172_v13 = vmul.f32 %v276_v7, %v408_v48  ;;  %vm178_vm6 = vweird.f32 %v276_v7 }
 0x115   :  { %v241_v9 = vpack.c.bf16 %v208_v4, %v207_v2  ;;  %v146_v11 = vmul.f32 %v274_v52, %v145_v12  ;;  %vm179_vm8 = vmor %vm177_vm7, %vm178_vm6 }
 0x116   :  { %v236_v16 = vpack.c.bf16 %v206_v8, %v205_v33  ;;  %v173_v18 = vmul.f32 %v276_v7, %v172_v13  ;;  %v170_v19 = vsel %vm169_vm3, %v272_v49, %v166_v10 }
 0x117   :  { %253 = vst [vmem:[%s479_s3 + $0x8] sm:$0xff] %v241_v9   ;;  %v150_v23 = vsel %vm149_vm5, %v274_v52, %v146_v11  ;;  %v187_v17 = vmul.f32 %v170_v19, %v353_v41 }
 0x118   :  { %237 = vst [vmem:[%s479_s3] sm:$0xff] %v236_v16   ;;  %v174_v30 = vmul.f32 0.5, %v173_v18  ;;  %v185_v25 = vmul.f32 %v150_v23, %v350_v37 }
 0x119   :  { %v199_v34 = vmul.f32 %v405_v42, %v187_v17 }
 0x11a   :  { %v175_v26 = vsub.f32 1.5, %v174_v30  ;;  %v197_v27 = vmul.f32 %v405_v42, %v185_v25 }
 0x11b   :  { %v211_v36 = vadd.f32 %v419_v53, %v199_v34 }
 0x11c   :  { %v176_v22 = vmul.f32 %v276_v7, %v175_v26  ;;  %v209_v29 = vadd.f32 %v419_v53, %v197_v27 }
 0x11e   :  { %v180_v32 = vsel %vm179_vm8, %v276_v7, %v176_v22  ;;  %v246_v35 = vpack.c.bf16 %v210_v28, %v209_v29 }
 0x11f   :  { %v188_v37 = vmul.f32 %v180_v32, %v360_v45 }
 0x120   :  { %254 = vst [vmem:[%s479_s3 + $0x10] sm:$0xff] %v246_v35  }
 0x121   :  { %v200_v41 = vmul.f32 %v405_v42, %v188_v37 }
 0x123   :  { %v212_v38 = vadd.f32 %v419_v53, %v200_v41 }
 0x125   :  { %v251_v39 = vpack.c.bf16 %v212_v38, %v211_v36 }
 0x127   :  { %255 = vst [vmem:[%s479_s3 + $0x18] sm:$0xff] %v251_v39  }

// kernel: vision_transformer_forward.13
= control target key start
LH: loop header
LB: loop body
LE: loop exit
PB: predicated region body
PF: predicated region fallthrough
CT: control target
= control target key end

     0   :  { %s408_s1 = inlined_call_operand.vmem [shape: bf16[256,128], index: 1, kind: input, shape index: {}]   ;;  %s409_s2 = inlined_call_operand.vmem [shape: f32[1,128], index: 2, kind: input, shape index: {}]   ;;  %s410_s0 = inlined_call_operand.vmem [shape: f32[32,256], index: 0, kind: input, shape index: {}]   ;;  %s411_s3 = inlined_call_operand.vmem [shape: f32[32,128], index: 3, kind: output, shape index: {}]  }
   0x1   :  { %v275_v0 = vld [vmem:[%s408_s1 + $0x38] sm:$0xff]  ;;  %v274_v2 = vld [vmem:[%s408_s1 + $0x30] sm:$0xff]  ;;  %v273_v4 = vld [vmem:[%s408_s1 + $0x28] sm:$0xff] }
   0x2   :  { %v283_v1 = vld [vmem:[%s408_s1 + $0x78] sm:$0xff]  ;;  %158 = vmatpush.bf16.msra.mxu0 %v275_v0  ;;  %284 = vmatpush.bf16.msra.mxu2 %v275_v0  ;;  %v282_v3 = vld [vmem:[%s408_s1 + $0x70] sm:$0xff]  ;;  %v281_v5 = vld [vmem:[%s408_s1 + $0x68] sm:$0xff] }
   0x3   :  { %177 = vmatpush.bf16.msra.mxu1 %v283_v1  ;;  %292 = vmatpush.bf16.msra.mxu3 %v283_v1  ;;  %v272_v6 = vld [vmem:[%s408_s1 + $0x20] sm:$0xff]  ;;  %v271_v8 = vld [vmem:[%s408_s1 + $0x18] sm:$0xff]  ;;  %v270_v10 = vld [vmem:[%s408_s1 + $0x10] sm:$0xff] }
   0x4   :  { %v280_v7 = vld [vmem:[%s408_s1 + $0x60] sm:$0xff]  ;;  %v279_v9 = vld [vmem:[%s408_s1 + $0x58] sm:$0xff]  ;;  %v278_v11 = vld [vmem:[%s408_s1 + $0x50] sm:$0xff] }
   0x5   :  { %v269_v12 = vld [vmem:[%s408_s1 + $0x8] sm:$0xff]  ;;  %v268_v14 = vld [vmem:[%s408_s1] sm:$0xff]  ;;  %v16_v17 = vld [vmem:[%s410_s0 + $0x10] sm:$0xff] }
   0x6   :  { %159 = vmatpush.bf16.msra.mxu0 %v274_v2  ;;  %285 = vmatpush.bf16.msra.mxu2 %v274_v2  ;;  %v277_v13 = vld [vmem:[%s408_s1 + $0x48] sm:$0xff]  ;;  %v276_v15 = vld [vmem:[%s408_s1 + $0x40] sm:$0xff]  ;;  %v20_v19 = vld [vmem:[%s410_s0 + $0x30] sm:$0xff] }
   0x7   :  { %178 = vmatpush.bf16.msra.mxu1 %v282_v3  ;;  %293 = vmatpush.bf16.msra.mxu3 %v282_v3  ;;  %v14_v16 = vld [vmem:[%s410_s0] sm:$0xff]  ;;  %v15_v20 = vld [vmem:[%s410_s0 + $0x8] sm:$0xff]  ;;  %v17_v21 = vld [vmem:[%s410_s0 + $0x18] sm:$0xff] }
   0x8   :  { %v18_v18 = vld [vmem:[%s410_s0 + $0x20] sm:$0xff]  ;;  %v19_v22 = vld [vmem:[%s410_s0 + $0x28] sm:$0xff]  ;;  %v21_v23 = vld [vmem:[%s410_s0 + $0x38] sm:$0xff]  ;;  %v22_v24 = vpack.c.bf16 %v16_v17, %v14_v16  ;;  %v23_v26 = vpack.c.bf16 %v17_v21, %v15_v20 }
   0x9   :  { %v24_v25 = vpack.c.bf16 %v20_v19, %v18_v18  ;;  %v25_v27 = vpack.c.bf16 %v21_v23, %v19_v22  ;;  %v300_v28 = vld [vmem:[%s409_s2] ss:$0 sm:$0xff] }
   0xa   :  { %160 = vmatpush.bf16.msra.mxu0 %v273_v4  ;;  %286 = vmatpush.bf16.msra.mxu2 %v273_v4 }
   0xb   :  { %179 = vmatpush.bf16.msra.mxu1 %v281_v5  ;;  %294 = vmatpush.bf16.msra.mxu3 %v281_v5 }
   0xe   :  { %161 = vmatpush.bf16.msra.mxu0 %v272_v6  ;;  %287 = vmatpush.bf16.msra.mxu2 %v272_v6 }
   0xf   :  { %180 = vmatpush.bf16.msra.mxu1 %v280_v7  ;;  %295 = vmatpush.bf16.msra.mxu3 %v280_v7 }
  0x12   :  { %162 = vmatpush.bf16.msra.mxu0 %v271_v8  ;;  %288 = vmatpush.bf16.msra.mxu2 %v271_v8 }
  0x13   :  { %181 = vmatpush.bf16.msra.mxu1 %v279_v9  ;;  %296 = vmatpush.bf16.msra.mxu3 %v279_v9 }
  0x16   :  { %163 = vmatpush.bf16.msra.mxu0 %v270_v10  ;;  %289 = vmatpush.bf16.msra.mxu2 %v270_v10 }
  0x17   :  { %182 = vmatpush.bf16.msra.mxu1 %v278_v11  ;;  %297 = vmatpush.bf16.msra.mxu3 %v278_v11 }
  0x1a   :  { %164 = vmatpush.bf16.msra.mxu0 %v269_v12  ;;  %290 = vmatpush.bf16.msra.mxu2 %v269_v12 }
  0x1b   :  { %183 = vmatpush.bf16.msra.mxu1 %v277_v13  ;;  %298 = vmatpush.bf16.msra.mxu3 %v277_v13 }
  0x1e   :  { %165 = vmatpush.bf16.msra.mxu0 %v268_v14  ;;  %291 = vmatpush.bf16.msra.mxu2 %v268_v14 }
  0x1f   :  { %184 = vmatpush.bf16.msra.mxu1 %v276_v15  ;;  %299 = vmatpush.bf16.msra.mxu3 %v276_v15 }
  0x21   :  { %166 = vmatmul.bf16.vlgmr.msra.gmra.mxu0 %v22_v24  ;;  %171 = vmatmul.bf16.vlgmr.msra.gmra.mxu2 %v24_v25 }
  0x22   :  { %185 = vmatmul.bf16.vlgmr.msra.gmra.mxu1 %v23_v26  ;;  %190 = vmatmul.bf16.vlgmr.msra.gmra.mxu3 %v25_v27 }
  0x9e   :  { %v167_v29 = vpop.f32.mrf.mxu0 }
  0x9f   :  { %v168_v30 = vadd.f32 %v300_v28, %v167_v29  ;;  %v186_v31 = vpop.f32.mrf.mxu1 }
  0xa1   :  { %v187_v32 = vadd.f32 %v186_v31, %v168_v30 }
  0xa3   :  { %196 = vst [vmem:[%s411_s3] sm:$0xff] %v187_v32 }
  0xa4   :  { %v172_v33 = vpop.f32.mrf.mxu2 }
  0xa5   :  { %v173_v34 = vadd.f32 %v300_v28, %v172_v33  ;;  %v191_v35 = vpop.f32.mrf.mxu3 }
  0xa6   :  { %v169_v36 = vpop.f32.mrf.mxu0 }
  0xa7   :  { %v192_v37 = vadd.f32 %v191_v35, %v173_v34  ;;  %v170_v38 = vadd.f32 %v300_v28, %v169_v36  ;;  %v188_v39 = vpop.f32.mrf.mxu1 }
  0xa9   :  { %198 = vst [vmem:[%s411_s3 + $0x10] sm:$0xff] %v192_v37  ;;  %v189_v40 = vadd.f32 %v188_v39, %v170_v38 }
  0xab   :  { %197 = vst [vmem:[%s411_s3 + $0x8] sm:$0xff] %v189_v40 }
  0xac   :  { %v174_v41 = vpop.f32.mrf.mxu2 }
  0xad   :  { %v175_v42 = vadd.f32 %v300_v28, %v174_v41  ;;  %v193_v43 = vpop.f32.mrf.mxu3 }
  0xaf   :  { %v194_v44 = vadd.f32 %v193_v43, %v175_v42 }
  0xb1   :  { %199 = vst [vmem:[%s411_s3 + $0x18] sm:$0xff] %v194_v44 }

// kernel: vision_transformer_forward.15
= control target key start
LH: loop header
LB: loop body
LE: loop exit
PB: predicated region body
PF: predicated region fallthrough
CT: control target
= control target key end

     0   :  { %s1154_s18 = smov 0   ;;  %s1156_s19 = smov 0   ;;  %s1420_s0 = inlined_call_operand.vmem [shape: bf16[64,128], index: 0, kind: input, shape index: {}]   ;;  %s1421_s1 = inlined_call_operand.vmem [shape: bf16[128,384], index: 1, kind: input, shape index: {}]   ;;  %s1422_s2 = inlined_call_operand.vmem [shape: f32[1,384], index: 2, kind: input, shape index: {}]   ;;  %s1423_s3 = inlined_call_operand.vmem [shape: f32[1,128], index: 3, kind: input, shape index: {}]   ;;  %s1424_s4 = inlined_call_operand.vmem [shape: f32[1,128], index: 4, kind: input, shape index: {}]   ;;  %s1425_s5 = inlined_call_operand.vmem [shape: bf16[64,384], index: 5, kind: output, shape index: {}]  }
   0x1   :  { %s1158_s20 = smov 0   ;;  %s1160_s21 = smov 0  }
   0x2   :  { %s1162_s22 = smov 0  }
   0x3 LB: > { %s30_s23 = sadd.s32 1, %s1117_s21  ;;  %s901_s24 = sadd.s32 4294967295, %s1121_s22   ;;  %s1121_s22 = sphi %s1162_s22, %s15_s22   ;;  %s1117_s21 = sphi %s1160_s21, %s1436_s21   ;;  %s1113_s20 = sphi %s1158_s20, %s1435_s20   ;;  %s1109_s19 = sphi %s1156_s19, %s1434_s19   ;;  %s1105_s18 = sphi %s1154_s18, %s1433_s18  }
   0x4   : > { %p32_p0 = scmp.ge.s32.totalorder %s30_s23, 3  ;;  %p78_p1 = scmp.ne.s32.totalorder %s1109_s19, %s1105_s18 }
   0x5   : > { %p79_p2 = scmp.eq.s32.totalorder %s1121_s22, 0  ;;  %p178_p4 = scmp.eq.s32.totalorder %s901_s24, 2 }
   0x6   : > { %s1438_s23 = smov (%p32_p0, %s30_s23), 0  ;;  %s71_s26 = sadd.s32 1, %s1109_s19 }
   0x7   : > { %p80_p3 = por %p79_p2, %p78_p1  ;;  %s67_s25 = ssub.s32 %s1117_s21, %s1438_s23 }
   0x8   : > { %p69_p5 = scmp.eq.s32.totalorder %s67_s25, 0  ;;  %p1189_p6 = por %p178_p4, %p78_p1 }
   0x9   : > { %p905_p7 = scmp.ge.s32.totalorder %s1121_s22, 3 }
   0xa   : > { %s1194_s28 = scalar_select %p69_p5, %s1109_s19, %s71_s26  }
   0xb   : > { %218 = sbr.rel (%p905_p7) target bundleno = 36 (0x24), region = 28 }
  0x10   : > { %221 = sbr.rel (!%p80_p3) target bundleno = 36 (0x24), region = 32  ;;  %s223_s29 = sand.u32 (%p80_p3), 1, %s1109_s19  }
  0x11   : > { %s907_s30 = sshll.u32 (%p80_p3), %s1117_s21, 2  ;;  %s906_s6 = sshll.u32 (%p80_p3), %s223_s29, 6 }
  0x12   : > { %s1202_s9 = scalar_lea.vmem (%p80_p3), %s1421_s1, %s907_s30  ;;  %s225_s10 = scalar_lea.vmem (%p80_p3), [#allocation2], %s906_s6 }
  0x13   : > { %v247_v0 = vld [vmem:[%s1202_s9] sm:$0xf] (%p80_p3)  ;;  %v249_v1 = vld [vmem:[%s1202_s9 + $0xc] sm:$0xf] (%p80_p3)  ;;  %v251_v2 = vld [vmem:[%s1202_s9 + $0x18] sm:$0xf] (%p80_p3) }
  0x14   : > { %248 = vst [vmem:[%s225_s10] sm:$0xf] (%p80_p3), %v247_v0  ;;  %v253_v3 = vld [vmem:[%s1202_s9 + $0x24] sm:$0xf] (%p80_p3)  ;;  %v255_v4 = vld [vmem:[%s1202_s9 + $0x30] sm:$0xf] (%p80_p3) }
  0x15   : > { %250 = vst [vmem:[%s225_s10 + $0x4] sm:$0xf] %v249_v1  ;;  %v257_v5 = vld [vmem:[%s1202_s9 + $0x3c] sm:$0xf]  ;;  %v259_v6 = vld [vmem:[%s1202_s9 + $0x48] sm:$0xf] }
  0x16   : > { %252 = vst [vmem:[%s225_s10 + $0x8] sm:$0xf] %v251_v2  ;;  %v261_v7 = vld [vmem:[%s1202_s9 + $0x54] sm:$0xf]  ;;  %v263_v8 = vld [vmem:[%s1202_s9 + $0x60] sm:$0xf] }
  0x17   : > { %254 = vst [vmem:[%s225_s10 + $0xc] sm:$0xf] %v253_v3  ;;  %v265_v9 = vld [vmem:[%s1202_s9 + $0x6c] sm:$0xf]  ;;  %v267_v10 = vld [vmem:[%s1202_s9 + $0x78] sm:$0xf] }
  0x18   : > { %256 = vst [vmem:[%s225_s10 + $0x10] sm:$0xf] %v255_v4  ;;  %v269_v11 = vld [vmem:[%s1202_s9 + $0x84] sm:$0xf]  ;;  %v271_v12 = vld [vmem:[%s1202_s9 + $0x90] sm:$0xf] }
  0x19   : > { %258 = vst [vmem:[%s225_s10 + $0x14] sm:$0xf] %v257_v5  ;;  %v273_v13 = vld [vmem:[%s1202_s9 + $0x9c] sm:$0xf]  ;;  %v275_v14 = vld [vmem:[%s1202_s9 + $0xa8] sm:$0xf] }
  0x1a   : > { %260 = vst [vmem:[%s225_s10 + $0x18] sm:$0xf] %v259_v6  ;;  %v277_v15 = vld [vmem:[%s1202_s9 + $0xb4] sm:$0xf] }
  0x1b   : > { %262 = vst [vmem:[%s225_s10 + $0x1c] sm:$0xf] %v261_v7 }
  0x1c   : > { %264 = vst [vmem:[%s225_s10 + $0x20] sm:$0xf] %v263_v8 }
  0x1d   : > { %266 = vst [vmem:[%s225_s10 + $0x24] sm:$0xf] %v265_v9 }
  0x1e   : > { %268 = vst [vmem:[%s225_s10 + $0x28] sm:$0xf] %v267_v10 }
  0x1f   : > { %270 = vst [vmem:[%s225_s10 + $0x2c] sm:$0xf] %v269_v11 }
  0x20   : > { %272 = vst [vmem:[%s225_s10 + $0x30] sm:$0xf] %v271_v12 }
  0x21   : > { %274 = vst [vmem:[%s225_s10 + $0x34] sm:$0xf] %v273_v13 }
  0x22   : > { %276 = vst [vmem:[%s225_s10 + $0x38] sm:$0xf] %v275_v14 }
  0x23   : > { %278 = vst [vmem:[%s225_s10 + $0x3c] sm:$0xf] %v277_v15 }
  0x24 PF: > { %p908_p8 = scmp.ge.s32.totalorder %s1121_s22, 1  ;;  %p339_p9 = scmp.lt.s32.totalorder %s1121_s22, 4 }
  0x26   : > { %p340_p10 = pnand %p908_p8, %p339_p9 }
  0x27   : > { %p393_p11 = scmp.lt.s32.totalorder (!%p340_p10), %s1113_s20, 2  ;;  %s346_s6 = sand.u32 (!%p340_p10), 1, %s1105_s18  }
  0x28   : > { %343 = sbr.rel (%p340_p10) target bundleno = 489 (0x1e9), region = 77  ;;  %s909_s7 = sshll.u32 (!%p340_p10), %s346_s6, 6 }
  0x29   : > { %s1287_s8 = scalar_lea.vmem (!%p340_p10), [#allocation2], %s909_s7  ;;  %s910_s15 = sshll.u32 (!%p340_p10), %s346_s6, 5 }
  0x2a   : > { %s382_s16 = scalar_lea.vmem (!%p340_p10), [#allocation3], %s910_s15 }
  0x2d   : > { %v993_v16 = vld [vmem:[%s1420_s0 + $0x18] sm:$0xff]   ;;  %v992_v17 = vld [vmem:[%s1420_s0 + $0x10] sm:$0xff]   ;;  %v956_v18 = vld [vmem:[%s1420_s0] sm:$0xff]   ;;  %v1123_v28 = vmov 128.0   ;;  %s1278_s25 = scalar_select %p393_p11, %s1113_s20, 2 }
  0x2e   : > { %v969_v19 = vunpack.c.l.bf16 %v993_v16  ;;  %v965_v20 = vunpack.c.l.bf16 %v992_v17  ;;  %v957_v21 = vunpack.c.l.bf16 %v956_v18  ;;  %v970_v22 = vunpack.c.h.bf16 %v993_v16  ;;  %v991_v25 = vld [vmem:[%s1420_s0 + $0x8] sm:$0xff]   ;;  %v954_v3 = vld [vmem:[%s1287_s8 + $0x38] sm:$0xff]  ;;  %v953_v4 = vld [vmem:[%s1287_s8 + $0x30] sm:$0xff]  ;;  %s944_s18 = sshll.u32 (%p1189_p6), %s1113_s20, 2 }
  0x2f   : > { %v966_v23 = vunpack.c.h.bf16 %v992_v17  ;;  %v958_v24 = vunpack.c.h.bf16 %v956_v18  ;;  %v961_v26 = vunpack.c.l.bf16 %v991_v25  ;;  %v962_v27 = vunpack.c.h.bf16 %v991_v25  ;;  %s395_s30 = scalar_lea.vmem %s1422_s2, %s1278_s25  ;;  %998 = vmatpush.bf16.msra.mxu2 %v954_v3  ;;  %999 = vmatpush.bf16.msra.mxu3 %v954_v3  ;;  %v952_v5 = vld [vmem:[%s1287_s8 + $0x28] sm:$0xff]  ;;  %v951_v6 = vld [vmem:[%s1287_s8 + $0x20] sm:$0xff]  ;;  %v950_v7 = vld [vmem:[%s1287_s8 + $0x18] sm:$0xff]  ;;  %s732_s25 = scalar_lea.vmem (%p1189_p6), %s1425_s5, %s944_s18 }
  0x30   : > { %425 = vadd.xlane.f32.xlu1 %v969_v19  ;;  %421 = vadd.xlane.f32.xlu0 %v965_v20  ;;  %1065 = vrcp.f32 %v1123_v28  ;;  %v949_v8 = vld [vmem:[%s1287_s8 + $0x10] sm:$0xff]  ;;  %v948_v11 = vld [vmem:[%s1287_s8 + $0x8] sm:$0xff]  ;;  %v947_v16 = vld [vmem:[%s1287_s8] sm:$0xff] }
  0x31   : > { %413 = vadd.xlane.f32.xlu2 %v957_v21  ;;  %676 = vmatpush.bf16.msra.mxu0 %v954_v3 }
  0x32   : > { %997 = vmatpush.bf16.msra.mxu1 %v954_v3 }
  0x33   : > { %1001 = vmatpush.bf16.msra.mxu2 %v953_v4  ;;  %1002 = vmatpush.bf16.msra.mxu3 %v953_v4 }
  0x35   : > { %677 = vmatpush.bf16.msra.mxu0 %v953_v4 }
  0x36   : > { %v1066_v29 = vpop.eup %1065  ;;  %1000 = vmatpush.bf16.msra.mxu1 %v953_v4 }
  0x37   : > { %v430_v30 = vmul.f32 128.0, %v1066_v29  ;;  %vm434_vm0 = vweird.f32 %v1066_v29  ;;  %1004 = vmatpush.bf16.msra.mxu2 %v952_v5  ;;  %1005 = vmatpush.bf16.msra.mxu3 %v952_v5 }
  0x38   : > { %427 = vadd.xlane.f32.xlu1 %v970_v22  ;;  %423 = vadd.xlane.f32.xlu0 %v966_v23 }
  0x39   : > { %415 = vadd.xlane.f32.xlu2 %v958_v24  ;;  %v431_v31 = vsub.f32 1.0, %v430_v30  ;;  %678 = vmatpush.bf16.msra.mxu0 %v952_v5 }
  0x3a   : > { %1003 = vmatpush.bf16.msra.mxu1 %v952_v5 }
  0x3b   : > { %v432_v32 = vmul.f32 %v1066_v29, %v431_v31  ;;  %1007 = vmatpush.bf16.msra.mxu2 %v951_v6  ;;  %1008 = vmatpush.bf16.msra.mxu3 %v951_v6 }
  0x3d   : > { %v433_v33 = vadd.f32 %v1066_v29, %v432_v32  ;;  %679 = vmatpush.bf16.msra.mxu0 %v951_v6 }
  0x3e   : > { %1006 = vmatpush.bf16.msra.mxu1 %v951_v6 }
  0x3f   : > { %v1234_v34 = vsel %vm434_vm0, %v1066_v29, %v433_v33  ;;  %1010 = vmatpush.bf16.msra.mxu2 %v950_v7  ;;  %1011 = vmatpush.bf16.msra.mxu3 %v950_v7 }
  0x40   : > { %417 = vadd.xlane.f32.xlu0 %v961_v26  ;;  %419 = vadd.xlane.f32.xlu1 %v962_v27 }
  0x41   : > { %680 = vmatpush.bf16.msra.mxu0 %v950_v7 }
  0x42   : > { %1009 = vmatpush.bf16.msra.mxu1 %v950_v7 }
  0x43   : > { %1013 = vmatpush.bf16.msra.mxu2 %v949_v8  ;;  %1014 = vmatpush.bf16.msra.mxu3 %v949_v8 }
  0x45   : > { %681 = vmatpush.bf16.msra.mxu0 %v949_v8 }
  0x46   : > { %1012 = vmatpush.bf16.msra.mxu1 %v949_v8 }
  0x47   : > { %1016 = vmatpush.bf16.msra.mxu2 %v948_v11  ;;  %1017 = vmatpush.bf16.msra.mxu3 %v948_v11 }
  0x49   : > { %682 = vmatpush.bf16.msra.mxu0 %v948_v11 }
  0x4a   : > { %1015 = vmatpush.bf16.msra.mxu1 %v948_v11 }
  0x4b   : > { %1019 = vmatpush.bf16.msra.mxu2 %v947_v16  ;;  %1020 = vmatpush.bf16.msra.mxu3 %v947_v16 }
  0x4d   : > { %683 = vmatpush.bf16.msra.mxu0 %v947_v16 }
  0x4e   : > { %1018 = vmatpush.bf16.msra.mxu1 %v947_v16 }
  0xa3   : > { %v426_v35 = vpop.xlane.xlu1 %425  ;;  %v422_v36 = vpop.xlane.xlu0 %421 }
  0xa4   : > { %v442_v37 = vmul.f32 %v1234_v34, %v426_v35  ;;  %v440_v38 = vmul.f32 %v1234_v34, %v422_v36  ;;  %v414_v39 = vpop.xlane.xlu2 %413 }
  0xa5   : > { %v436_v50 = vmul.f32 %v1234_v34, %v414_v39 }
  0xa6   : > { %v1238_v40 = vsub.f32 %v969_v19, %v442_v37  ;;  %v1240_v41 = vsub.f32 %v965_v20, %v440_v38 }
  0xa7   : > { %v1262_v57 = vsub.f32 %v957_v21, %v436_v50 }
  0xa8   : > { %v458_v42 = vmul.f32 %v1238_v40, %v1238_v40  ;;  %v456_v43 = vmul.f32 %v1240_v41, %v1240_v41 }
  0xa9   : > { %v452_v62 = vmul.f32 %v1262_v57, %v1262_v57 }
  0xaa   : > { %472 = vadd.xlane.f32.xlu1 %v458_v42  ;;  %468 = vadd.xlane.f32.xlu2 %v456_v43 }
  0xab   : > { %v428_v44 = vpop.xlane.xlu1 %427  ;;  %v424_v45 = vpop.xlane.xlu0 %423 }
  0xac   : > { %v443_v46 = vmul.f32 %v1234_v34, %v428_v44  ;;  %v441_v47 = vmul.f32 %v1234_v34, %v424_v45  ;;  %v416_v48 = vpop.xlane.xlu2 %415 }
  0xad   : > { %v437_v49 = vmul.f32 %v1234_v34, %v416_v48 }
  0xae   : > { %v1250_v51 = vsub.f32 %v970_v22, %v443_v46  ;;  %v1252_v52 = vsub.f32 %v966_v23, %v441_v47 }
  0xaf   : > { %v1254_v53 = vsub.f32 %v958_v24, %v437_v49 }
  0xb0   : > { %v457_v54 = vmul.f32 %v1252_v52, %v1252_v52  ;;  %v459_v55 = vmul.f32 %v1250_v51, %v1250_v51 }
  0xb1   : > { %v453_v56 = vmul.f32 %v1254_v53, %v1254_v53 }
  0xb2   : > { %470 = vadd.xlane.f32.xlu0 %v457_v54  ;;  %474 = vadd.xlane.f32.xlu2 %v459_v55 }
  0xb3   : > { %462 = vadd.xlane.f32.xlu1 %v453_v56  ;;  %v418_v58 = vpop.xlane.xlu0 %417  ;;  %v420_v59 = vpop.xlane.xlu1 %419 }
  0xb4   : > { %v438_v60 = vmul.f32 %v1234_v34, %v418_v58  ;;  %v439_v63 = vmul.f32 %v1234_v34, %v420_v59 }
  0xb6   : > { %v1265_v61 = vsub.f32 %v961_v26, %v438_v60  ;;  %v1272_v1 = vsub.f32 %v962_v27, %v439_v63 }
  0xb8   : > { %v454_v0 = vmul.f32 %v1265_v61, %v1265_v61  ;;  %v455_v2 = vmul.f32 %v1272_v1, %v1272_v1 }
  0xba   : > { %464 = vadd.xlane.f32.xlu2 %v454_v0  ;;  %460 = vadd.xlane.f32.xlu0 %v452_v62 }
  0xc2   : > { %466 = vadd.xlane.f32.xlu0 %v455_v2 }
 0x11d   : > { %v473_v9 = vpop.xlane.xlu1 %472  ;;  %v469_v10 = vpop.xlane.xlu2 %468 }
 0x11e   : > { %v482_v12 = vmul.f32 %v473_v9, %v1234_v34  ;;  %v480_v13 = vmul.f32 %v469_v10, %v1234_v34 }
 0x120   : > { %v490_v14 = vadd.f32 1e-05, %v482_v12  ;;  %v488_v15 = vadd.f32 1e-05, %v480_v13 }
 0x122   : > { %1067 = vrsqrt.f32 %v490_v14  ;;  %vm558_vm1 = vweird.f32 %v490_v14  ;;  %vm538_vm5 = vweird.f32 %v488_v15 }
 0x123   : > { %1069 = vrsqrt.f32 %v488_v15 }
 0x125   : > { %v471_v17 = vpop.xlane.xlu0 %470  ;;  %v475_v18 = vpop.xlane.xlu2 %474 }
 0x126   : > { %v481_v19 = vmul.f32 %v471_v17, %v1234_v34  ;;  %v463_v20 = vpop.xlane.xlu1 %462  ;;  %v483_v21 = vmul.f32 %v475_v18, %v1234_v34  ;;  %v1062_v17 = vld [vmem:[%s1423_s3] ss:$0 sm:$0xff] }
 0x127   : > { %v477_v22 = vmul.f32 %v463_v20, %v1234_v34 }
 0x128   : > { %v1302_v23 = vpop.eup %1067  ;;  %v1304_v24 = vadd.f32 1e-05, %v481_v19  ;;  %v1306_v25 = vadd.f32 1e-05, %v483_v21 }
 0x129   : > { %v1308_v26 = vpop.eup %1069  ;;  %v553_v27 = vmul.f32 %v1302_v23, %v490_v14  ;;  %v485_v28 = vadd.f32 1e-05, %v477_v22  ;;  %vm559_vm2 = vweird.f32 %v1302_v23 }
 0x12a   : > { %v533_v29 = vmul.f32 %v1308_v26, %v488_v15  ;;  %1071 = vrsqrt.f32 %v1304_v24  ;;  %vm539_vm3 = vweird.f32 %v1308_v26  ;;  %vm1334_vm4 = vmor %vm558_vm1, %vm559_vm2  ;;  %vm548_vm6 = vweird.f32 %v1304_v24 }
 0x12b   : > { %v554_v30 = vmul.f32 %v1302_v23, %v553_v27  ;;  %1073 = vrsqrt.f32 %v485_v28  ;;  %vm1341_vm7 = vmor %vm538_vm5, %vm539_vm3  ;;  %vm508_vm8 = vweird.f32 %v485_v28  ;;  %vm568_vm11 = vweird.f32 %v1306_v25 }
 0x12c   : > { %v534_v31 = vmul.f32 %v1308_v26, %v533_v29  ;;  %1075 = vrsqrt.f32 %v1306_v25 }
 0x12d   : > { %v555_v32 = vmul.f32 0.5, %v554_v30  ;;  %v461_v33 = vpop.xlane.xlu0 %460  ;;  %v465_v35 = vpop.xlane.xlu2 %464 }
 0x12e   : > { %v535_v36 = vmul.f32 0.5, %v534_v31  ;;  %v476_v37 = vmul.f32 %v461_v33, %v1234_v34  ;;  %v478_v38 = vmul.f32 %v465_v35, %v1234_v34 }
 0x12f   : > { %v556_v39 = vsub.f32 1.5, %v555_v32 }
 0x130   : > { %v1072_v42 = vpop.eup %1071  ;;  %v536_v43 = vsub.f32 1.5, %v535_v36  ;;  %v1318_v44 = vadd.f32 1e-05, %v476_v37  ;;  %v1320_v45 = vadd.f32 1e-05, %v478_v38 }
 0x131   : > { %v1322_v46 = vpop.eup %1073  ;;  %v543_v47 = vmul.f32 %v1072_v42, %v1304_v24  ;;  %v557_v50 = vmul.f32 %v1302_v23, %v556_v39  ;;  %vm549_vm10 = vweird.f32 %v1072_v42  ;;  %v1063_v24 = vld [vmem:[%s1424_s4] ss:$0 sm:$0xff] }
 0x132   : > { %v1076_v48 = vpop.eup %1075  ;;  %v503_v49 = vmul.f32 %v1322_v46, %v485_v28  ;;  %1077 = vrsqrt.f32 %v1318_v44  ;;  %v537_v54 = vmul.f32 %v1308_v26, %v536_v43  ;;  %vm509_vm9 = vweird.f32 %v1322_v46  ;;  %vm550_vm14 = vmor %vm548_vm6, %vm549_vm10 }
 0x133   : > { %v544_v55 = vmul.f32 %v1072_v42, %v543_v47  ;;  %v563_v56 = vmul.f32 %v1076_v48, %v1306_v25  ;;  %1079 = vrsqrt.f32 %v1320_v45  ;;  %v561_v7 = vsel %vm1334_vm4, %v1302_v23, %v557_v50  ;;  %vm1356_vm12 = vmor %vm508_vm8, %vm509_vm9 }
 0x134   : > { %v504_v58 = vmul.f32 %v1322_v46, %v503_v49  ;;  %v541_v6 = vsel %vm1341_vm7, %v1308_v26, %v537_v54  ;;  %vm569_vm13 = vweird.f32 %v1076_v48  ;;  %v578_v18 = vmul.f32 %v561_v7, %v1238_v40 }
 0x135   : > { %v545_v60 = vmul.f32 0.5, %v544_v55  ;;  %v564_v62 = vmul.f32 %v1076_v48, %v563_v56  ;;  %v467_v63 = vpop.xlane.xlu0 %466  ;;  %v576_v16 = vmul.f32 %v541_v6, %v1240_v41  ;;  %vm570_vm15 = vmor %vm568_vm11, %vm569_vm13  ;;  %vm498_vm1 = vweird.f32 %v1318_v44 }
 0x136   : > { %v505_v2 = vmul.f32 0.5, %v504_v58  ;;  %v479_v3 = vmul.f32 %v467_v63, %v1234_v34  ;;  %v590_v30 = vmul.f32 %v1062_v17, %v578_v18  ;;  %vm518_vm2 = vweird.f32 %v1320_v45 }
 0x137   : > { %v546_v4 = vsub.f32 1.5, %v545_v60  ;;  %v565_v5 = vmul.f32 0.5, %v564_v62  ;;  %v588_v28 = vmul.f32 %v1062_v17, %v576_v16 }
 0x138   : > { %v1078_v8 = vpop.eup %1077  ;;  %v506_v9 = vsub.f32 1.5, %v505_v2  ;;  %v1354_v10 = vadd.f32 1e-05, %v479_v3 }
 0x139   : > { %v547_v11 = vmul.f32 %v1072_v42, %v546_v4  ;;  %v566_v12 = vsub.f32 1.5, %v565_v5  ;;  %v493_v13 = vmul.f32 %v1078_v8, %v1318_v44  ;;  %v1080_v14 = vpop.eup %1079  ;;  %vm499_vm0 = vweird.f32 %v1078_v8 }
 0x13a   : > { %v507_v15 = vmul.f32 %v1322_v46, %v506_v9  ;;  %1081 = vrsqrt.f32 %v1354_v10  ;;  %v513_v21 = vmul.f32 %v1080_v14, %v1320_v45  ;;  %vm519_vm3 = vweird.f32 %v1080_v14  ;;  %vm500_vm4 = vmor %vm498_vm1, %vm499_vm0  ;;  %v1064_v9 = vld [vmem:[%s395_s30] ss:$0 sm:$0xff] }
 0x13b   : > { %v567_v19 = vmul.f32 %v1076_v48, %v566_v12  ;;  %v494_v20 = vmul.f32 %v1078_v8, %v493_v13  ;;  %v551_v22 = vsel %vm550_vm14, %v1072_v42, %v547_v11  ;;  %v602_v42 = vadd.f32 %v1063_v24, %v590_v30  ;;  %vm520_vm5 = vmor %vm518_vm2, %vm519_vm3 }
 0x13c   : > { %v511_v41 = vsel %vm1356_vm12, %v1322_v46, %v507_v15  ;;  %v514_v26 = vmul.f32 %v1080_v14, %v513_v21  ;;  %v577_v40 = vmul.f32 %v551_v22, %v1252_v52  ;;  %vm528_vm7 = vweird.f32 %v1354_v10 }
 0x13d   : > { %v495_v23 = vmul.f32 0.5, %v494_v20  ;;  %v571_v27 = vsel %vm570_vm15, %v1076_v48, %v567_v19  ;;  %v573_v52 = vmul.f32 %v511_v41, %v1254_v53 }
 0x13e   : > { %v579_v29 = vmul.f32 %v571_v27, %v1250_v51  ;;  %v515_v31 = vmul.f32 0.5, %v514_v26  ;;  %v589_v32 = vmul.f32 %v1062_v17, %v577_v40  ;;  %v600_v51 = vadd.f32 %v1063_v24, %v588_v28 }
 0x13f   : > { %v496_v25 = vsub.f32 1.5, %v495_v23  ;;  %v585_v50 = vmul.f32 %v1062_v17, %v573_v52 }
 0x140   : > { %v1082_v33 = vpop.eup %1081  ;;  %v591_v35 = vmul.f32 %v1062_v17, %v579_v29  ;;  %v516_v37 = vsub.f32 1.5, %v515_v31  ;;  %v601_v39 = vadd.f32 %v1063_v24, %v589_v32 }
 0x141   : > { %v497_v36 = vmul.f32 %v1078_v8, %v496_v25  ;;  %v523_v38 = vmul.f32 %v1082_v33, %v1354_v10  ;;  %vm529_vm6 = vweird.f32 %v1082_v33  ;;  %v597_v60 = vadd.f32 %v1063_v24, %v585_v50 }
 0x142   : > { %v603_v43 = vadd.f32 %v1063_v24, %v591_v35  ;;  %v517_v46 = vmul.f32 %v1080_v14, %v516_v37  ;;  %v606_v44 = vpack.c.bf16 %v601_v39, %v600_v51  ;;  %vm530_vm8 = vmor %vm528_vm7, %vm529_vm6 }
 0x143   : > { %v524_v47 = vmul.f32 %v1082_v33, %v523_v38  ;;  %v501_v48 = vsel %vm500_vm4, %v1078_v8, %v497_v36 }
 0x144   : > { %v607_v49 = vpack.c.bf16 %v603_v43, %v602_v42  ;;  %v572_v53 = vmul.f32 %v501_v48, %v1262_v57  ;;  %v521_v55 = vsel %vm520_vm5, %v1080_v14, %v517_v46  ;;  %694 = vmatmul.bf16.vlgmr.msra.gmra.mxu2 %v606_v44 }
 0x145   : > { %v525_v54 = vmul.f32 0.5, %v524_v47  ;;  %v574_v62 = vmul.f32 %v521_v55, %v1265_v61 }
 0x146   : > { %699 = vmatmul.bf16.vlgmr.msra.gmra.mxu3 %v607_v49  ;;  %v584_v56 = vmul.f32 %v1062_v17, %v572_v53 }
 0x147   : > { %v526_v58 = vsub.f32 1.5, %v525_v54  ;;  %v586_v2 = vmul.f32 %v1062_v17, %v574_v62 }
 0x148   : > { %v596_v59 = vadd.f32 %v1063_v24, %v584_v56 }
 0x149   : > { %v527_v63 = vmul.f32 %v1082_v33, %v526_v58  ;;  %v598_v4 = vadd.f32 %v1063_v24, %v586_v2 }
 0x14a   : > { %v604_v45 = vpack.c.bf16 %v597_v60, %v596_v59 }
 0x14b   : > { %v531_v57 = vsel %vm530_vm8, %v1082_v33, %v527_v63 }
 0x14c   : > { %684 = vmatmul.bf16.vlgmr.msra.gmra.mxu0 %v604_v45  ;;  %v575_v0 = vmul.f32 %v531_v57, %v1272_v1 }
 0x14e   : > { %v587_v3 = vmul.f32 %v1062_v17, %v575_v0 }
 0x150   : > { %v599_v5 = vadd.f32 %v1063_v24, %v587_v3 }
 0x152   : > { %v605_v6 = vpack.c.bf16 %v599_v5, %v598_v4 }
 0x154   : > { %689 = vmatmul.bf16.vlgmr.msra.gmra.mxu1 %v605_v6 }
 0x1c7   : > { %v695_v7 = vpop.f32.mrf.mxu2 }
 0x1c8   : > { %v696_v34 = vadd.f32 %v1064_v9, %v695_v7 }
 0x1c9   : > { %v700_v8 = vpop.f32.mrf.mxu3  ;;  %v685_v61 = vpop.f32.mrf.mxu0 }
 0x1ca   : > { %v701_v1 = vadd.f32 %v1064_v9, %v700_v8  ;;  %v686_v16 = vadd.f32 %v1064_v9, %v685_v61 }
 0x1cf   : > { %v697_v10 = vpop.f32.mrf.mxu2 }
 0x1d0   : > { %v698_v12 = vadd.f32 %v1064_v9, %v697_v10 }
 0x1d1   : > { %v702_v11 = vpop.f32.mrf.mxu3  ;;  %v687_v14 = vpop.f32.mrf.mxu0 }
 0x1d2   : > { %v703_v13 = vadd.f32 %v1064_v9, %v702_v11  ;;  %v690_v15 = vpop.f32.mrf.mxu1  ;;  %v688_v17 = vadd.f32 %v1064_v9, %v687_v14  ;;  %v984_v18 = vpack.c.bf16 %v698_v12, %v696_v34 }
 0x1d3   : > { %v691_v22 = vadd.f32 %v1064_v9, %v690_v15 }
 0x1d4   : > { %v989_v19 = vpack.c.bf16 %v703_v13, %v701_v1  ;;  %v974_v20 = vpack.c.bf16 %v688_v17, %v686_v16  ;;  %995 = vst [vmem:[%s382_s16 + $0x10] sm:$0xff] %v984_v18  }
 0x1d6   : > { %996 = vst [vmem:[%s382_s16 + $0x18] sm:$0xff] %v989_v19  }
 0x1d7   : > { %975 = vst [vmem:[%s382_s16] sm:$0xff] %v974_v20  }
 0x1da   : > { %v692_v21 = vpop.f32.mrf.mxu1 }
 0x1db   : > { %v693_v41 = vadd.f32 %v1064_v9, %v692_v21  ;;  %727 = sbr.rel (!%p1189_p6) target bundleno = 489 (0x1e9), region = 85  ;;  %v757_v24 = vld [vmem:[%s382_s16 + $0x10] sm:$0xf] (%p1189_p6)  ;;  %v759_v29 = vld [vmem:[%s382_s16 + $0x14] sm:$0xf] (%p1189_p6) }
 0x1dc   : > { %758 = vst [vmem:[%s732_s25 + $0x30] sm:$0xf] (%p1189_p6), %v757_v24 }
 0x1dd   : > { %v979_v23 = vpack.c.bf16 %v693_v41, %v691_v22  ;;  %v761_v30 = vld [vmem:[%s382_s16 + $0x18] sm:$0xf] (%p1189_p6)  ;;  %v763_v25 = vld [vmem:[%s382_s16 + $0x1c] sm:$0xf] (%p1189_p6)  ;;  %760 = vst [vmem:[%s732_s25 + $0x3c] sm:$0xf] (%p1189_p6), %v759_v29 }
 0x1de   : > { %v749_v26 = vld [vmem:[%s382_s16] sm:$0xf] (%p1189_p6)  ;;  %v751_v40 = vld [vmem:[%s382_s16 + $0x4] sm:$0xf] (%p1189_p6)  ;;  %762 = vst [vmem:[%s732_s25 + $0x48] sm:$0xf] (%p1189_p6), %v761_v30 }
 0x1df   : > { %994 = vst [vmem:[%s382_s16 + $0x8] sm:$0xff] %v979_v23  }
 0x1e0   : > { %750 = vst [vmem:[%s732_s25] sm:$0xf] %v749_v26 }
 0x1e1   : > { %752 = vst [vmem:[%s732_s25 + $0xc] sm:$0xf] %v751_v40 }
 0x1e2   : > { %764 = vst [vmem:[%s732_s25 + $0x54] sm:$0xf] %v763_v25 }
 0x1e6   : > { %v753_v27 = vld [vmem:[%s382_s16 + $0x8] sm:$0xf]  ;;  %v755_v28 = vld [vmem:[%s382_s16 + $0xc] sm:$0xf] }
 0x1e7   : > { %754 = vst [vmem:[%s732_s25 + $0x18] sm:$0xf] %v753_v27 }
 0x1e8   : > { %756 = vst [vmem:[%s732_s25 + $0x24] sm:$0xf] %v755_v28 }
 0x1e9 PF: > { %s15_s22 = sadd.s32 1, %s1121_s22   ;;  %s1433_s18 = smov %s1109_s19 }
 0x1ea   : > { %p12_p12 = scmp.ge.s32.totalorder %s15_s22, 5   ;;  %s1434_s19 = smov %s1194_s28 }
 0x1eb   : > { %s1435_s20 = smov %s1117_s21  ;;  %s1436_s21 = smov %s1438_s23 }
 0x1ec   :  { %14 = sbr.rel (!%p12_p12) target bundleno = 3 (0x3), region = 163 }

// kernel: vision_transformer_forward.16
= control target key start
LH: loop header
LB: loop body
LE: loop exit
PB: predicated region body
PF: predicated region fallthrough
CT: control target
= control target key end

     0   :  { %s1315_s6 = smov 0   ;;  %s1775_s0 = inlined_call_operand.vmem [shape: bf16[2,32,384], index: 0, kind: input, shape index: {}]   ;;  %s1776_s1 = inlined_call_operand.vmem [shape: bf16[2,32,128], index: 1, kind: output, shape index: {}]  }
   0x1 LB: > { %s1111_s7 = sadd.s32 4294967295, %s1300_s6   ;;  %p1115_p0 = scmp.ge.s32.totalorder %s1300_s6, 1  ;;  %s1300_s6 = sphi %s1315_s6, %s11_s6  }
   0x2   : > { %p87_p1 = scmp.lt.s32.totalorder %s1300_s6, 3 }
   0x4   : > { %p88_p2 = pnand %p1115_p0, %p87_p1 }
   0x5   : > { %p107_p3 = scmp.lt.s32.totalorder (!%p88_p2), %s1111_s7, 1  ;;  %s1302_s12 = smov (!%p88_p2), 96  }
   0x6   : > { %91 = sbr.rel (%p88_p2) target bundleno = 962 (0x3c2), region = 24  ;;  %s1303_s13 = smov (!%p88_p2), 64  }
   0x7   : > { %s1304_s14 = smov (!%p88_p2), 32  }
   0xb   : > { %s1786_s7 = smov (!%p107_p3, %s1111_s7), 1  ;;  %vm153_vm0 = vcmask 261120   ;;  %v118_v53 = vlaneseq }
   0xc   : > { %s1218_s8 = smul.u32 48, %s1786_s7  ;;  %s1201_s15 = sshll.u32 %s1786_s7, 4 }
   0xd   : > { %v1364_v54 = vand.u32 127, %v118_v53  ;;  %s1620_s18 = scalar_lea.vmem %s1776_s1, %s1201_s15 }
   0xe   : > { %s1329_s11 = scalar_lea.vmem %s1775_s0, %s1218_s8 }
   0xf   : > { %v1145_v0 = vld [vmem:[%s1329_s11 + $0x1c] sm:$0xf]  ;;  %v1207_v1 = vld [vmem:[%s1329_s11 + $0x24] sm:$0xf0]  ;;  %v1141_v5 = vld [vmem:[%s1329_s11 + $0x4] sm:$0xf] }
  0x10   : > { %v1125_v2 = vld [vmem:[%s1329_s11 + $0x1c] sm:$0xf]  ;;  %v1146_v3 = vor.u32 %v1207_v1, %v1145_v0  ;;  %v1203_v4 = vld [vmem:[%s1329_s11 + $0x24] sm:$0xf0]  ;;  %v1206_v6 = vld [vmem:[%s1329_s11 + $0xc] sm:$0xf0] }
  0x11   : > { %v1126_v7 = vor.u32 %v1203_v4, %v1125_v2  ;;  %v1142_v8 = vor.u32 %v1206_v6, %v1141_v5  ;;  %v1121_v9 = vld [vmem:[%s1329_s11 + $0x4] sm:$0xf]  ;;  %v1202_v10 = vld [vmem:[%s1329_s11 + $0xc] sm:$0xf0]  ;;  %v121_v11 = vld [vmem:[%s1329_s11] sm:$0xf] }
  0x12   : > { %373 = vrot.lane.b32.xlu0 %v1146_v3, %s1302_s12  ;;  %v333_v13 = vld [vmem:[%s1329_s11] sm:$0xf]  ;;  %v334_v14 = vld [vmem:[%s1329_s11 + $0xc] sm:$0xf]  ;;  %v335_v18 = vld [vmem:[%s1329_s11 + $0x18] sm:$0xf]  ;;  %v1122_v20 = vor.u32 %v1202_v10, %v1121_v9  ;;  %v125_v27 = vunpack.c.l.bf16 %v121_v11 }
  0x13   : > { %v164_v12 = vsel %vm153_vm0, %v1126_v7, 0  ;;  %371 = vrot.lane.b32.xlu1 %v1142_v8, %s1302_s12  ;;  %v122_v15 = vld [vmem:[%s1329_s11 + $0xc] sm:$0xf]  ;;  %v337_v16 = vunpack.c.l.bf16 %v333_v13  ;;  %v338_v17 = vunpack.c.l.bf16 %v334_v14  ;;  %v336_v19 = vld [vmem:[%s1329_s11 + $0x24] sm:$0xf]  ;;  %v339_v24 = vunpack.c.l.bf16 %v335_v18 }
  0x14   : > { %172 = vmatpush.bf16.xpose.msra.mxu0 %v164_v12  ;;  %v1165_v21 = vld [vmem:[%s1329_s11 + $0x1c] sm:$0xf]  ;;  %v340_v25 = vunpack.c.l.bf16 %v336_v19  ;;  %v1211_v26 = vld [vmem:[%s1329_s11 + $0x24] sm:$0xf0]  ;;  %v126_v28 = vunpack.c.l.bf16 %v122_v15  ;;  %v161_v31 = vsel %vm153_vm0, %v1122_v20, 0  ;;  %v129_v34 = vmul.f32 0.17675781, %v125_v27 }
  0x15   : > { %v341_v22 = vmul.f32 0.17675781, %v337_v16  ;;  %v342_v23 = vmul.f32 0.17675781, %v338_v17  ;;  %v1166_v29 = vor.u32 %v1211_v26, %v1165_v21  ;;  %v343_v32 = vmul.f32 0.17675781, %v339_v24  ;;  %v123_v38 = vld [vmem:[%s1329_s11 + $0x18] sm:$0xf] }
  0x16   : > { %v344_v33 = vmul.f32 0.17675781, %v340_v25  ;;  %v130_v35 = vmul.f32 0.17675781, %v126_v28  ;;  %v124_v39 = vld [vmem:[%s1329_s11 + $0x24] sm:$0xf]  ;;  %v127_v40 = vunpack.c.l.bf16 %v123_v38  ;;  %v1210_v46 = vld [vmem:[%s1329_s11 + $0xc] sm:$0xf0] }
  0x17   : > { %v345_v30 = vpack.c.bf16 %v342_v23, %v341_v22  ;;  %v128_v41 = vunpack.c.l.bf16 %v124_v39  ;;  %v1161_v45 = vld [vmem:[%s1329_s11 + $0x4] sm:$0xf]  ;;  %vm120_vm1 = vcmp.lt.s32.totalorder %v1364_v54, 17  ;;  %v1185_v63 = vld [vmem:[%s1329_s11 + $0x1c] sm:$0xf] }
  0x18   : > { %v346_v36 = vpack.c.bf16 %v344_v33, %v343_v32  ;;  %v133_v37 = vpack.c.bf16 %v130_v35, %v129_v34  ;;  %v131_v42 = vmul.f32 0.17675781, %v127_v40  ;;  %v1162_v47 = vor.u32 %v1210_v46, %v1161_v45  ;;  %v1215_v0 = vld [vmem:[%s1329_s11 + $0x24] sm:$0xf0]  ;;  %v574_v3 = vld [vmem:[%s1329_s11] sm:$0xf] }
  0x19   : > { %357 = vrot.lane.b32.xlu2 %v345_v30, %s1302_s12  ;;  %v132_v43 = vmul.f32 0.17675781, %v128_v41  ;;  %v575_v4 = vld [vmem:[%s1329_s11 + $0xc] sm:$0xf]  ;;  %v1186_v5 = vor.u32 %v1215_v0, %v1185_v63  ;;  %v578_v6 = vunpack.c.l.bf16 %v574_v3  ;;  %v1135_v8 = vld [vmem:[%s1329_s11 + $0x20] sm:$0xf] }
  0x1a   : > { %614 = vrot.lane.b32.xlu0 %v1166_v29, %s1303_s13  ;;  %v579_v7 = vunpack.c.l.bf16 %v575_v4  ;;  %v1205_v9 = vld [vmem:[%s1329_s11 + $0x28] sm:$0xf0]  ;;  %v1131_v10 = vld [vmem:[%s1329_s11 + $0x8] sm:$0xf]  ;;  %v1204_v11 = vld [vmem:[%s1329_s11 + $0x10] sm:$0xf0] }
  0x1b   : > { %v134_v44 = vpack.c.bf16 %v132_v43, %v131_v42  ;;  %v582_v12 = vmul.f32 0.17675781, %v578_v6  ;;  %v1136_v14 = vor.u32 %v1205_v9, %v1135_v8  ;;  %v576_v16 = vld [vmem:[%s1329_s11 + $0x18] sm:$0xf]  ;;  %v577_v17 = vld [vmem:[%s1329_s11 + $0x24] sm:$0xf]  ;;  %v1132_v20 = vor.u32 %v1204_v11, %v1131_v10 }
  0x1c   : > { %173 = vmatpush.bf16.xpose.msra.mxu0 %v161_v31  ;;  %v583_v13 = vmul.f32 0.17675781, %v579_v7  ;;  %v580_v23 = vunpack.c.l.bf16 %v576_v16  ;;  %v581_v24 = vunpack.c.l.bf16 %v577_v17  ;;  %v815_v26 = vld [vmem:[%s1329_s11] sm:$0xf]  ;;  %v816_v27 = vld [vmem:[%s1329_s11 + $0xc] sm:$0xf] }
  0x1d   : > { %251 = vmatpush.bf16.msra.mxu1 %v1136_v14  ;;  %v819_v30 = vunpack.c.l.bf16 %v815_v26  ;;  %v820_v31 = vunpack.c.l.bf16 %v816_v27  ;;  %v1181_v38 = vld [vmem:[%s1329_s11 + $0x4] sm:$0xf]  ;;  %v1214_v39 = vld [vmem:[%s1329_s11 + $0xc] sm:$0xf0]  ;;  %v1155_v41 = vld [vmem:[%s1329_s11 + $0x20] sm:$0xf] }
  0x1e   : > { %v586_v22 = vpack.c.bf16 %v583_v13, %v582_v12  ;;  %v584_v28 = vmul.f32 0.17675781, %v580_v23  ;;  %v585_v29 = vmul.f32 0.17675781, %v581_v24  ;;  %v1182_v40 = vor.u32 %v1214_v39, %v1181_v38  ;;  %v1209_v42 = vld [vmem:[%s1329_s11 + $0x28] sm:$0xf0]  ;;  %v1208_v45 = vld [vmem:[%s1329_s11 + $0x10] sm:$0xf0] }
  0x1f   : > { %v823_v33 = vmul.f32 0.17675781, %v819_v30  ;;  %v824_v34 = vmul.f32 0.17675781, %v820_v31  ;;  %v1156_v43 = vor.u32 %v1209_v42, %v1155_v41  ;;  %v818_v53 = vld [vmem:[%s1329_s11 + $0x24] sm:$0xf]  ;;  %v1175_v26 = vld [vmem:[%s1329_s11 + $0x20] sm:$0xf] }
  0x20   : > { %v587_v32 = vpack.c.bf16 %v585_v29, %v584_v28  ;;  %v1213_v27 = vld [vmem:[%s1329_s11 + $0x28] sm:$0xf0]  ;;  %v1195_v29 = vld [vmem:[%s1329_s11 + $0x20] sm:$0xf] }
  0x21   : > { %359 = vrot.lane.b32.xlu2 %v346_v36, %s1302_s12  ;;  %252 = vmatpush.bf16.msra.mxu1 %v1132_v20  ;;  %v1176_v28 = vor.u32 %v1213_v27, %v1175_v26  ;;  %v1217_v30 = vld [vmem:[%s1329_s11 + $0x28] sm:$0xf0] }
  0x22   : > { %v1196_v31 = vor.u32 %v1217_v30, %v1195_v29 }
  0x23   : > { %1127 = vmatmul.msk.bf16.vlgmr.msra.gmra.mxu0 %vm153_vm0, %v133_v37  ;;  %v827_v37 = vpack.c.bf16 %v824_v34, %v823_v33 }
  0x29   : > { %612 = vrot.lane.b32.xlu2 %v1162_v47, %s1303_s13 }
  0x33   : > { %1128 = vmatmul.msk.bf16.gmra.mxu0 %vm153_vm0, %v134_v44  ;;  %v1151_v44 = vld [vmem:[%s1329_s11 + $0x8] sm:$0xf] }
  0x34   : > { %v1152_v46 = vor.u32 %v1208_v45, %v1151_v44 }
  0x73   : > { %v358_v52 = vpop.permute.xlu2 %357 }
  0x7b   : > { %v360_v58 = vpop.permute.xlu2 %359 }
  0x83   : > { %v613_v35 = vpop.permute.xlu2 %612 }
  0x84   : > { %v374_v48 = vpop.permute.xlu0 %373  ;;  %v623_v36 = vsel %vm153_vm0, %v613_v35, 0 }
  0x85   : > { %v385_v49 = vsel %vm153_vm0, %v374_v48, 0  ;;  %v372_v50 = vpop.permute.xlu1 %371 }
  0x86   : > { %393 = vmatpush.bf16.xpose.msra.mxu2 %v385_v49  ;;  %v382_v51 = vsel %vm153_vm0, %v372_v50, 0 }
  0x8c   : > { %v615_v18 = vpop.permute.xlu0 %614 }
  0x8d   : > { %v626_v25 = vsel %vm153_vm0, %v615_v18, 0 }
  0x8e   : > { %394 = vmatpush.bf16.xpose.msra.mxu2 %v382_v51  ;;  %634 = vmatpush.bf16.xpose.msrb.mxu1 %v626_v25 }
  0x95   : > { %1147 = vmatmul.msk.bf16.vlgmr.msra.gmra.mxu2 %vm153_vm0, %v358_v52  ;;  %v817_v52 = vld [vmem:[%s1329_s11 + $0x18] sm:$0xf] }
  0x96   : > { %635 = vmatpush.bf16.xpose.msrb.mxu1 %v623_v36 }
  0xa0   : > { %v175_v55 = vpop.f32.mrf.mxu0 }
  0xa1   : > { %v1369_v56 = vsel %vm120_vm1, %v175_v55, -1e+30  ;;  %v821_v55 = vunpack.c.l.bf16 %v817_v52 }
  0xa2   : > { %v189_v57 = vsel %vm153_vm0, %v1369_v56, -inf }
  0xa3   : > { %190 = vmax.xlane.f32.xlu0 %v189_v57  ;;  %v822_v57 = vunpack.c.l.bf16 %v818_v53 }
  0xa5   : > { %1148 = vmatmul.msk.bf16.gmra.mxu2 %vm153_vm0, %v360_v58 }
  0xa8   : > { %v177_v59 = vpop.f32.mrf.mxu0 }
  0xa9   : > { %v1376_v60 = vsel %vm120_vm1, %v177_v59, -1e+30 }
  0xaa   : > { %v192_v61 = vsel %vm153_vm0, %v1376_v60, -inf }
  0xab   : > { %193 = vmax.xlane.f32.xlu1 %v192_v61  ;;  %v825_v61 = vmul.f32 0.17675781, %v821_v55 }
  0xb0   : > { %v180_v62 = vpop.f32.mrf.mxu0 }
  0xb1   : > { %v1384_v1 = vsel %vm120_vm1, %v180_v62, -1e+30  ;;  %v826_v62 = vmul.f32 0.17675781, %v822_v57 }
  0xb2   : > { %v195_v2 = vsel %vm153_vm0, %v1384_v1, -inf }
  0xb3   : > { %196 = vmax.xlane.f32.xlu2 %v195_v2  ;;  %v828_v2 = vpack.c.bf16 %v826_v62, %v825_v61 }
  0xb7   : > { %855 = vrot.lane.b32.xlu0 %v1186_v5, %s1304_s14 }
  0xb8   : > { %v182_v15 = vpop.f32.mrf.mxu0 }
  0xb9   : > { %v1399_v19 = vsel %vm120_vm1, %v182_v15, -1e+30 }
  0xba   : > { %v198_v21 = vsel %vm153_vm0, %v1399_v19, -inf }
  0xbb   : > { %199 = vmax.xlane.f32.xlu1 %v198_v21 }
  0xbf   : > { %598 = vrot.lane.b32.xlu0 %v586_v22, %s1303_s13 }
  0xc7   : > { %600 = vrot.lane.b32.xlu0 %v587_v32, %s1303_s13 }
  0xcb   : > { %839 = vrot.lane.b32.xlu2 %v827_v37, %s1304_s14 }
  0xd3   : > { %841 = vrot.lane.b32.xlu2 %v828_v2, %s1304_s14  ;;  %v1191_v2 = vld [vmem:[%s1329_s11 + $0x8] sm:$0xf] }
  0xd4   : > { %853 = vrot.lane.b32.xlu1 %v1182_v40, %s1304_s14 }
  0xdb   : > { %701 = vrot.lane.b32.xlu2 %v1176_v28, %s1303_s13 }
  0xdc   : > { %460 = vrot.lane.b32.xlu1 %v1156_v43, %s1302_s12 }
  0xe4   : > { %458 = vrot.lane.b32.xlu1 %v1152_v46, %s1302_s12 }
 0x116   : > { %v191_v47 = vpop.xlane.xlu0 %190 }
 0x117   : > { %v201_v50 = vsub.f32 %v1369_v56, %v191_v47 }
 0x118   : > { %v396_v48 = vpop.f32.mrf.mxu2 }
 0x119   : > { %v1421_v49 = vsel %vm120_vm1, %v396_v48, -1e+30  ;;  %v205_v58 = vmul.f32 1.442695, %v201_v50 }
 0x11a   : > { %v410_v51 = vsel %vm153_vm0, %v1421_v49, -inf }
 0x11b   : > { %411 = vmax.xlane.f32.xlu0 %v410_v51  ;;  %1230 = vpow2.f32 %v205_v58 }
 0x11e   : > { %v194_v59 = vpop.xlane.xlu1 %193 }
 0x11f   : > { %v202_v63 = vsub.f32 %v1376_v60, %v194_v59 }
 0x120   : > { %v398_v0 = vpop.f32.mrf.mxu2 }
 0x121   : > { %v207_v3 = vmul.f32 1.442695, %v202_v63  ;;  %v1430_v4 = vpop.eup %1230  ;;  %v1480_v41 = vsel %vm120_vm1, %v398_v0, -1e+30 }
 0x122   : > { %v413_v44 = vsel %vm153_vm0, %v1480_v41, -inf }
 0x123   : > { %1232 = vpow2.f32 %v207_v3  ;;  %v1216_v3 = vld [vmem:[%s1329_s11 + $0x10] sm:$0xf0] }
 0x126   : > { %v197_v56 = vpop.xlane.xlu2 %196 }
 0x127   : > { %v203_v60 = vsub.f32 %v1384_v1, %v197_v56  ;;  %v1192_v56 = vor.u32 %v1216_v3, %v1191_v2 }
 0x128   : > { %v401_v5 = vpop.f32.mrf.mxu2 }
 0x129   : > { %v1432_v6 = vpop.eup %1232  ;;  %v1436_v7 = vsel %vm120_vm1, %v401_v5, -1e+30  ;;  %v856_v8 = vpop.permute.xlu0 %855  ;;  %v209_v12 = vmul.f32 1.442695, %v203_v60  ;;  %v1171_v5 = vld [vmem:[%s1329_s11 + $0x8] sm:$0xf] }
 0x12a   : > { %v225_v9 = vpack.c.bf16 %v1432_v6, %v1430_v4  ;;  %v416_v10 = vsel %vm153_vm0, %v1436_v7, -inf  ;;  %v867_v11 = vsel %vm153_vm0, %v856_v8, 0  ;;  %v1212_v8 = vld [vmem:[%s1329_s11 + $0x10] sm:$0xf0] }
 0x12b   : > { %417 = vmax.xlane.f32.xlu1 %v416_v10  ;;  %875 = vmatpush.bf16.xpose.msrb.mxu0 %v867_v11  ;;  %1234 = vpow2.f32 %v209_v12  ;;  %v1172_v60 = vor.u32 %v1212_v8, %v1171_v5 }
 0x12c   : > { %1137 = vmatmul.msk.bf16.vlgmr.msra.gmra.mxu1 %vm153_vm0, %v225_v9 }
 0x12e   : > { %v200_v13 = vpop.xlane.xlu1 %199 }
 0x12f   : > { %v204_v14 = vsub.f32 %v1399_v19, %v200_v13  ;;  %v840_v19 = vpop.permute.xlu2 %839 }
 0x130   : > { %v403_v47 = vpop.f32.mrf.mxu2 }
 0x131   : > { %v211_v15 = vmul.f32 1.442695, %v204_v14  ;;  %v1446_v1 = vpop.eup %1234  ;;  %v599_v21 = vpop.permute.xlu0 %598  ;;  %v1497_v52 = vsel %vm120_vm1, %v403_v47, -1e+30 }
 0x132   : > { %v419_v57 = vsel %vm153_vm0, %v1497_v52, -inf }
 0x133   : > { %1236 = vpow2.f32 %v211_v15 }
 0x137   : > { %v842_v25 = vpop.permute.xlu2 %841 }
 0x139   : > { %v1448_v16 = vpop.eup %1236  ;;  %v601_v22 = vpop.permute.xlu0 %600 }
 0x13a   : > { %v226_v17 = vpack.c.bf16 %v1448_v16, %v1446_v1 }
 0x13c   : > { %1138 = vmatmul.msk.bf16.gmra.mxu1 %vm153_vm0, %v226_v17 }
 0x13f   : > { %v702_v9 = vpop.permute.xlu2 %701 }
 0x144   : > { %942 = vrot.lane.b32.xlu1 %v1196_v31, %s1304_s14 }
 0x146   : > { %v854_v18 = vpop.permute.xlu1 %853 }
 0x147   : > { %v864_v20 = vsel %vm153_vm0, %v854_v18, 0 }
 0x148   : > { %876 = vmatpush.bf16.xpose.msrb.mxu0 %v864_v20 }
 0x14c   : > { %1167 = vmatmul.msk.bf16.vlgmr.msrb.gmra.mxu1 %vm153_vm0, %v599_v21 }
 0x14e   : > { %v461_v23 = vpop.permute.xlu1 %460 }
 0x14f   : > { %1187 = vmatmul.msk.bf16.vlgmr.msrb.gmra.mxu0 %vm153_vm0, %v840_v19  ;;  %476 = vmatpush.bf16.msra.mxu3 %v461_v23 }
 0x156   : > { %v459_v24 = vpop.permute.xlu1 %458 }
 0x157   : > { %477 = vmatpush.bf16.msra.mxu3 %v459_v24 }
 0x15b   : > { %717 = vmatpush.bf16.msrb.mxu3 %v702_v9 }
 0x15c   : > { %1168 = vmatmul.msk.bf16.gmra.mxu1 %vm153_vm0, %v601_v22 }
 0x15f   : > { %1188 = vmatmul.msk.bf16.gmra.mxu0 %vm153_vm0, %v842_v25 }
 0x18e   : > { %v412_v46 = vpop.xlane.xlu0 %411 }
 0x18f   : > { %v422_v51 = vsub.f32 %v1421_v49, %v412_v46 }
 0x191   : > { %v426_v55 = vmul.f32 1.442695, %v422_v51 }
 0x193   : > { %1238 = vpow2.f32 %v426_v55 }
 0x199   : > { %v1239_v63 = vpop.eup %1238 }
 0x19a   : > { %v434_v0 = vsel %vm153_vm0, %v1239_v63, 0.0 }
 0x19e   : > { %v418_v14 = vpop.xlane.xlu1 %417 }
 0x19f   : > { %v424_v17 = vsub.f32 %v1436_v7, %v418_v14 }
 0x1a1   : > { %v430_v20 = vmul.f32 1.442695, %v424_v17 }
 0x1a3   : > { %1240 = vpow2.f32 %v430_v20 }
 0x1a9   : > { %v1464_v32 = vpop.f32.mrf.mxu1  ;;  %v1241_v23 = vpop.eup %1240 }
 0x1aa   : > { %v440_v24 = vsel %vm153_vm0, %v1241_v23, 0.0 }
 0x1b1   : > { %v1466_v33 = vpop.f32.mrf.mxu1 }
 0x1b6   : > { %v943_v22 = vpop.permute.xlu1 %942 }
 0x1b7   : > { %958 = vmatpush.bf16.msrb.mxu2 %v943_v22 }
 0x1b9   : > { %v1468_v34 = vpop.f32.mrf.mxu1 }
 0x1c1   : > { %v1470_v35 = vpop.f32.mrf.mxu1 }
 0x1c9   : > { %v637_v36 = vpop.f32.mrf.mxu1 }
 0x1ca   : > { %v1492_v48 = vsel %vm120_vm1, %v637_v36, -1e+30 }
 0x1cb   : > { %v651_v53 = vsel %vm153_vm0, %v1492_v48, -inf }
 0x1cc   : > { %v878_v37 = vpop.f32.mrf.mxu0 }
 0x1cd   : > { %v1474_v38 = vsel %vm120_vm1, %v878_v37, -1e+30 }
 0x1ce   : > { %v892_v39 = vsel %vm153_vm0, %v1474_v38, -inf }
 0x1cf   : > { %893 = vmax.xlane.f32.xlu2 %v892_v39 }
 0x1d1   : > { %v639_v40 = vpop.f32.mrf.mxu1 }
 0x1d2   : > { %v1509_v59 = vsel %vm120_vm1, %v639_v40, -1e+30 }
 0x1d3   : > { %v654_v62 = vsel %vm153_vm0, %v1509_v59, -inf }
 0x1d4   : > { %v880_v42 = vpop.f32.mrf.mxu0 }
 0x1d5   : > { %v1484_v43 = vsel %vm120_vm1, %v880_v42, -1e+30 }
 0x1d6   : > { %v895_v45 = vsel %vm153_vm0, %v1484_v43, -inf }
 0x1d7   : > { %414 = vmax.xlane.f32.xlu2 %v413_v44  ;;  %896 = vmax.xlane.f32.xlu0 %v895_v45 }
 0x1d9   : > { %v642_v50 = vpop.f32.mrf.mxu1 }
 0x1da   : > { %v1530_v13 = vsel %vm120_vm1, %v642_v50, -1e+30 }
 0x1db   : > { %v657_v15 = vsel %vm153_vm0, %v1530_v13, -inf }
 0x1dc   : > { %v883_v10 = vpop.f32.mrf.mxu0 }
 0x1dd   : > { %v1524_v11 = vsel %vm120_vm1, %v883_v10, -1e+30 }
 0x1de   : > { %v898_v12 = vsel %vm153_vm0, %v1524_v11, -inf }
 0x1df   : > { %652 = vmax.xlane.f32.xlu2 %v651_v53  ;;  %420 = vmax.xlane.f32.xlu0 %v419_v57 }
 0x1e1   : > { %v644_v58 = vpop.f32.mrf.mxu1 }
 0x1e2   : > { %v1505_v49 = vsel %vm120_vm1, %v644_v58, -1e+30 }
 0x1e3   : > { %v660_v61 = vsel %vm153_vm0, %v1505_v49, -inf }
 0x1e4   : > { %661 = vmax.xlane.f32.xlu1 %v660_v61  ;;  %v885_v18 = vpop.f32.mrf.mxu0 }
 0x1e5   : > { %v1537_v21 = vsel %vm120_vm1, %v885_v18, -1e+30 }
 0x1e6   : > { %v901_v19 = vsel %vm153_vm0, %v1537_v21, -inf }
 0x1e7   : > { %655 = vmax.xlane.f32.xlu0 %v654_v62 }
 0x1ec   : > { %435 = vadd.xlane.f32.xlu1 %v434_v0  ;;  %v213_v0 = vsel %vm153_vm0, %v1430_v4, 0.0 }
 0x1f7   : > { %940 = vrot.lane.b32.xlu2 %v1192_v56, %s1304_s14 }
 0x1fb   : > { %699 = vrot.lane.b32.xlu0 %v1172_v60, %s1303_s13 }
 0x220   : > { %899 = vmax.xlane.f32.xlu2 %v898_v12 }
 0x225   : > { %658 = vmax.xlane.f32.xlu0 %v657_v15 }
 0x22d   : > { %902 = vmax.xlane.f32.xlu0 %v901_v19 }
 0x235   : > { %441 = vadd.xlane.f32.xlu0 %v440_v24  ;;  %v222_v24 = vsel %vm153_vm0, %v1448_v16, 0.0 }
 0x242   : > { %v894_v25 = vpop.xlane.xlu2 %893 }
 0x243   : > { %v904_v7 = vsub.f32 %v1474_v38, %v894_v25 }
 0x245   : > { %v908_v26 = vmul.f32 1.442695, %v904_v7 }
 0x247   : > { %1242 = vpow2.f32 %v908_v26  ;;  %v219_v26 = vsel %vm153_vm0, %v1446_v1, 0.0 }
 0x24a   : > { %v415_v27 = vpop.xlane.xlu2 %414  ;;  %v897_v54 = vpop.xlane.xlu0 %896 }
 0x24b   : > { %v423_v28 = vsub.f32 %v1480_v41, %v415_v27  ;;  %v905_v29 = vsub.f32 %v1484_v43, %v897_v54 }
 0x24d   : > { %v1243_v30 = vpop.eup %1242  ;;  %v428_v31 = vmul.f32 1.442695, %v423_v28  ;;  %v910_v37 = vmul.f32 1.442695, %v905_v29 }
 0x24e   : > { %v916_v36 = vsel %vm153_vm0, %v1243_v30, 0.0 }
 0x24f   : > { %1244 = vpow2.f32 %v428_v31  ;;  %917 = vadd.xlane.f32.xlu0 %v916_v36 }
 0x250   : > { %1246 = vpow2.f32 %v910_v37 }
 0x252   : > { %v653_v39 = vpop.xlane.xlu2 %652  ;;  %v421_v40 = vpop.xlane.xlu0 %420 }
 0x253   : > { %v425_v38 = vsub.f32 %v1497_v52, %v421_v40  ;;  %v663_v57 = vsub.f32 %v1492_v48, %v653_v39 }
 0x255   : > { %v1245_v42 = vpop.eup %1244  ;;  %v432_v44 = vmul.f32 1.442695, %v425_v38  ;;  %v667_v62 = vmul.f32 1.442695, %v663_v57 }
 0x256   : > { %v437_v45 = vsel %vm153_vm0, %v1245_v42, 0.0  ;;  %v446_v46 = vpack.c.bf16 %v1245_v42, %v1239_v63  ;;  %v1247_v41 = vpop.eup %1246 }
 0x257   : > { %438 = vadd.xlane.f32.xlu2 %v437_v45  ;;  %1248 = vpow2.f32 %v432_v44  ;;  %v928_v47 = vpack.c.bf16 %v1247_v41, %v1243_v30  ;;  %v919_v58 = vsel %vm153_vm0, %v1247_v41, 0.0  ;;  %v662_v48 = vpop.xlane.xlu1 %661 }
 0x258   : > { %1157 = vmatmul.msk.bf16.vlgmr.msra.gmra.mxu3 %vm153_vm0, %v446_v46  ;;  %v666_v5 = vsub.f32 %v1505_v49, %v662_v48 }
 0x25a   : > { %v941_v43 = vpop.permute.xlu2 %940  ;;  %v656_v52 = vpop.xlane.xlu0 %655  ;;  %v673_v9 = vmul.f32 1.442695, %v666_v5 }
 0x25b   : > { %959 = vmatpush.bf16.msrb.mxu2 %v941_v43  ;;  %v664_v53 = vsub.f32 %v1509_v59, %v656_v52 }
 0x25d   : > { %v1249_v50 = vpop.eup %1248  ;;  %v669_v61 = vmul.f32 1.442695, %v664_v53 }
 0x25e   : > { %1197 = vmatmul.msk.bf16.vlgmr.msrb.gmra.mxu2 %vm153_vm0, %v928_v47  ;;  %v443_v51 = vsel %vm153_vm0, %v1249_v50, 0.0  ;;  %v447_v55 = vpack.c.bf16 %v1249_v50, %v1241_v23 }
 0x25f   : > { %444 = vadd.xlane.f32.xlu1 %v443_v51  ;;  %1250 = vpow2.f32 %v669_v61  ;;  %v436_v27 = vpop.xlane.xlu1 %435 }
 0x260   : > { %1252 = vpow2.f32 %v667_v62  ;;  %v500_v44 = vand.u32 2147483648, %v436_v27  ;;  %vm494_vm3 = vweird.f32 %v436_v27  ;;  %v498_v45 = vand.u32 2147483647, %v436_v27 }
 0x262   : > { %v501_v47 = vor.u32 1.1754944e-38, %v500_v44  ;;  %vm499_vm5 = vcmp.eq.f32.partialorder %v498_v45, 8.507059e+37 }
 0x265   : > { %v1251_v2 = vpop.eup %1250 }
 0x266   : > { %v1253_v59 = vpop.eup %1252  ;;  %v678_v16 = vsel %vm153_vm0, %v1251_v2, 0.0 }
 0x267   : > { %920 = vadd.xlane.f32.xlu1 %v919_v58  ;;  %v687_v3 = vpack.c.bf16 %v1251_v2, %v1253_v59  ;;  %v675_v7 = vsel %vm153_vm0, %v1253_v59, 0.0 }
 0x268   : > { %1158 = vmatmul.msk.bf16.gmra.mxu3 %vm153_vm0, %v447_v55 }
 0x26d   : > { %v700_v63 = vpop.permute.xlu0 %699 }
 0x26e   : > { %718 = vmatpush.bf16.msrb.mxu3 %v700_v63 }
 0x26f   : > { %214 = vadd.xlane.f32.xlu1 %v213_v0 }
 0x278   : > { %1177 = vmatmul.msk.bf16.vlgmr.msrb.gmra.mxu3 %vm153_vm0, %v687_v3 }
 0x293   : > { %v900_v56 = vpop.xlane.xlu2 %899 }
 0x294   : > { %v906_v8 = vsub.f32 %v1524_v11, %v900_v56 }
 0x296   : > { %v912_v60 = vmul.f32 1.442695, %v906_v8 }
 0x298   : > { %1254 = vpow2.f32 %v912_v60  ;;  %v659_v10 = vpop.xlane.xlu0 %658 }
 0x299   : > { %v665_v12 = vsub.f32 %v1530_v13, %v659_v10  ;;  %1256 = vpow2.f32 %v673_v9  ;;  %v216_v13 = vsel %vm153_vm0, %v1432_v6, 0.0 }
 0x29b   : > { %v671_v14 = vmul.f32 1.442695, %v665_v12 }
 0x29d   : > { %1258 = vpow2.f32 %v671_v14 }
 0x29e   : > { %v1255_v4 = vpop.eup %1254 }
 0x29f   : > { %v922_v15 = vsel %vm153_vm0, %v1255_v4, 0.0  ;;  %v1257_v20 = vpop.eup %1256 }
 0x2a0   : > { %923 = vadd.xlane.f32.xlu2 %v922_v15  ;;  %v903_v17 = vpop.xlane.xlu0 %902  ;;  %v684_v6 = vsel %vm153_vm0, %v1257_v20, 0.0 }
 0x2a1   : > { %v907_v18 = vsub.f32 %v1537_v21, %v903_v17 }
 0x2a3   : > { %v1259_v49 = vpop.eup %1258  ;;  %v914_v19 = vmul.f32 1.442695, %v907_v18 }
 0x2a4   : > { %v681_v11 = vsel %vm153_vm0, %v1259_v49, 0.0  ;;  %v688_v22 = vpack.c.bf16 %v1257_v20, %v1259_v49 }
 0x2a5   : > { %1260 = vpow2.f32 %v914_v19  ;;  %682 = vadd.xlane.f32.xlu1 %v681_v11 }
 0x2a6   : > { %1178 = vmatmul.msk.bf16.gmra.mxu3 %vm153_vm0, %v688_v22  ;;  %1262 = vrcp.f32 %v436_v27 }
 0x2a8   : > { %217 = vadd.xlane.f32.xlu2 %v216_v13  ;;  %v442_v31 = vpop.xlane.xlu0 %441 }
 0x2a9   : > { %vm524_vm11 = vweird.f32 %v442_v31  ;;  %v528_v15 = vand.u32 2147483647, %v442_v31 }
 0x2ab   : > { %v1261_v23 = vpop.eup %1260  ;;  %vm529_vm13 = vcmp.eq.f32.partialorder %v528_v15, 8.507059e+37 }
 0x2ac   : > { %v925_v21 = vsel %vm153_vm0, %v1261_v23, 0.0  ;;  %v929_v25 = vpack.c.bf16 %v1261_v23, %v1255_v4  ;;  %v1263_v54 = vpop.eup %1262  ;;  %v530_v4 = vand.u32 2147483648, %v442_v31 }
 0x2ad   : > { %223 = vadd.xlane.f32.xlu1 %v222_v24  ;;  %926 = vadd.xlane.f32.xlu0 %v925_v21  ;;  %v490_v28 = vmul.f32 %v1263_v54, %v436_v27  ;;  %vm495_vm2 = vweird.f32 %v1263_v54 }
 0x2ae   : > { %1198 = vmatmul.msk.bf16.gmra.mxu2 %vm153_vm0, %v929_v25  ;;  %vm496_vm4 = vmor %vm494_vm3, %vm495_vm2  ;;  %v531_v19 = vor.u32 1.1754944e-38, %v530_v4 }
 0x2af   : > { %v491_v30 = vsub.f32 1.0, %v490_v28 }
 0x2b0   : > { %676 = vadd.xlane.f32.xlu2 %v675_v7 }
 0x2b1   : > { %v492_v36 = vmul.f32 %v1263_v54, %v491_v30 }
 0x2b3   : > { %v493_v40 = vadd.f32 %v1263_v54, %v492_v36 }
 0x2b5   : > { %220 = vadd.xlane.f32.xlu0 %v219_v26  ;;  %v497_v41 = vsel %vm496_vm4, %v1263_v54, %v493_v40 }
 0x2b6   : > { %v502_v53 = vsel %vm499_vm5, %v501_v47, %v497_v41 }
 0x2b8   : > { %685 = vadd.xlane.f32.xlu2 %v684_v6 }
 0x2bd   : > { %679 = vadd.xlane.f32.xlu0 %v678_v16 }
 0x2c2   : > { %v1579_v43 = vpop.xlane.xlu0 %917 }
 0x2c3   : > { %v980_v44 = vand.u32 2147483647, %v1579_v43 }
 0x2ca   : > { %v439_v29 = vpop.xlane.xlu2 %438 }
 0x2cb   : > { %1264 = vrcp.f32 %v439_v29  ;;  %v515_v63 = vand.u32 2147483648, %v439_v29  ;;  %vm509_vm7 = vweird.f32 %v439_v29  ;;  %v513_v0 = vand.u32 2147483647, %v439_v29 }
 0x2cc   : > { %1266 = vrcp.f32 %v442_v31 }
 0x2cd   : > { %v516_v56 = vor.u32 1.1754944e-38, %v515_v63  ;;  %vm514_vm9 = vcmp.eq.f32.partialorder %v513_v0, 8.507059e+37 }
 0x2d1   : > { %v1265_v37 = vpop.eup %1264 }
 0x2d2   : > { %v505_v39 = vmul.f32 %v1265_v37, %v439_v29  ;;  %v1576_v1 = vpop.xlane.xlu1 %444  ;;  %v1267_v38 = vpop.eup %1266  ;;  %vm510_vm6 = vweird.f32 %v1265_v37 }
 0x2d3   : > { %1268 = vrcp.f32 %v1576_v1  ;;  %v520_v46 = vmul.f32 %v1267_v38, %v442_v31  ;;  %vm511_vm8 = vmor %vm509_vm7, %vm510_vm6  ;;  %vm525_vm10 = vweird.f32 %v1267_v38  ;;  %v545_v26 = vand.u32 2147483648, %v1576_v1 }
 0x2d4   : > { %v506_v42 = vsub.f32 1.0, %v505_v39  ;;  %1270 = vrcp.f32 %v1579_v43  ;;  %vm526_vm12 = vmor %vm524_vm11, %vm525_vm10  ;;  %vm539_vm15 = vweird.f32 %v1576_v1  ;;  %v543_v16 = vand.u32 2147483647, %v1576_v1 }
 0x2d5   : > { %v521_v55 = vsub.f32 1.0, %v520_v46  ;;  %v546_v36 = vor.u32 1.1754944e-38, %v545_v26  ;;  %vm976_vm7 = vweird.f32 %v1579_v43  ;;  %vm981_vm10 = vcmp.eq.f32.partialorder %v980_v44, 8.507059e+37 }
 0x2d6   : > { %v507_v50 = vmul.f32 %v1265_v37, %v506_v42  ;;  %vm544_vm5 = vcmp.eq.f32.partialorder %v543_v16, 8.507059e+37 }
 0x2d7   : > { %v522_v59 = vmul.f32 %v1267_v38, %v521_v55 }
 0x2d8   : > { %v508_v61 = vadd.f32 %v1265_v37, %v507_v50 }
 0x2d9   : > { %v1584_v58 = vpop.eup %1268  ;;  %v523_v10 = vadd.f32 %v1267_v38, %v522_v59 }
 0x2da   : > { %v1581_v51 = vpop.xlane.xlu1 %920  ;;  %v535_v2 = vmul.f32 %v1584_v58, %v1576_v1  ;;  %v512_v3 = vsel %vm511_vm8, %v1265_v37, %v508_v61  ;;  %v1589_v48 = vpop.eup %1270  ;;  %vm540_vm14 = vweird.f32 %v1584_v58  ;;  %v982_v1 = vand.u32 2147483648, %v1579_v43 }
 0x2db   : > { %v479_v52 = vpop.f32.mrf.mxu3  ;;  %v517_v9 = vsel %vm514_vm9, %v516_v56, %v512_v3  ;;  %v972_v12 = vmul.f32 %v1589_v48, %v1579_v43  ;;  %v527_v18 = vsel %vm526_vm12, %v1267_v38, %v523_v10  ;;  %vm1601_vm1 = vmor %vm539_vm15, %vm540_vm14  ;;  %vm977_vm3 = vweird.f32 %v1589_v48 }
 0x2dc   : > { %v503_v57 = vmul.f32 %v502_v53, %v479_v52  ;;  %v536_v60 = vsub.f32 1.0, %v535_v2  ;;  %v532_v23 = vsel %vm529_vm13, %v531_v19, %v527_v18  ;;  %vm978_vm8 = vmor %vm976_vm7, %vm977_vm3  ;;  %vm328_vm9 = vcmask 257024  }
 0x2dd   : > { %v973_v49 = vsub.f32 1.0, %v972_v12  ;;  %v983_v53 = vor.u32 1.1754944e-38, %v982_v1  ;;  %vm991_vm12 = vweird.f32 %v1581_v51 }
 0x2de   : > { %v549_v62 = vpack.c.bf16 %v503_v57, %v503_v57  ;;  %v537_v20 = vmul.f32 %v1584_v58, %v536_v60 }
 0x2df   : > { %v974_v25 = vmul.f32 %v1589_v48, %v973_v49 }
 0x2e0   : > { %557 = vrot.lane.b32.xlu2 %v549_v62, %s1304_s14  ;;  %v538_v21 = vadd.f32 %v1584_v58, %v537_v20 }
 0x2e1   : > { %v975_v37 = vadd.f32 %v1589_v48, %v974_v25  ;;  %v961_v52 = vpop.f32.mrf.mxu2 }
 0x2e2   : > { %v215_v5 = vpop.xlane.xlu1 %214  ;;  %v542_v30 = vsel %vm1601_vm1, %v1584_v58, %v538_v21 }
 0x2e3   : > { %v481_v8 = vpop.f32.mrf.mxu3  ;;  %1272 = vrcp.f32 %v215_v5  ;;  %v275_v6 = vand.u32 2147483648, %v215_v5  ;;  %v273_v28 = vand.u32 2147483647, %v215_v5  ;;  %vm269_vm2 = vweird.f32 %v215_v5 }
 0x2e4   : > { %v518_v14 = vmul.f32 %v517_v9, %v481_v8  ;;  %v547_v42 = vsel %vm544_vm5, %v546_v36, %v542_v30  ;;  %v979_v47 = vsel %vm978_vm8, %v1589_v48, %v975_v37  ;;  %1274 = vrcp.f32 %v1581_v51 }
 0x2e5   : > { %v276_v39 = vor.u32 1.1754944e-38, %v275_v6  ;;  %vm274_vm6 = vcmp.eq.f32.partialorder %v273_v28, 8.507059e+37  ;;  %v984_v43 = vsel %vm981_vm10, %v983_v53, %v979_v47  ;;  %v997_v48 = vand.u32 2147483648, %v1581_v51 }
 0x2e6   : > { %v550_v17 = vpack.c.bf16 %v518_v14, %v518_v14 }
 0x2e7   : > { %v998_v9 = vor.u32 1.1754944e-38, %v997_v48 }
 0x2e8   : > { %559 = vrot.lane.b32.xlu0 %v550_v17, %s1304_s14 }
 0x2e9   : > { %v1273_v11 = vpop.eup %1272 }
 0x2ea   : > { %v265_v22 = vmul.f32 %v1273_v11, %v215_v5  ;;  %vm270_vm0 = vweird.f32 %v1273_v11  ;;  %v1275_v58 = vpop.eup %1274  ;;  %v995_v5 = vand.u32 2147483647, %v1581_v51 }
 0x2eb   : > { %v484_v13 = vpop.f32.mrf.mxu3  ;;  %vm271_vm4 = vmor %vm269_vm2, %vm270_vm0  ;;  %v987_v61 = vmul.f32 %v1275_v58, %v1581_v51  ;;  %vm992_vm11 = vweird.f32 %v1275_v58  ;;  %v963_v51 = vpop.f32.mrf.mxu2 }
 0x2ec   : > { %v533_v24 = vmul.f32 %v532_v23, %v484_v13  ;;  %v266_v7 = vsub.f32 1.0, %v265_v22  ;;  %vm993_vm13 = vmor %vm991_vm12, %vm992_vm11  ;;  %vm996_vm14 = vcmp.eq.f32.partialorder %v995_v5, 8.507059e+37  ;;  %vm569_vm12 = vcmask 519424  }
 0x2ed   : > { %v988_v62 = vsub.f32 1.0, %v987_v61 }
 0x2ee   : > { %v551_v27 = vpack.c.bf16 %v533_v24, %v533_v24  ;;  %v267_v54 = vmul.f32 %v1273_v11, %v266_v7 }
 0x2ef   : > { %v989_v0 = vmul.f32 %v1275_v58, %v988_v62 }
 0x2f0   : > { %561 = vrot.lane.b32.xlu1 %v551_v27, %s1304_s14  ;;  %v268_v31 = vadd.f32 %v1273_v11, %v267_v54 }
 0x2f1   : > { %v990_v3 = vadd.f32 %v1275_v58, %v989_v0 }
 0x2f2   : > { %v272_v40 = vsel %vm271_vm4, %v1273_v11, %v268_v31 }
 0x2f3   : > { %v486_v38 = vpop.f32.mrf.mxu3  ;;  %v277_v45 = vsel %vm274_vm6, %v276_v39, %v272_v40  ;;  %v994_v8 = vsel %vm993_vm13, %v1275_v58, %v990_v3 }
 0x2f4   : > { %v548_v46 = vmul.f32 %v547_v42, %v486_v38  ;;  %v278_v41 = vmul.f32 %v277_v45, %v1464_v32  ;;  %v985_v32 = vmul.f32 %v984_v43, %v961_v52  ;;  %v999_v4 = vsel %vm996_vm14, %v998_v9, %v994_v8 }
 0x2f5   : > { %v1645_v19 = vmul.f32 %v999_v4, %v963_v51 }
 0x2f6   : > { %v552_v50 = vpack.c.bf16 %v548_v46, %v548_v46  ;;  %v324_v55 = vpack.c.bf16 %v278_v41, %v278_v41  ;;  %v1031_v57 = vpack.c.bf16 %v985_v32, %v985_v32 }
 0x2f7   : > { %v1032_v6 = vpack.c.bf16 %v1645_v19, %v1645_v19 }
 0x2f8   : > { %563 = vrot.lane.b32.xlu0 %v552_v50, %s1304_s14  ;;  %329 = vst.msk [vmem:[%s1620_s18] sm:$0xf] %vm328_vm9, %v324_v55 }
 0x2fb   : > { %v1630_v2 = vpop.f32.mrf.mxu3 }
 0x300   : > { %1039 = vrot.lane.b32.xlu0 %v1031_v57, %s1302_s12 }
 0x303   : > { %v1640_v17 = vpop.f32.mrf.mxu3 }
 0x313   : > { %v1628_v63 = vpop.xlane.xlu2 %923 }
 0x318   : > { %v683_v59 = vpop.xlane.xlu1 %682 }
 0x319   : > { %1276 = vrcp.f32 %v683_v59  ;;  %v769_v23 = vand.u32 2147483647, %v683_v59  ;;  %v771_v24 = vand.u32 2147483648, %v683_v59  ;;  %vm765_vm1 = vweird.f32 %v683_v59 }
 0x31b   : > { %v218_v56 = vpop.xlane.xlu2 %217  ;;  %vm770_vm5 = vcmp.eq.f32.partialorder %v769_v23, 8.507059e+37  ;;  %v772_v1 = vor.u32 1.1754944e-38, %v771_v24 }
 0x31c   : > { %1278 = vrcp.f32 %v218_v56  ;;  %v290_v7 = vand.u32 2147483648, %v218_v56  ;;  %vm284_vm2 = vweird.f32 %v218_v56  ;;  %v288_v27 = vand.u32 2147483647, %v218_v56 }
 0x31d   : > { %1280 = vrcp.f32 %v1628_v63 }
 0x31e   : > { %v291_v38 = vor.u32 1.1754944e-38, %v290_v7  ;;  %vm289_vm6 = vcmp.eq.f32.partialorder %v288_v27, 8.507059e+37 }
 0x31f   : > { %v1277_v60 = vpop.eup %1276 }
 0x320   : > { %v761_v10 = vmul.f32 %v1277_v60, %v683_v59  ;;  %v1635_v12 = vpop.xlane.xlu0 %926  ;;  %v1637_v14 = vpop.xlane.xlu1 %223  ;;  %vm766_vm15 = vweird.f32 %v1277_v60 }
 0x321   : > { %1282 = vrcp.f32 %v1637_v14  ;;  %vm1656_vm3 = vmor %vm765_vm1, %vm766_vm15  ;;  %v318_v37 = vand.u32 2147483647, %v1637_v14  ;;  %v320_v46 = vand.u32 2147483648, %v1637_v14  ;;  %vm314_vm8 = vweird.f32 %v1637_v14 }
 0x322   : > { %v1279_v15 = vpop.eup %1278  ;;  %v762_v18 = vsub.f32 1.0, %v761_v10 }
 0x323   : > { %v280_v20 = vmul.f32 %v1279_v15, %v218_v56  ;;  %v1643_v49 = vpop.xlane.xlu2 %676  ;;  %v1648_v21 = vpop.eup %1280  ;;  %vm285_vm0 = vweird.f32 %v1279_v15  ;;  %vm1678_vm10 = vcmp.eq.f32.partialorder %v318_v37, 8.507059e+37  ;;  %v321_v3 = vor.u32 1.1754944e-38, %v320_v46 }
 0x324   : > { %1284 = vrcp.f32 %v1643_v49  ;;  %v763_v11 = vmul.f32 %v1277_v60, %v762_v18  ;;  %v1002_v36 = vmul.f32 %v1648_v21, %v1628_v63  ;;  %vm286_vm4 = vmor %vm284_vm2, %vm285_vm0  ;;  %v741_v62 = vand.u32 2147483648, %v1643_v49 }
 0x325   : > { %v281_v22 = vsub.f32 1.0, %v280_v20  ;;  %1286 = vrcp.f32 %v1635_v12  ;;  %v739_v5 = vand.u32 2147483647, %v1643_v49  ;;  %vm735_vm14 = vweird.f32 %v1643_v49 }
 0x326   : > { %v764_v13 = vadd.f32 %v1277_v60, %v763_v11  ;;  %v1003_v43 = vsub.f32 1.0, %v1002_v36  ;;  %v742_v4 = vor.u32 1.1754944e-38, %v741_v62 }
 0x327   : > { %v282_v25 = vmul.f32 %v1279_v15, %v281_v22  ;;  %v1283_v26 = vpop.eup %1282  ;;  %vm740_vm1 = vcmp.eq.f32.partialorder %v739_v5, 8.507059e+37 }
 0x328   : > { %v1653_v16 = vpop.xlane.xlu0 %220  ;;  %v310_v29 = vmul.f32 %v1283_v26, %v1637_v14  ;;  %v768_v30 = vsel %vm1656_vm3, %v1277_v60, %v764_v13  ;;  %vm315_vm7 = vweird.f32 %v1283_v26  ;;  %v1004_v10 = vmul.f32 %v1648_v21, %v1003_v43 }
 0x329   : > { %v283_v28 = vadd.f32 %v1279_v15, %v282_v25  ;;  %1288 = vrcp.f32 %v1653_v16  ;;  %v725_v39 = vpop.f32.mrf.mxu3  ;;  %v773_v41 = vsel %vm770_vm5, %v772_v1, %v768_v30  ;;  %vm316_vm11 = vmor %vm314_vm8, %vm315_vm7  ;;  %v303_v11 = vand.u32 2147483647, %v1653_v16 }
 0x32a   : > { %v1664_v31 = vpop.eup %1284  ;;  %v311_v42 = vsub.f32 1.0, %v310_v29  ;;  %v774_v53 = vmul.f32 %v773_v41, %v725_v39  ;;  %vm299_vm2 = vweird.f32 %v1653_v16  ;;  %v1005_v41 = vadd.f32 %v1648_v21, %v1004_v10 }
 0x32b   : > { %v287_v40 = vsel %vm286_vm4, %v1279_v15, %v283_v28  ;;  %v731_v44 = vmul.f32 %v1664_v31, %v1643_v49  ;;  %v1672_v45 = vpop.xlane.xlu2 %685  ;;  %v1675_v55 = vpop.eup %1286  ;;  %vm736_vm13 = vweird.f32 %v1664_v31  ;;  %v305_v15 = vand.u32 2147483648, %v1653_v16 }
 0x32c   : > { %v292_v47 = vsel %vm289_vm6, %v291_v38, %v287_v40  ;;  %v312_v50 = vmul.f32 %v1283_v26, %v311_v42  ;;  %1290 = vrcp.f32 %v1672_v45  ;;  %v792_v0 = vpack.c.bf16 %v774_v53, %v774_v53  ;;  %vm737_vm15 = vmor %vm735_vm14, %vm736_vm13 }
 0x32d   : > { %v732_v52 = vsub.f32 1.0, %v731_v44  ;;  %v293_v59 = vmul.f32 %v292_v47, %v1466_v33  ;;  %v1017_v8 = vmul.f32 %v1675_v55, %v1635_v12  ;;  %v786_v54 = vand.u32 2147483648, %v1672_v45 }
 0x32e   : > { %v313_v58 = vadd.f32 %v1283_v26, %v312_v50  ;;  %802 = vrot.lane.b32.xlu1 %v792_v0, %s1303_s13  ;;  %vm304_vm4 = vcmp.eq.f32.partialorder %v303_v11, 8.507059e+37  ;;  %vm780_vm6 = vweird.f32 %v1672_v45 }
 0x32f   : > { %v1289_v57 = vpop.eup %1288  ;;  %v733_v61 = vmul.f32 %v1664_v31, %v732_v52  ;;  %v325_v22 = vpack.c.bf16 %v293_v59, %v293_v59  ;;  %v1018_v13 = vsub.f32 1.0, %v1017_v8  ;;  %v787_v42 = vor.u32 1.1754944e-38, %v786_v54 }
 0x330   : > { %v295_v48 = vmul.f32 %v1289_v57, %v1653_v16  ;;  %v1688_v56 = vpop.xlane.xlu0 %679  ;;  %v317_v60 = vsel %vm316_vm11, %v1283_v26, %v313_v58  ;;  %vm300_vm0 = vweird.f32 %v1289_v57  ;;  %v306_v26 = vor.u32 1.1754944e-38, %v305_v15 }
 0x331   : > { %1292 = vrcp.f32 %v1688_v56  ;;  %v322_v33 = vsel %vm1678_vm10, %v321_v3, %v317_v60  ;;  %v734_v18 = vadd.f32 %v1664_v31, %v733_v61  ;;  %330 = vst.msk [vmem:[%s1620_s18 + $0x4] sm:$0xf] %vm328_vm9, %v325_v22  ;;  %vm301_vm3 = vmor %vm299_vm2, %vm300_vm0  ;;  %v756_v40 = vand.u32 2147483648, %v1688_v56  ;;  %v966_v44 = vpop.f32.mrf.mxu2  ;;  %v727_v47 = vpop.f32.mrf.mxu3 }
 0x332   : > { %v296_v9 = vsub.f32 1.0, %v295_v48  ;;  %v323_v14 = vmul.f32 %v322_v33, %v1470_v35  ;;  %v1291_v51 = vpop.eup %1290  ;;  %v1019_v46 = vmul.f32 %v1675_v55, %v1018_v13  ;;  %vm1007_vm11 = vweird.f32 %v1648_v21 }
 0x333   : > { %v776_v49 = vmul.f32 %v1291_v51, %v1672_v45  ;;  %v738_v23 = vsel %vm737_vm15, %v1664_v31, %v734_v18  ;;  %v784_v31 = vand.u32 2147483647, %v1672_v45  ;;  %vm781_vm5 = vweird.f32 %v1291_v51 }
 0x334   : > { %v297_v20 = vmul.f32 %v1289_v57, %v296_v9  ;;  %v743_v24 = vsel %vm740_vm1, %v742_v4, %v738_v23  ;;  %v327_v25 = vpack.c.bf16 %v323_v14, %v323_v14  ;;  %vm782_vm8 = vmor %vm780_vm6, %vm781_vm5  ;;  %vm750_vm13 = vweird.f32 %v1688_v56 }
 0x335   : > { %v777_v27 = vsub.f32 1.0, %v776_v49  ;;  %v744_v28 = vmul.f32 %v743_v24, %v1630_v2  ;;  %vm785_vm10 = vcmp.eq.f32.partialorder %v784_v31, 8.507059e+37  ;;  %v1012_v52 = vand.u32 2147483648, %v1628_v63 }
 0x336   : > { %v298_v35 = vadd.f32 %v1289_v57, %v297_v20  ;;  %332 = vst.msk [vmem:[%s1620_s18 + $0xc] sm:$0xf] %vm328_vm9, %v327_v25  ;;  %1041 = vrot.lane.b32.xlu1 %v1032_v6, %s1302_s12  ;;  %v757_v43 = vor.u32 1.1754944e-38, %v756_v40  ;;  %vm1006_vm15 = vweird.f32 %v1628_v63  ;;  %v1020_v61 = vadd.f32 %v1675_v55, %v1019_v46 }
 0x337   : > { %v1293_v7 = vpop.eup %1292  ;;  %v778_v36 = vmul.f32 %v1291_v51, %v777_v27  ;;  %v790_v37 = vpack.c.bf16 %v744_v28, %v744_v28  ;;  %vm1736_vm0 = vmor %vm1006_vm15, %vm1007_vm11  ;;  %vm1022_vm1 = vweird.f32 %v1675_v55  ;;  %v1027_v3 = vand.u32 2147483648, %v1635_v12 }
 0x338   : > { %v302_v29 = vsel %vm301_vm3, %v1289_v57, %v298_v35  ;;  %v746_v30 = vmul.f32 %v1293_v7, %v1688_v56  ;;  %vm751_vm7 = vweird.f32 %v1293_v7  ;;  %v1010_v57 = vand.u32 2147483647, %v1628_v63 }
 0x339   : > { %v307_v16 = vsel %vm304_vm4, %v306_v26, %v302_v29  ;;  %v779_v38 = vadd.f32 %v1291_v51, %v778_v36  ;;  %798 = vrot.lane.b32.xlu2 %v790_v37, %s1303_s13  ;;  %vm752_vm14 = vmor %vm750_vm13, %vm751_vm7  ;;  %v1009_v59 = vsel %vm1736_vm0, %v1648_v21, %v1005_v41  ;;  %v1025_v63 = vand.u32 2147483647, %v1635_v12  ;;  %v968_v9 = vpop.f32.mrf.mxu2 }
 0x33a   : > { %v308_v2 = vmul.f32 %v307_v16, %v1468_v34  ;;  %v747_v39 = vsub.f32 1.0, %v746_v30  ;;  %v558_v1 = vpop.permute.xlu2 %557  ;;  %v754_v34 = vand.u32 2147483647, %v1688_v56  ;;  %v1013_v56 = vor.u32 1.1754944e-38, %v1012_v52 }
 0x33b   : > { %570 = vst.msk [vmem:[%s1620_s18] sm:$0xf] %vm569_vm12, %v558_v1  ;;  %v783_v45 = vsel %vm782_vm8, %v1291_v51, %v779_v38  ;;  %vm1011_vm3 = vcmp.eq.f32.partialorder %v1010_v57, 8.507059e+37  ;;  %v1028_v10 = vor.u32 1.1754944e-38, %v1027_v3  ;;  %vm1026_vm5 = vcmp.eq.f32.partialorder %v1025_v63, 8.507059e+37 }
 0x33c   : > { %v748_v19 = vmul.f32 %v1293_v7, %v747_v39  ;;  %v326_v6 = vpack.c.bf16 %v308_v2, %v308_v2  ;;  %v788_v50 = vsel %vm785_vm10, %v787_v42, %v783_v45  ;;  %vm755_vm2 = vcmp.eq.f32.partialorder %v754_v34, 8.507059e+37 }
 0x33d   : > { %v789_v32 = vmul.f32 %v788_v50, %v727_v47  ;;  %v1014_v8 = vsel %vm1011_vm3, %v1013_v56, %v1009_v59  ;;  %vm810_vm6 = vcmask 781824   ;;  %vm1051_vm7 = vcmask 1044224  }
 0x33e   : > { %v749_v53 = vadd.f32 %v1293_v7, %v748_v19  ;;  %331 = vst.msk [vmem:[%s1620_s18 + $0x8] sm:$0xf] %vm328_vm9, %v326_v6  ;;  %vm1021_vm9 = vweird.f32 %v1635_v12  ;;  %v1015_v33 = vmul.f32 %v1014_v8, %v966_v44 }
 0x33f   : > { %v793_v0 = vpack.c.bf16 %v789_v32, %v789_v32  ;;  %vm1023_vm4 = vmor %vm1021_vm9, %vm1022_vm1 }
 0x340   : > { %v753_v62 = vsel %vm752_vm14, %v1293_v7, %v749_v53  ;;  %v1024_v60 = vsel %vm1023_vm4, %v1675_v55, %v1020_v61  ;;  %v1033_v14 = vpack.c.bf16 %v1015_v33, %v1015_v33 }
 0x341   : > { %v758_v48 = vsel %vm755_vm2, %v757_v43, %v753_v62  ;;  %804 = vrot.lane.b32.xlu2 %v793_v0, %s1303_s13  ;;  %v1029_v12 = vsel %vm1026_vm5, %v1028_v10, %v1024_v60 }
 0x342   : > { %v759_v5 = vmul.f32 %v758_v48, %v1640_v17  ;;  %v1030_v17 = vmul.f32 %v1029_v12, %v968_v9 }
 0x344   : > { %v791_v21 = vpack.c.bf16 %v759_v5, %v759_v5  ;;  %v1034_v4 = vpack.c.bf16 %v1030_v17, %v1030_v17 }
 0x346   : > { %800 = vrot.lane.b32.xlu0 %v791_v21, %s1303_s13 }
 0x349   : > { %1043 = vrot.lane.b32.xlu2 %v1033_v14, %s1302_s12 }
 0x34e   : > { %1045 = vrot.lane.b32.xlu0 %v1034_v4, %s1302_s12 }
 0x35a   : > { %v560_v55 = vpop.permute.xlu0 %559 }
 0x35b   : > { %571 = vst.msk [vmem:[%s1620_s18 + $0x4] sm:$0xf] %vm569_vm12, %v560_v55 }
 0x362   : > { %v562_v15 = vpop.permute.xlu1 %561 }
 0x363   : > { %572 = vst.msk [vmem:[%s1620_s18 + $0x8] sm:$0xf] %vm569_vm12, %v562_v15 }
 0x36a   : > { %v564_v18 = vpop.permute.xlu0 %563 }
 0x36b   : > { %573 = vst.msk [vmem:[%s1620_s18 + $0xc] sm:$0xf] %vm569_vm12, %v564_v18 }
 0x372   : > { %v1040_v20 = vpop.permute.xlu0 %1039 }
 0x393   : > { %v799_v51 = vpop.permute.xlu2 %798 }
 0x394   : > { %811 = vst.msk [vmem:[%s1620_s18] sm:$0xf] %vm810_vm6, %v799_v51 }
 0x395   : > { %1052 = vst.msk [vmem:[%s1620_s18] sm:$0xf] %vm1051_vm7, %v1040_v20 }
 0x39b   : > { %v805_v11 = vpop.permute.xlu2 %804 }
 0x39c   : > { %814 = vst.msk [vmem:[%s1620_s18 + $0xc] sm:$0xf] %vm810_vm6, %v805_v11 }
 0x3a0   : > { %v803_v22 = vpop.permute.xlu1 %802 }
 0x3a1   : > { %813 = vst.msk [vmem:[%s1620_s18 + $0x8] sm:$0xf] %vm810_vm6, %v803_v22 }
 0x3a3   : > { %v1044_v13 = vpop.permute.xlu2 %1043 }
 0x3a4   : > { %1054 = vst.msk [vmem:[%s1620_s18 + $0x8] sm:$0xf] %vm1051_vm7, %v1044_v13 }
 0x3a8   : > { %v1042_v23 = vpop.permute.xlu1 %1041 }
 0x3b8   : > { %v801_v49 = vpop.permute.xlu0 %800 }
 0x3b9   : > { %812 = vst.msk [vmem:[%s1620_s18 + $0x4] sm:$0xf] %vm810_vm6, %v801_v49 }
 0x3ba   : > { %1053 = vst.msk [vmem:[%s1620_s18 + $0x4] sm:$0xf] %vm1051_vm7, %v1042_v23 }
 0x3c0   : > { %v1046_v35 = vpop.permute.xlu0 %1045 }
 0x3c1   : > { %1055 = vst.msk [vmem:[%s1620_s18 + $0xc] sm:$0xf] %vm1051_vm7, %v1046_v35 }
 0x3c2 PF: > { %s11_s6 = sadd.s32 1, %s1300_s6  }
 0x3c3   : > { %p8_p4 = scmp.ge.s32.totalorder %s11_s6, 4  }
 0x3c5   :  { %10 = sbr.rel (!%p8_p4) target bundleno = 1 (0x1), region = 54 }

// kernel: vision_transformer_forward.17
= control target key start
LH: loop header
LB: loop body
LE: loop exit
PB: predicated region body
PF: predicated region fallthrough
CT: control target
= control target key end

     0   :  { %s405_s1 = inlined_call_operand.vmem [shape: bf16[128,128], index: 1, kind: input, shape index: {}]   ;;  %s406_s2 = inlined_call_operand.vmem [shape: f32[1,128], index: 2, kind: input, shape index: {}]   ;;  %s407_s0 = inlined_call_operand.vmem [shape: bf16[64,128], index: 0, kind: input, shape index: {}]   ;;  %s408_s3 = inlined_call_operand.vmem [shape: bf16[64,128], index: 3, kind: input, shape index: {}]   ;;  %s409_s4 = inlined_call_operand.vmem [shape: bf16[64,128], index: 4, kind: output, shape index: {}]  }
   0x1   :  { %v249_v0 = vld [vmem:[%s405_s1 + $0x38] sm:$0xff]  ;;  %v248_v1 = vld [vmem:[%s405_s1 + $0x30] sm:$0xff]  ;;  %v247_v2 = vld [vmem:[%s405_s1 + $0x28] sm:$0xff] }
   0x2   :  { %117 = vmatpush.bf16.msra.mxu0 %v249_v0  ;;  %292 = vmatpush.bf16.msra.mxu1 %v249_v0  ;;  %v246_v3 = vld [vmem:[%s405_s1 + $0x20] sm:$0xff]  ;;  %v245_v4 = vld [vmem:[%s405_s1 + $0x18] sm:$0xff]  ;;  %v244_v5 = vld [vmem:[%s405_s1 + $0x10] sm:$0xff] }
   0x3   :  { %293 = vmatpush.bf16.msra.mxu2 %v249_v0  ;;  %294 = vmatpush.bf16.msra.mxu3 %v249_v0  ;;  %v243_v6 = vld [vmem:[%s405_s1 + $0x8] sm:$0xff]  ;;  %v242_v7 = vld [vmem:[%s405_s1] sm:$0xff]  ;;  %v240_v10 = vld [vmem:[%s407_s0 + $0x10] sm:$0xff] }
   0x4   :  { %v238_v8 = vld [vmem:[%s407_s0] sm:$0xff]  ;;  %v239_v9 = vld [vmem:[%s407_s0 + $0x8] sm:$0xff]  ;;  %v241_v11 = vld [vmem:[%s407_s0 + $0x18] sm:$0xff] }
   0x5   :  { %v316_v14 = vld [vmem:[%s406_s2] ss:$0 sm:$0xff]  ;;  %v286_v16 = vld [vmem:[%s408_s3 + $0x8] sm:$0xff]   ;;  %v287_v29 = vld [vmem:[%s408_s3 + $0x10] sm:$0xff]  }
   0x6   :  { %118 = vmatpush.bf16.msra.mxu0 %v248_v1  ;;  %295 = vmatpush.bf16.msra.mxu1 %v248_v1  ;;  %v251_v15 = vld [vmem:[%s408_s3] sm:$0xff]   ;;  %v256_v18 = vunpack.c.l.bf16 %v286_v16  ;;  %v257_v24 = vunpack.c.h.bf16 %v286_v16  ;;  %v288_v30 = vld [vmem:[%s408_s3 + $0x18] sm:$0xff]   ;;  %v260_v35 = vunpack.c.l.bf16 %v287_v29  ;;  %v261_v41 = vunpack.c.h.bf16 %v287_v29 }
   0x7   :  { %296 = vmatpush.bf16.msra.mxu2 %v248_v1  ;;  %297 = vmatpush.bf16.msra.mxu3 %v248_v1  ;;  %v252_v17 = vunpack.c.l.bf16 %v251_v15  ;;  %v253_v23 = vunpack.c.h.bf16 %v251_v15  ;;  %v264_v36 = vunpack.c.l.bf16 %v288_v30  ;;  %v265_v42 = vunpack.c.h.bf16 %v288_v30 }
   0xa   :  { %119 = vmatpush.bf16.msra.mxu0 %v247_v2  ;;  %298 = vmatpush.bf16.msra.mxu1 %v247_v2 }
   0xb   :  { %299 = vmatpush.bf16.msra.mxu2 %v247_v2  ;;  %300 = vmatpush.bf16.msra.mxu3 %v247_v2 }
   0xe   :  { %120 = vmatpush.bf16.msra.mxu0 %v246_v3  ;;  %301 = vmatpush.bf16.msra.mxu1 %v246_v3 }
   0xf   :  { %302 = vmatpush.bf16.msra.mxu2 %v246_v3  ;;  %303 = vmatpush.bf16.msra.mxu3 %v246_v3 }
  0x12   :  { %121 = vmatpush.bf16.msra.mxu0 %v245_v4  ;;  %304 = vmatpush.bf16.msra.mxu1 %v245_v4 }
  0x13   :  { %305 = vmatpush.bf16.msra.mxu2 %v245_v4  ;;  %306 = vmatpush.bf16.msra.mxu3 %v245_v4 }
  0x16   :  { %122 = vmatpush.bf16.msra.mxu0 %v244_v5  ;;  %307 = vmatpush.bf16.msra.mxu1 %v244_v5 }
  0x17   :  { %308 = vmatpush.bf16.msra.mxu2 %v244_v5  ;;  %309 = vmatpush.bf16.msra.mxu3 %v244_v5 }
  0x1a   :  { %123 = vmatpush.bf16.msra.mxu0 %v243_v6  ;;  %310 = vmatpush.bf16.msra.mxu1 %v243_v6 }
  0x1b   :  { %311 = vmatpush.bf16.msra.mxu2 %v243_v6  ;;  %312 = vmatpush.bf16.msra.mxu3 %v243_v6 }
  0x1e   :  { %124 = vmatpush.bf16.msra.mxu0 %v242_v7  ;;  %313 = vmatpush.bf16.msra.mxu1 %v242_v7 }
  0x1f   :  { %314 = vmatpush.bf16.msra.mxu2 %v242_v7  ;;  %315 = vmatpush.bf16.msra.mxu3 %v242_v7 }
  0x21   :  { %125 = vmatmul.bf16.vlgmr.msra.gmra.mxu0 %v238_v8  ;;  %130 = vmatmul.bf16.vlgmr.msra.gmra.mxu1 %v239_v9 }
  0x22   :  { %135 = vmatmul.bf16.vlgmr.msra.gmra.mxu2 %v240_v10  ;;  %140 = vmatmul.bf16.vlgmr.msra.gmra.mxu3 %v241_v11 }
  0x9e   :  { %v126_v12 = vpop.f32.mrf.mxu0  ;;  %v131_v13 = vpop.f32.mrf.mxu1 }
  0x9f   :  { %v127_v19 = vadd.f32 %v316_v14, %v126_v12  ;;  %v132_v20 = vadd.f32 %v316_v14, %v131_v13 }
  0xa1   :  { %v162_v31 = vadd.f32 %v252_v17, %v127_v19  ;;  %v164_v32 = vadd.f32 %v256_v18, %v132_v20 }
  0xa5   :  { %v136_v21 = vpop.f32.mrf.mxu2  ;;  %v141_v22 = vpop.f32.mrf.mxu3 }
  0xa6   :  { %v128_v25 = vpop.f32.mrf.mxu0  ;;  %v133_v26 = vpop.f32.mrf.mxu1  ;;  %v137_v39 = vadd.f32 %v316_v14, %v136_v21  ;;  %v142_v40 = vadd.f32 %v316_v14, %v141_v22 }
  0xa7   :  { %v129_v27 = vadd.f32 %v316_v14, %v128_v25  ;;  %v134_v28 = vadd.f32 %v316_v14, %v133_v26 }
  0xa8   :  { %v166_v47 = vadd.f32 %v260_v35, %v137_v39  ;;  %v168_v48 = vadd.f32 %v264_v36, %v142_v40 }
  0xa9   :  { %v163_v33 = vadd.f32 %v253_v23, %v129_v27  ;;  %v165_v34 = vadd.f32 %v257_v24, %v134_v28 }
  0xab   :  { %v269_v37 = vpack.c.bf16 %v163_v33, %v162_v31  ;;  %v274_v38 = vpack.c.bf16 %v165_v34, %v164_v32 }
  0xad   :  { %270 = vst [vmem:[%s409_s4] sm:$0xff] %v269_v37   ;;  %v138_v43 = vpop.f32.mrf.mxu2  ;;  %v143_v44 = vpop.f32.mrf.mxu3 }
  0xae   :  { %289 = vst [vmem:[%s409_s4 + $0x8] sm:$0xff] %v274_v38   ;;  %v139_v45 = vadd.f32 %v316_v14, %v138_v43  ;;  %v144_v46 = vadd.f32 %v316_v14, %v143_v44 }
  0xb0   :  { %v167_v49 = vadd.f32 %v261_v41, %v139_v45  ;;  %v169_v50 = vadd.f32 %v265_v42, %v144_v46 }
  0xb2   :  { %v279_v51 = vpack.c.bf16 %v167_v49, %v166_v47  ;;  %v284_v52 = vpack.c.bf16 %v169_v50, %v168_v48 }
  0xb4   :  { %290 = vst [vmem:[%s409_s4 + $0x10] sm:$0xff] %v279_v51  }
  0xb5   :  { %291 = vst [vmem:[%s409_s4 + $0x18] sm:$0xff] %v284_v52  }

// kernel: vision_transformer_forward.19
= control target key start
LH: loop header
LB: loop body
LE: loop exit
PB: predicated region body
PF: predicated region fallthrough
CT: control target
= control target key end

     0   :  { %s1070_s1 = inlined_call_operand.vmem [shape: bf16[512,128], index: 1, kind: input, shape index: {}]   ;;  %s1071_s2 = inlined_call_operand.vmem [shape: f32[1,128], index: 2, kind: input, shape index: {}]   ;;  %s1072_s0 = inlined_call_operand.vmem [shape: bf16[64,512], index: 0, kind: input, shape index: {}]   ;;  %s1073_s3 = inlined_call_operand.vmem [shape: bf16[64,128], index: 3, kind: input, shape index: {}]   ;;  %s1074_s4 = inlined_call_operand.vmem [shape: bf16[64,128], index: 4, kind: output, shape index: {}]  }
   0x1   :  { %v748_v0 = vld [vmem:[%s1070_s1 + $0x38] sm:$0xff]  ;;  %v747_v4 = vld [vmem:[%s1070_s1 + $0x30] sm:$0xff]  ;;  %v746_v8 = vld [vmem:[%s1070_s1 + $0x28] sm:$0xff] }
   0x2   :  { %v756_v1 = vld [vmem:[%s1070_s1 + $0x78] sm:$0xff]  ;;  %373 = vmatpush.bf16.msra.mxu0 %v748_v0  ;;  %v755_v5 = vld [vmem:[%s1070_s1 + $0x70] sm:$0xff]  ;;  %v754_v9 = vld [vmem:[%s1070_s1 + $0x68] sm:$0xff] }
   0x3   :  { %v764_v2 = vld [vmem:[%s1070_s1 + $0xb8] sm:$0xff]  ;;  %402 = vmatpush.bf16.msra.mxu1 %v756_v1  ;;  %v763_v6 = vld [vmem:[%s1070_s1 + $0xb0] sm:$0xff]  ;;  %v762_v10 = vld [vmem:[%s1070_s1 + $0xa8] sm:$0xff] }
   0x4   :  { %v772_v3 = vld [vmem:[%s1070_s1 + $0xf8] sm:$0xff]  ;;  %431 = vmatpush.bf16.msra.mxu2 %v764_v2  ;;  %v771_v7 = vld [vmem:[%s1070_s1 + $0xf0] sm:$0xff]  ;;  %v770_v11 = vld [vmem:[%s1070_s1 + $0xe8] sm:$0xff] }
   0x5   :  { %460 = vmatpush.bf16.msra.mxu3 %v772_v3  ;;  %v745_v12 = vld [vmem:[%s1070_s1 + $0x20] sm:$0xff]  ;;  %v744_v16 = vld [vmem:[%s1070_s1 + $0x18] sm:$0xff]  ;;  %v743_v20 = vld [vmem:[%s1070_s1 + $0x10] sm:$0xff] }
   0x6   :  { %374 = vmatpush.bf16.msra.mxu0 %v747_v4  ;;  %v753_v13 = vld [vmem:[%s1070_s1 + $0x60] sm:$0xff]  ;;  %v752_v17 = vld [vmem:[%s1070_s1 + $0x58] sm:$0xff]  ;;  %v751_v21 = vld [vmem:[%s1070_s1 + $0x50] sm:$0xff] }
   0x7   :  { %403 = vmatpush.bf16.msra.mxu1 %v755_v5  ;;  %v761_v14 = vld [vmem:[%s1070_s1 + $0xa0] sm:$0xff]  ;;  %v760_v18 = vld [vmem:[%s1070_s1 + $0x98] sm:$0xff]  ;;  %v759_v22 = vld [vmem:[%s1070_s1 + $0x90] sm:$0xff] }
   0x8   :  { %432 = vmatpush.bf16.msra.mxu2 %v763_v6  ;;  %v769_v15 = vld [vmem:[%s1070_s1 + $0xe0] sm:$0xff]  ;;  %v768_v19 = vld [vmem:[%s1070_s1 + $0xd8] sm:$0xff]  ;;  %v767_v23 = vld [vmem:[%s1070_s1 + $0xd0] sm:$0xff] }
   0x9   :  { %461 = vmatpush.bf16.msra.mxu3 %v771_v7  ;;  %v742_v24 = vld [vmem:[%s1070_s1 + $0x8] sm:$0xff]  ;;  %v741_v28 = vld [vmem:[%s1070_s1] sm:$0xff]  ;;  %v727_v33 = vld [vmem:[%s1072_s0 + $0xc] sm:$0xf0] }
   0xa   :  { %375 = vmatpush.bf16.msra.mxu0 %v746_v8  ;;  %v750_v25 = vld [vmem:[%s1070_s1 + $0x48] sm:$0xff]  ;;  %v749_v29 = vld [vmem:[%s1070_s1 + $0x40] sm:$0xff]  ;;  %v537_v35 = vld [vmem:[%s1072_s0 + $0x10] sm:$0xf0] }
   0xb   :  { %404 = vmatpush.bf16.msra.mxu1 %v754_v9  ;;  %v758_v26 = vld [vmem:[%s1070_s1 + $0x88] sm:$0xff]  ;;  %v757_v30 = vld [vmem:[%s1070_s1 + $0x80] sm:$0xff]  ;;  %v728_v37 = vld [vmem:[%s1072_s0 + $0x14] sm:$0xf0] }
   0xc   :  { %433 = vmatpush.bf16.msra.mxu2 %v762_v10  ;;  %v766_v27 = vld [vmem:[%s1070_s1 + $0xc8] sm:$0xff]  ;;  %v765_v31 = vld [vmem:[%s1070_s1 + $0xc0] sm:$0xff]  ;;  %v545_v39 = vld [vmem:[%s1072_s0 + $0x18] sm:$0xf0] }
   0xd   :  { %462 = vmatpush.bf16.msra.mxu3 %v770_v11  ;;  %v535_v32 = vld [vmem:[%s1072_s0] sm:$0xf]  ;;  %v725_v34 = vld [vmem:[%s1072_s0 + $0x4] sm:$0xf]  ;;  %v543_v36 = vld [vmem:[%s1072_s0 + $0x8] sm:$0xf] }
   0xe   :  { %376 = vmatpush.bf16.msra.mxu0 %v745_v12  ;;  %v726_v38 = vld [vmem:[%s1072_s0 + $0xc] sm:$0xf]  ;;  %v536_v40 = vor.u32 %v727_v33, %v535_v32  ;;  %v540_v41 = vor.u32 %v725_v34, %v537_v35  ;;  %v544_v42 = vor.u32 %v728_v37, %v543_v36  ;;  %v551_v44 = vld [vmem:[%s1072_s0 + $0x20] sm:$0xf]  ;;  %v731_v45 = vld [vmem:[%s1072_s0 + $0x2c] sm:$0xf0] }
   0xf   :  { %405 = vmatpush.bf16.msra.mxu1 %v753_v13  ;;  %v548_v43 = vor.u32 %v726_v38, %v545_v39  ;;  %v729_v46 = vld [vmem:[%s1072_s0 + $0x24] sm:$0xf]  ;;  %v553_v47 = vld [vmem:[%s1072_s0 + $0x30] sm:$0xf0]  ;;  %v559_v48 = vld [vmem:[%s1072_s0 + $0x28] sm:$0xf]  ;;  %v552_v52 = vor.u32 %v731_v45, %v551_v44 }
  0x10   :  { %434 = vmatpush.bf16.msra.mxu2 %v761_v14  ;;  %v732_v49 = vld [vmem:[%s1072_s0 + $0x34] sm:$0xf0]  ;;  %v730_v50 = vld [vmem:[%s1072_s0 + $0x2c] sm:$0xf]  ;;  %v561_v51 = vld [vmem:[%s1072_s0 + $0x38] sm:$0xf0]  ;;  %v556_v53 = vor.u32 %v729_v46, %v553_v47 }
  0x11   :  { %463 = vmatpush.bf16.msra.mxu3 %v769_v15  ;;  %v560_v54 = vor.u32 %v732_v49, %v559_v48  ;;  %v564_v55 = vor.u32 %v730_v50, %v561_v51  ;;  %v567_v56 = vld [vmem:[%s1072_s0 + $0x40] sm:$0xf]  ;;  %v735_v57 = vld [vmem:[%s1072_s0 + $0x4c] sm:$0xf0]  ;;  %v733_v58 = vld [vmem:[%s1072_s0 + $0x44] sm:$0xf] }
  0x12   :  { %377 = vmatpush.bf16.msra.mxu0 %v744_v16  ;;  %v569_v59 = vld [vmem:[%s1072_s0 + $0x50] sm:$0xf0]  ;;  %v575_v60 = vld [vmem:[%s1072_s0 + $0x48] sm:$0xf]  ;;  %v736_v61 = vld [vmem:[%s1072_s0 + $0x54] sm:$0xf0]  ;;  %v568_v0 = vor.u32 %v735_v57, %v567_v56 }
  0x13   :  { %406 = vmatpush.bf16.msra.mxu1 %v752_v17  ;;  %v734_v62 = vld [vmem:[%s1072_s0 + $0x4c] sm:$0xf]  ;;  %v577_v63 = vld [vmem:[%s1072_s0 + $0x58] sm:$0xf0]  ;;  %v572_v1 = vor.u32 %v733_v58, %v569_v59  ;;  %v576_v2 = vor.u32 %v736_v61, %v575_v60  ;;  %v583_v4 = vld [vmem:[%s1072_s0 + $0x60] sm:$0xf] }
  0x14   :  { %435 = vmatpush.bf16.msra.mxu2 %v760_v18  ;;  %v580_v3 = vor.u32 %v734_v62, %v577_v63  ;;  %v739_v5 = vld [vmem:[%s1072_s0 + $0x6c] sm:$0xf0]  ;;  %v737_v6 = vld [vmem:[%s1072_s0 + $0x64] sm:$0xf]  ;;  %v585_v7 = vld [vmem:[%s1072_s0 + $0x70] sm:$0xf0] }
  0x15   :  { %464 = vmatpush.bf16.msra.mxu3 %v768_v19  ;;  %v591_v8 = vld [vmem:[%s1072_s0 + $0x68] sm:$0xf]  ;;  %v740_v9 = vld [vmem:[%s1072_s0 + $0x74] sm:$0xf0]  ;;  %v738_v10 = vld [vmem:[%s1072_s0 + $0x6c] sm:$0xf]  ;;  %v584_v12 = vor.u32 %v739_v5, %v583_v4  ;;  %v588_v13 = vor.u32 %v737_v6, %v585_v7 }
  0x16   :  { %378 = vmatpush.bf16.msra.mxu0 %v743_v20  ;;  %v593_v11 = vld [vmem:[%s1072_s0 + $0x78] sm:$0xf0]  ;;  %v592_v14 = vor.u32 %v740_v9, %v591_v8  ;;  %v1036_v16 = vld [vmem:[%s1071_s2] ss:$0 sm:$0xff]  ;;  %v809_v49 = vld [vmem:[%s1073_s3 + $0x8] sm:$0xff]  }
  0x17   :  { %407 = vmatpush.bf16.msra.mxu1 %v751_v21  ;;  %v596_v15 = vor.u32 %v738_v10, %v593_v11  ;;  %v780_v56 = vunpack.c.h.bf16 %v809_v49  ;;  %v810_v7 = vld [vmem:[%s1073_s3 + $0x10] sm:$0xff]  }
  0x18   :  { %436 = vmatpush.bf16.msra.mxu2 %v759_v22 }
  0x19   :  { %465 = vmatpush.bf16.msra.mxu3 %v767_v23 }
  0x1a   :  { %379 = vmatpush.bf16.msra.mxu0 %v742_v24 }
  0x1b   :  { %408 = vmatpush.bf16.msra.mxu1 %v750_v25 }
  0x1c   :  { %437 = vmatpush.bf16.msra.mxu2 %v758_v26 }
  0x1d   :  { %466 = vmatpush.bf16.msra.mxu3 %v766_v27  ;;  %v774_v27 = vld [vmem:[%s1073_s3] sm:$0xff]  }
  0x1e   :  { %380 = vmatpush.bf16.msra.mxu0 %v741_v28  ;;  %v775_v32 = vunpack.c.l.bf16 %v774_v27  ;;  %v776_v34 = vunpack.c.h.bf16 %v774_v27 }
  0x1f   :  { %409 = vmatpush.bf16.msra.mxu1 %v749_v29 }
  0x20   :  { %438 = vmatpush.bf16.msra.mxu2 %v757_v30 }
  0x21   :  { %467 = vmatpush.bf16.msra.mxu3 %v765_v31  ;;  %381 = vmatmul.bf16.vlgmr.msra.gmra.mxu0 %v536_v40 }
  0x22   :  { %410 = vmatmul.bf16.vlgmr.msra.gmra.mxu1 %v540_v41 }
  0x23   :  { %439 = vmatmul.bf16.vlgmr.msra.gmra.mxu2 %v544_v42 }
  0x24   :  { %468 = vmatmul.bf16.vlgmr.msra.gmra.mxu3 %v548_v43 }
  0x31   :  { %386 = vmatmul.bf16.gmra.mxu0 %v552_v52 }
  0x32   :  { %415 = vmatmul.bf16.gmra.mxu1 %v556_v53 }
  0x33   :  { %444 = vmatmul.bf16.gmra.mxu2 %v560_v54  ;;  %v779_v54 = vunpack.c.l.bf16 %v809_v49 }
  0x34   :  { %473 = vmatmul.bf16.gmra.mxu3 %v564_v55 }
  0x41   :  { %391 = vmatmul.bf16.gmra.mxu0 %v568_v0 }
  0x42   :  { %420 = vmatmul.bf16.gmra.mxu1 %v572_v1 }
  0x43   :  { %449 = vmatmul.bf16.gmra.mxu2 %v576_v2 }
  0x44   :  { %478 = vmatmul.bf16.gmra.mxu3 %v580_v3 }
  0x51   :  { %396 = vmatmul.bf16.gmra.mxu0 %v584_v12  ;;  %v783_v12 = vunpack.c.l.bf16 %v810_v7 }
  0x52   :  { %425 = vmatmul.bf16.gmra.mxu1 %v588_v13 }
  0x53   :  { %454 = vmatmul.bf16.gmra.mxu2 %v592_v14  ;;  %v784_v14 = vunpack.c.h.bf16 %v810_v7 }
  0x54   :  { %483 = vmatmul.bf16.gmra.mxu3 %v596_v15 }
  0x9e   :  { %v382_v17 = vpop.f32.mrf.mxu0 }
  0x9f   :  { %v411_v18 = vpop.f32.mrf.mxu1  ;;  %v383_v19 = vadd.f32 %v1036_v16, %v382_v17 }
  0xa1   :  { %v412_v22 = vadd.f32 %v411_v18, %v383_v19 }
  0xa6   :  { %v440_v20 = vpop.f32.mrf.mxu2  ;;  %v384_v23 = vpop.f32.mrf.mxu0 }
  0xa7   :  { %v469_v21 = vpop.f32.mrf.mxu3  ;;  %v413_v24 = vpop.f32.mrf.mxu1  ;;  %v385_v25 = vadd.f32 %v1036_v16, %v384_v23  ;;  %v441_v26 = vadd.f32 %v440_v20, %v412_v22 }
  0xa9   :  { %v414_v28 = vadd.f32 %v413_v24, %v385_v25  ;;  %v470_v31 = vadd.f32 %v469_v21, %v441_v26 }
  0xab   :  { %v505_v38 = vadd.f32 %v775_v32, %v470_v31 }
  0xae   :  { %v442_v29 = vpop.f32.mrf.mxu2  ;;  %v387_v35 = vpop.f32.mrf.mxu0 }
  0xaf   :  { %v471_v30 = vpop.f32.mrf.mxu3  ;;  %v443_v33 = vadd.f32 %v442_v29, %v414_v28  ;;  %v416_v36 = vpop.f32.mrf.mxu1  ;;  %v388_v40 = vadd.f32 %v1036_v16, %v387_v35  ;;  %v811_v29 = vld [vmem:[%s1073_s3 + $0x18] sm:$0xff]  }
  0xb1   :  { %v472_v37 = vadd.f32 %v471_v30, %v443_v33  ;;  %v417_v44 = vadd.f32 %v416_v36, %v388_v40  ;;  %v788_v36 = vunpack.c.h.bf16 %v811_v29 }
  0xb3   :  { %v506_v39 = vadd.f32 %v776_v34, %v472_v37  ;;  %v787_v34 = vunpack.c.l.bf16 %v811_v29 }
  0xb5   :  { %v792_v41 = vpack.c.bf16 %v506_v39, %v505_v38 }
  0xb6   :  { %v445_v42 = vpop.f32.mrf.mxu2  ;;  %v389_v45 = vpop.f32.mrf.mxu0 }
  0xb7   :  { %v474_v43 = vpop.f32.mrf.mxu3  ;;  %793 = vst [vmem:[%s1074_s4] sm:$0xff] %v792_v41   ;;  %v418_v46 = vpop.f32.mrf.mxu1  ;;  %v390_v47 = vadd.f32 %v1036_v16, %v389_v45  ;;  %v446_v48 = vadd.f32 %v445_v42, %v417_v44 }
  0xb9   :  { %v419_v50 = vadd.f32 %v418_v46, %v390_v47  ;;  %v475_v53 = vadd.f32 %v474_v43, %v446_v48 }
  0xbb   :  { %v507_v60 = vadd.f32 %v779_v54, %v475_v53 }
  0xbe   :  { %v447_v51 = vpop.f32.mrf.mxu2  ;;  %v392_v57 = vpop.f32.mrf.mxu0 }
  0xbf   :  { %v476_v52 = vpop.f32.mrf.mxu3  ;;  %v448_v55 = vadd.f32 %v447_v51, %v419_v50  ;;  %v421_v58 = vpop.f32.mrf.mxu1  ;;  %v393_v62 = vadd.f32 %v1036_v16, %v392_v57 }
  0xc1   :  { %v477_v59 = vadd.f32 %v476_v52, %v448_v55  ;;  %v422_v2 = vadd.f32 %v421_v58, %v393_v62 }
  0xc3   :  { %v508_v61 = vadd.f32 %v780_v56, %v477_v59 }
  0xc5   :  { %v797_v63 = vpack.c.bf16 %v508_v61, %v507_v60 }
  0xc6   :  { %v450_v0 = vpop.f32.mrf.mxu2  ;;  %v394_v3 = vpop.f32.mrf.mxu0 }
  0xc7   :  { %v479_v1 = vpop.f32.mrf.mxu3  ;;  %812 = vst [vmem:[%s1074_s4 + $0x8] sm:$0xff] %v797_v63   ;;  %v423_v4 = vpop.f32.mrf.mxu1  ;;  %v395_v5 = vadd.f32 %v1036_v16, %v394_v3  ;;  %v451_v6 = vadd.f32 %v450_v0, %v422_v2 }
  0xc9   :  { %v424_v8 = vadd.f32 %v423_v4, %v395_v5  ;;  %v480_v11 = vadd.f32 %v479_v1, %v451_v6 }
  0xcb   :  { %v509_v19 = vadd.f32 %v783_v12, %v480_v11 }
  0xce   :  { %v452_v9 = vpop.f32.mrf.mxu2  ;;  %v397_v15 = vpop.f32.mrf.mxu0 }
  0xcf   :  { %v481_v10 = vpop.f32.mrf.mxu3  ;;  %v453_v13 = vadd.f32 %v452_v9, %v424_v8  ;;  %v426_v18 = vpop.f32.mrf.mxu1  ;;  %v398_v21 = vadd.f32 %v1036_v16, %v397_v15 }
  0xd1   :  { %v482_v17 = vadd.f32 %v481_v10, %v453_v13  ;;  %v427_v25 = vadd.f32 %v426_v18, %v398_v21 }
  0xd3   :  { %v510_v20 = vadd.f32 %v784_v14, %v482_v17 }
  0xd5   :  { %v802_v22 = vpack.c.bf16 %v510_v20, %v509_v19 }
  0xd6   :  { %v455_v23 = vpop.f32.mrf.mxu2  ;;  %v399_v26 = vpop.f32.mrf.mxu0 }
  0xd7   :  { %v484_v24 = vpop.f32.mrf.mxu3  ;;  %813 = vst [vmem:[%s1074_s4 + $0x10] sm:$0xff] %v802_v22   ;;  %v400_v27 = vadd.f32 %v1036_v16, %v399_v26  ;;  %v456_v28 = vadd.f32 %v455_v23, %v427_v25  ;;  %v428_v30 = vpop.f32.mrf.mxu1 }
  0xd9   :  { %v429_v31 = vadd.f32 %v428_v30, %v400_v27  ;;  %v485_v33 = vadd.f32 %v484_v24, %v456_v28 }
  0xdb   :  { %v511_v39 = vadd.f32 %v787_v34, %v485_v33 }
  0xde   :  { %v457_v32 = vpop.f32.mrf.mxu2 }
  0xdf   :  { %v458_v35 = vadd.f32 %v457_v32, %v429_v31  ;;  %v486_v37 = vpop.f32.mrf.mxu3 }
  0xe1   :  { %v487_v38 = vadd.f32 %v486_v37, %v458_v35 }
  0xe3   :  { %v512_v40 = vadd.f32 %v788_v36, %v487_v38 }
  0xe5   :  { %v807_v41 = vpack.c.bf16 %v512_v40, %v511_v39 }
  0xe7   :  { %814 = vst [vmem:[%s1074_s4 + $0x18] sm:$0xff] %v807_v41  }

// kernel: vision_transformer_forward.18
= control target key start
LH: loop header
LB: loop body
LE: loop exit
PB: predicated region body
PF: predicated region fallthrough
CT: control target
= control target key end

     0   :  { %v1521_v11 = vmov 128.0   ;;  %s2456_s0 = inlined_call_operand.vmem [shape: bf16[64,128], index: 0, kind: input, shape index: {}]   ;;  %s2457_s3 = inlined_call_operand.vmem [shape: f32[1,128], index: 3, kind: input, shape index: {}]   ;;  %s2458_s4 = inlined_call_operand.vmem [shape: f32[1,128], index: 4, kind: input, shape index: {}]   ;;  %s2459_s1 = inlined_call_operand.vmem [shape: bf16[128,512], index: 1, kind: input, shape index: {}]   ;;  %s2460_s2 = inlined_call_operand.vmem [shape: f32[1,512], index: 2, kind: input, shape index: {}]   ;;  %s2461_s5 = inlined_call_operand.vmem [shape: bf16[64,512], index: 5, kind: output, shape index: {}]  }
   0x1   :  { %v1370_v0 = vld [vmem:[%s2456_s0 + $0x10] sm:$0xff]   ;;  %v1369_v1 = vld [vmem:[%s2456_s0 + $0x8] sm:$0xff]   ;;  %v1354_v2 = vld [vmem:[%s2456_s0] sm:$0xff]   ;;  %1375 = vrcp.f32 %v1521_v11 }
   0x2   :  { %v1363_v3 = vunpack.c.l.bf16 %v1370_v0  ;;  %v1359_v4 = vunpack.c.l.bf16 %v1369_v1  ;;  %v1355_v5 = vunpack.c.l.bf16 %v1354_v2  ;;  %v1364_v6 = vunpack.c.h.bf16 %v1370_v0  ;;  %v1564_v9 = vld [vmem:[%s2456_s0 + $0x18] sm:$0xff]   ;;  %v1307_v47 = vld [vmem:[%s2459_s1 + $0xe0] sm:$0xf]  ;;  %v1351_v48 = vld [vmem:[%s2459_s1 + $0xec] sm:$0xf0] }
   0x3   :  { %v1360_v7 = vunpack.c.h.bf16 %v1369_v1  ;;  %v1356_v8 = vunpack.c.h.bf16 %v1354_v2  ;;  %v1367_v10 = vunpack.c.l.bf16 %v1564_v9  ;;  %v1368_v33 = vunpack.c.h.bf16 %v1564_v9  ;;  %v1349_v49 = vld [vmem:[%s2459_s1 + $0xe4] sm:$0xf]  ;;  %v1309_v51 = vld [vmem:[%s2459_s1 + $0xf0] sm:$0xf0]  ;;  %v1315_v52 = vld [vmem:[%s2459_s1 + $0xe8] sm:$0xf] }
   0x4   :  { %44 = vadd.xlane.f32.xlu2 %v1363_v3  ;;  %40 = vadd.xlane.f32.xlu1 %v1359_v4  ;;  %v1308_v50 = vor.u32 %v1351_v48, %v1307_v47  ;;  %v1352_v53 = vld [vmem:[%s2459_s1 + $0xf4] sm:$0xf0]  ;;  %v1312_v54 = vor.u32 %v1349_v49, %v1309_v51  ;;  %v1350_v56 = vld [vmem:[%s2459_s1 + $0xec] sm:$0xf]  ;;  %v1317_v57 = vld [vmem:[%s2459_s1 + $0xf8] sm:$0xf0] }
   0x5   :  { %36 = vadd.xlane.f32.xlu0 %v1355_v5  ;;  %v1316_v55 = vor.u32 %v1352_v53, %v1315_v52  ;;  %v1320_v58 = vor.u32 %v1350_v56, %v1317_v57  ;;  %v1291_v59 = vld [vmem:[%s2459_s1 + $0xc0] sm:$0xf]  ;;  %v1347_v60 = vld [vmem:[%s2459_s1 + $0xcc] sm:$0xf0]  ;;  %v1345_v61 = vld [vmem:[%s2459_s1 + $0xc4] sm:$0xf] }
   0x6   :  { %433 = vmatpush.bf16.msra.mxu0 %v1308_v50  ;;  %462 = vmatpush.bf16.msra.mxu1 %v1312_v54  ;;  %v1292_v62 = vor.u32 %v1347_v60, %v1291_v59  ;;  %v1293_v63 = vld [vmem:[%s2459_s1 + $0xd0] sm:$0xf0]  ;;  %v1299_v0 = vld [vmem:[%s2459_s1 + $0xc8] sm:$0xf]  ;;  %v1348_v1 = vld [vmem:[%s2459_s1 + $0xd4] sm:$0xf0] }
   0x7   :  { %v1376_v12 = vpop.eup %1375  ;;  %491 = vmatpush.bf16.msra.mxu2 %v1316_v55  ;;  %520 = vmatpush.bf16.msra.mxu3 %v1320_v58  ;;  %v1296_v2 = vor.u32 %v1345_v61, %v1293_v63  ;;  %v1336_v47 = vld [vmem:[%s2459_s1 + $0x74] sm:$0xf0]  ;;  %v1334_v50 = vld [vmem:[%s2459_s1 + $0x6c] sm:$0xf]  ;;  %v1253_v51 = vld [vmem:[%s2459_s1 + $0x78] sm:$0xf0] }
   0x8   :  { %v53_v13 = vmul.f32 128.0, %v1376_v12  ;;  %vm57_vm0 = vweird.f32 %v1376_v12  ;;  %v1256_v52 = vor.u32 %v1334_v50, %v1253_v51  ;;  %v1227_v53 = vld [vmem:[%s2459_s1 + $0x40] sm:$0xf]  ;;  %v1331_v54 = vld [vmem:[%s2459_s1 + $0x4c] sm:$0xf0] }
   0x9   :  { %v1329_v55 = vld [vmem:[%s2459_s1 + $0x44] sm:$0xf]  ;;  %v1228_v56 = vor.u32 %v1331_v54, %v1227_v53  ;;  %v1229_v57 = vld [vmem:[%s2459_s1 + $0x50] sm:$0xf0]  ;;  %v1235_v58 = vld [vmem:[%s2459_s1 + $0x48] sm:$0xf] }
   0xa   :  { %v54_v14 = vsub.f32 1.0, %v53_v13  ;;  %434 = vmatpush.bf16.msra.mxu0 %v1292_v62  ;;  %463 = vmatpush.bf16.msra.mxu1 %v1296_v2  ;;  %v1283_v13 = vld [vmem:[%s2459_s1 + $0xa8] sm:$0xf]  ;;  %v1332_v59 = vld [vmem:[%s2459_s1 + $0x54] sm:$0xf0]  ;;  %v1232_v60 = vor.u32 %v1329_v55, %v1229_v57 }
   0xb   :  { %v1236_v61 = vor.u32 %v1332_v59, %v1235_v58  ;;  %v1330_v62 = vld [vmem:[%s2459_s1 + $0x4c] sm:$0xf]  ;;  %v1237_v63 = vld [vmem:[%s2459_s1 + $0x58] sm:$0xf0]  ;;  %v1327_v2 = vld [vmem:[%s2459_s1 + $0x2c] sm:$0xf0] }
   0xc   :  { %46 = vadd.xlane.f32.xlu2 %v1364_v6  ;;  %42 = vadd.xlane.f32.xlu1 %v1360_v7  ;;  %v55_v15 = vmul.f32 %v1376_v12, %v54_v14  ;;  %v1344_v14 = vld [vmem:[%s2459_s1 + $0xb4] sm:$0xf0] }
   0xd   :  { %38 = vadd.xlane.f32.xlu0 %v1356_v8 }
   0xe   :  { %v56_v16 = vadd.f32 %v1376_v12, %v55_v15 }
  0x10   :  { %v1567_v17 = vsel %vm57_vm0, %v1376_v12, %v56_v16  ;;  %v1277_v12 = vld [vmem:[%s2459_s1 + $0xb0] sm:$0xf0]  ;;  %v1284_v16 = vor.u32 %v1344_v14, %v1283_v13  ;;  %v1221_v13 = vld [vmem:[%s2459_s1 + $0x38] sm:$0xf0] }
  0x14   :  { %48 = vadd.xlane.f32.xlu2 %v1367_v10 }
  0x77   :  { %v45_v18 = vpop.xlane.xlu2 %44  ;;  %v41_v19 = vpop.xlane.xlu1 %40 }
  0x78   :  { %v37_v20 = vpop.xlane.xlu0 %36  ;;  %v63_v30 = vmul.f32 %v1567_v17, %v45_v18  ;;  %v61_v31 = vmul.f32 %v1567_v17, %v41_v19  ;;  %v1342_v18 = vld [vmem:[%s2459_s1 + $0xac] sm:$0xf]  ;;  %v1285_v19 = vld [vmem:[%s2459_s1 + $0xb8] sm:$0xf0] }
  0x79   :  { %v59_v21 = vmul.f32 %v1567_v17, %v37_v20  ;;  %v1288_v20 = vor.u32 %v1342_v18, %v1285_v19  ;;  %v1323_v18 = vld [vmem:[%s2459_s1 + $0xc] sm:$0xf0]  ;;  %v1321_v19 = vld [vmem:[%s2459_s1 + $0x4] sm:$0xf] }
  0x7a   :  { %v1587_v36 = vsub.f32 %v1363_v3, %v63_v30  ;;  %v1589_v37 = vsub.f32 %v1359_v4, %v61_v31  ;;  %v1300_v3 = vor.u32 %v1348_v1, %v1299_v0  ;;  %v1346_v4 = vld [vmem:[%s2459_s1 + $0xcc] sm:$0xf]  ;;  %v1240_v0 = vor.u32 %v1330_v62, %v1237_v63  ;;  %v1211_v1 = vld [vmem:[%s2459_s1 + $0x20] sm:$0xf] }
  0x7b   :  { %v1570_v22 = vsub.f32 %v1355_v5, %v59_v21  ;;  %v1301_v5 = vld [vmem:[%s2459_s1 + $0xd8] sm:$0xf0]  ;;  %v1259_v21 = vld [vmem:[%s2459_s1 + $0x80] sm:$0xf] }
  0x7c   :  { %v79_v42 = vmul.f32 %v1587_v36, %v1587_v36  ;;  %v77_v43 = vmul.f32 %v1589_v37, %v1589_v37  ;;  %492 = vmatpush.bf16.msra.mxu2 %v1300_v3  ;;  %v1325_v3 = vld [vmem:[%s2459_s1 + $0x24] sm:$0xf] }
  0x7d   :  { %v75_v23 = vmul.f32 %v1570_v22, %v1570_v22 }
  0x7f   :  { %83 = vadd.xlane.f32.xlu0 %v75_v23  ;;  %v47_v24 = vpop.xlane.xlu2 %46  ;;  %v43_v25 = vpop.xlane.xlu1 %42  ;;  %v1339_v23 = vld [vmem:[%s2459_s1 + $0x8c] sm:$0xf0] }
  0x80   :  { %v62_v26 = vmul.f32 %v1567_v17, %v43_v25  ;;  %v39_v27 = vpop.xlane.xlu0 %38  ;;  %v64_v41 = vmul.f32 %v1567_v17, %v47_v24  ;;  %493 = vmatpush.bf16.msra.mxu2 %v1284_v16  ;;  %v1337_v24 = vld [vmem:[%s2459_s1 + $0x84] sm:$0xf]  ;;  %v1260_v25 = vor.u32 %v1339_v23, %v1259_v21  ;;  %v1195_v16 = vld [vmem:[%s2459_s1] sm:$0xf]  ;;  %v1197_v23 = vld [vmem:[%s2459_s1 + $0x10] sm:$0xf0] }
  0x81   :  { %v60_v28 = vmul.f32 %v1567_v17, %v39_v27  ;;  %v1267_v27 = vld [vmem:[%s2459_s1 + $0x88] sm:$0xf]  ;;  %v1196_v21 = vor.u32 %v1323_v18, %v1195_v16 }
  0x82   :  { %v1576_v29 = vsub.f32 %v1360_v7, %v62_v26  ;;  %v1603_v45 = vsub.f32 %v1364_v6, %v64_v41  ;;  %v1304_v6 = vor.u32 %v1346_v4, %v1301_v5  ;;  %v1275_v7 = vld [vmem:[%s2459_s1 + $0xa0] sm:$0xf]  ;;  %v1261_v26 = vld [vmem:[%s2459_s1 + $0x90] sm:$0xf0]  ;;  %v1335_v41 = vld [vmem:[%s2459_s1 + $0x6c] sm:$0xf0]  ;;  %v1212_v4 = vor.u32 %v1327_v2, %v1211_v1 }
  0x83   :  { %v1580_v32 = vsub.f32 %v1356_v8, %v60_v28  ;;  %v1343_v8 = vld [vmem:[%s2459_s1 + $0xac] sm:$0xf0]  ;;  %v1340_v28 = vld [vmem:[%s2459_s1 + $0x94] sm:$0xf0]  ;;  %v1264_v30 = vor.u32 %v1337_v24, %v1261_v26  ;;  %v1213_v5 = vld [vmem:[%s2459_s1 + $0x30] sm:$0xf0] }
  0x84   :  { %v78_v34 = vmul.f32 %v1576_v29, %v1576_v29  ;;  %v80_v46 = vmul.f32 %v1603_v45, %v1603_v45  ;;  %521 = vmatpush.bf16.msra.mxu3 %v1304_v6  ;;  %v1276_v11 = vor.u32 %v1343_v8, %v1275_v7  ;;  %v1268_v31 = vor.u32 %v1340_v28, %v1267_v27  ;;  %v1219_v6 = vld [vmem:[%s2459_s1 + $0x28] sm:$0xf]  ;;  %v1328_v7 = vld [vmem:[%s2459_s1 + $0x34] sm:$0xf0]  ;;  %v1322_v27 = vld [vmem:[%s2459_s1 + $0xc] sm:$0xf] }
  0x85   :  { %v76_v35 = vmul.f32 %v1580_v32, %v1580_v32  ;;  %v1203_v24 = vld [vmem:[%s2459_s1 + $0x8] sm:$0xf]  ;;  %v1324_v26 = vld [vmem:[%s2459_s1 + $0x14] sm:$0xf0]  ;;  %v1205_v28 = vld [vmem:[%s2459_s1 + $0x18] sm:$0xf0] }
  0x86   :  { %89 = vadd.xlane.f32.xlu2 %v78_v34  ;;  %435 = vmatpush.bf16.msra.mxu0 %v1276_v11  ;;  %v1338_v34 = vld [vmem:[%s2459_s1 + $0x8c] sm:$0xf]  ;;  %v1220_v11 = vor.u32 %v1328_v7, %v1219_v6 }
  0x87   :  { %50 = vadd.xlane.f32.xlu0 %v1368_v33  ;;  %85 = vadd.xlane.f32.xlu1 %v76_v35  ;;  %v49_v38 = vpop.xlane.xlu2 %48  ;;  %v1269_v35 = vld [vmem:[%s2459_s1 + $0x98] sm:$0xf0] }
  0x88   :  { %v65_v39 = vmul.f32 %v1567_v17, %v49_v38  ;;  %522 = vmatpush.bf16.msra.mxu3 %v1288_v20  ;;  %v1272_v38 = vor.u32 %v1338_v34, %v1269_v35  ;;  %494 = vmatpush.bf16.msra.mxu2 %v1268_v31  ;;  %v1208_v31 = vor.u32 %v1322_v27, %v1205_v28 }
  0x8a   :  { %v1594_v40 = vsub.f32 %v1367_v10, %v65_v39  ;;  %v1341_v10 = vld [vmem:[%s2459_s1 + $0xa4] sm:$0xf]  ;;  %436 = vmatpush.bf16.msra.mxu0 %v1260_v25  ;;  %v1243_v39 = vld [vmem:[%s2459_s1 + $0x60] sm:$0xf]  ;;  %v1200_v25 = vor.u32 %v1321_v19, %v1197_v23 }
  0x8b   :  { %v1280_v15 = vor.u32 %v1341_v10, %v1277_v12  ;;  %v1216_v10 = vor.u32 %v1325_v3, %v1213_v5  ;;  %v1326_v12 = vld [vmem:[%s2459_s1 + $0x2c] sm:$0xf] }
  0x8c   :  { %v81_v44 = vmul.f32 %v1594_v40, %v1594_v40  ;;  %523 = vmatpush.bf16.msra.mxu3 %v1272_v38 }
  0x8d   :  { %464 = vmatpush.bf16.msra.mxu1 %v1280_v15  ;;  %v1224_v15 = vor.u32 %v1326_v12, %v1221_v13 }
  0x8e   :  { %95 = vadd.xlane.f32.xlu2 %v81_v44  ;;  %v1245_v44 = vld [vmem:[%s2459_s1 + $0x70] sm:$0xf0] }
  0x8f   :  { %91 = vadd.xlane.f32.xlu0 %v79_v42  ;;  %87 = vadd.xlane.f32.xlu1 %v77_v43  ;;  %v1333_v42 = vld [vmem:[%s2459_s1 + $0x64] sm:$0xf]  ;;  %v1244_v43 = vor.u32 %v1335_v41, %v1243_v39 }
  0x90   :  { %v1248_v48 = vor.u32 %v1333_v42, %v1245_v44  ;;  %524 = vmatpush.bf16.msra.mxu3 %v1256_v52 }
  0x91   :  { %465 = vmatpush.bf16.msra.mxu1 %v1264_v30  ;;  %437 = vmatpush.bf16.msra.mxu0 %v1244_v43  ;;  %v1204_v30 = vor.u32 %v1324_v26, %v1203_v24 }
  0x94   :  { %525 = vmatpush.bf16.msra.mxu3 %v1240_v0 }
  0x95   :  { %466 = vmatpush.bf16.msra.mxu1 %v1248_v48  ;;  %438 = vmatpush.bf16.msra.mxu0 %v1228_v56 }
  0x97   :  { %93 = vadd.xlane.f32.xlu1 %v80_v46  ;;  %v1251_v46 = vld [vmem:[%s2459_s1 + $0x68] sm:$0xf] }
  0x98   :  { %v1252_v49 = vor.u32 %v1336_v47, %v1251_v46  ;;  %526 = vmatpush.bf16.msra.mxu3 %v1224_v15 }
  0x99   :  { %467 = vmatpush.bf16.msra.mxu1 %v1232_v60  ;;  %439 = vmatpush.bf16.msra.mxu0 %v1212_v4 }
  0x9a   :  { %495 = vmatpush.bf16.msra.mxu2 %v1252_v49 }
  0x9c   :  { %527 = vmatpush.bf16.msra.mxu3 %v1208_v31 }
  0x9d   :  { %468 = vmatpush.bf16.msra.mxu1 %v1216_v10  ;;  %440 = vmatpush.bf16.msra.mxu0 %v1196_v21 }
  0x9e   :  { %496 = vmatpush.bf16.msra.mxu2 %v1236_v61 }
  0xa1   :  { %469 = vmatpush.bf16.msra.mxu1 %v1200_v25 }
  0xa2   :  { %497 = vmatpush.bf16.msra.mxu2 %v1220_v11  ;;  %v1827_v11 = vld [vmem:[%s2457_s3] ss:$0 sm:$0xff] }
  0xa6   :  { %498 = vmatpush.bf16.msra.mxu2 %v1204_v30 }
  0xf2   :  { %v84_v8 = vpop.xlane.xlu0 %83 }
  0xf3   :  { %v99_v14 = vmul.f32 %v84_v8, %v1567_v17 }
  0xf5   :  { %v107_v20 = vadd.f32 1e-05, %v99_v14 }
  0xf7   :  { %1377 = vrsqrt.f32 %v107_v20  ;;  %vm121_vm2 = vweird.f32 %v107_v20 }
  0xf9   :  { %v90_v34 = vpop.xlane.xlu2 %89 }
  0xfa   :  { %v102_v35 = vmul.f32 %v90_v34, %v1567_v17  ;;  %v86_v38 = vpop.xlane.xlu1 %85  ;;  %v51_v39 = vpop.xlane.xlu0 %50 }
  0xfb   :  { %v100_v41 = vmul.f32 %v86_v38, %v1567_v17  ;;  %v66_v42 = vmul.f32 %v1567_v17, %v51_v39 }
  0xfc   :  { %v1803_v43 = vadd.f32 1e-05, %v102_v35 }
  0xfd   :  { %v1378_v44 = vpop.eup %1377  ;;  %v108_v46 = vadd.f32 1e-05, %v100_v41  ;;  %v1807_v47 = vsub.f32 %v1368_v33, %v66_v42 }
  0xfe   :  { %v116_v48 = vmul.f32 %v1378_v44, %v107_v20  ;;  %1379 = vrsqrt.f32 %v1803_v43  ;;  %vm122_vm1 = vweird.f32 %v1378_v44  ;;  %vm151_vm9 = vweird.f32 %v1803_v43 }
  0xff   :  { %1381 = vrsqrt.f32 %v108_v46  ;;  %v82_v49 = vmul.f32 %v1807_v47, %v1807_v47  ;;  %vm123_vm3 = vmor %vm121_vm2, %vm122_vm1  ;;  %vm131_vm4 = vweird.f32 %v108_v46 }
 0x100   :  { %v117_v50 = vmul.f32 %v1378_v44, %v116_v48 }
 0x101   :  { %97 = vadd.xlane.f32.xlu0 %v82_v49 }
 0x102   :  { %v118_v51 = vmul.f32 0.5, %v117_v50  ;;  %v88_v52 = vpop.xlane.xlu1 %87  ;;  %v92_v54 = vpop.xlane.xlu0 %91 }
 0x103   :  { %v101_v53 = vmul.f32 %v88_v52, %v1567_v17  ;;  %v103_v58 = vmul.f32 %v92_v54, %v1567_v17 }
 0x104   :  { %v1813_v55 = vpop.eup %1379  ;;  %v119_v56 = vsub.f32 1.5, %v118_v51 }
 0x105   :  { %v1382_v9 = vpop.eup %1381  ;;  %v109_v33 = vadd.f32 1e-05, %v101_v53  ;;  %v146_v60 = vmul.f32 %v1813_v55, %v1803_v43  ;;  %v1818_v63 = vadd.f32 1e-05, %v103_v58  ;;  %vm152_vm10 = vweird.f32 %v1813_v55 }
 0x106   :  { %v126_v57 = vmul.f32 %v1382_v9, %v108_v46  ;;  %v120_v59 = vmul.f32 %v1378_v44, %v119_v56  ;;  %vm132_vm5 = vweird.f32 %v1382_v9  ;;  %vm153_vm12 = vmor %vm151_vm9, %vm152_vm10 }
 0x107   :  { %1383 = vrsqrt.f32 %v109_v33  ;;  %v147_v2 = vmul.f32 %v1813_v55, %v146_v60  ;;  %vm133_vm6 = vmor %vm131_vm4, %vm132_vm5  ;;  %vm141_vm7 = vweird.f32 %v109_v33  ;;  %vm161_vm15 = vweird.f32 %v1818_v63 }
 0x108   :  { %v127_v61 = vmul.f32 %v1382_v9, %v126_v57  ;;  %v124_v1 = vsel %vm123_vm3, %v1378_v44, %v120_v59  ;;  %1385 = vrsqrt.f32 %v1818_v63 }
 0x109   :  { %v195_v7 = vmul.f32 %v124_v1, %v1570_v22  ;;  %v148_v12 = vmul.f32 0.5, %v147_v2  ;;  %v1834_v22 = vld [vmem:[%s2458_s4] ss:$0 sm:$0xff] }
 0x10a   :  { %v128_v62 = vmul.f32 0.5, %v127_v61  ;;  %v94_v0 = vpop.xlane.xlu1 %93  ;;  %v96_v61 = vpop.xlane.xlu2 %95 }
 0x10b   :  { %v104_v3 = vmul.f32 %v94_v0, %v1567_v17  ;;  %v207_v18 = vmul.f32 %v1827_v11, %v195_v7  ;;  %v149_v19 = vsub.f32 1.5, %v148_v12 }
 0x10c   :  { %v129_v4 = vsub.f32 1.5, %v128_v62  ;;  %v105_v62 = vmul.f32 %v96_v61, %v1567_v17 }
 0x10d   :  { %v1384_v5 = vpop.eup %1383  ;;  %v112_v6 = vadd.f32 1e-05, %v104_v3  ;;  %v219_v26 = vadd.f32 %v1834_v22, %v207_v18  ;;  %v150_v27 = vmul.f32 %v1813_v55, %v149_v19 }
 0x10e   :  { %v130_v8 = vmul.f32 %v1382_v9, %v129_v4  ;;  %v136_v10 = vmul.f32 %v1384_v5, %v109_v33  ;;  %vm142_vm8 = vweird.f32 %v1384_v5  ;;  %v1386_v21 = vpop.eup %1385 }
 0x10f   :  { %1387 = vrsqrt.f32 %v112_v6  ;;  %vm143_vm11 = vmor %vm141_vm7, %vm142_vm8  ;;  %v156_v28 = vmul.f32 %v1386_v21, %v1818_v63  ;;  %v154_v38 = vsel %vm153_vm12, %v1813_v55, %v150_v27  ;;  %vm171_vm13 = vweird.f32 %v112_v6 }
 0x110   :  { %v134_v13 = vsel %vm133_vm6, %v1382_v9, %v130_v8  ;;  %v137_v14 = vmul.f32 %v1384_v5, %v136_v10  ;;  %v198_v43 = vmul.f32 %v154_v38, %v1576_v29  ;;  %vm162_vm0 = vweird.f32 %v1386_v21 }
 0x111   :  { %v196_v15 = vmul.f32 %v134_v13, %v1580_v32  ;;  %v157_v39 = vmul.f32 %v1386_v21, %v156_v28  ;;  %vm163_vm2 = vmor %vm161_vm15, %vm162_vm0  ;;  %v113_v63 = vadd.f32 1e-05, %v105_v62 }
 0x112   :  { %v138_v16 = vmul.f32 0.5, %v137_v14  ;;  %v210_v49 = vmul.f32 %v1827_v11, %v198_v43 }
 0x113   :  { %v208_v20 = vmul.f32 %v1827_v11, %v196_v15  ;;  %v158_v44 = vmul.f32 0.5, %v157_v39  ;;  %1389 = vrsqrt.f32 %v113_v63  ;;  %vm181_vm3 = vweird.f32 %v113_v63 }
 0x114   :  { %v139_v23 = vsub.f32 1.5, %v138_v16 }
 0x115   :  { %v220_v32 = vadd.f32 %v1834_v22, %v208_v20  ;;  %v1388_v24 = vpop.eup %1387  ;;  %v159_v50 = vsub.f32 1.5, %v158_v44 }
 0x116   :  { %v140_v25 = vmul.f32 %v1384_v5, %v139_v23  ;;  %v166_v30 = vmul.f32 %v1388_v24, %v112_v6  ;;  %vm172_vm14 = vweird.f32 %v1388_v24 }
 0x117   :  { %v227_v31 = vpack.c.bf16 %v220_v32, %v219_v26  ;;  %vm173_vm1 = vmor %vm171_vm13, %vm172_vm14  ;;  %v160_v53 = vmul.f32 %v1386_v21, %v159_v50 }
 0x118   :  { %v144_v34 = vsel %vm143_vm11, %v1384_v5, %v140_v25  ;;  %v167_v35 = vmul.f32 %v1388_v24, %v166_v30 }
 0x119   :  { %441 = vmatmul.bf16.vlgmr.msra.gmra.mxu0 %v227_v31  ;;  %470 = vmatmul.bf16.vlgmr.msra.gmra.mxu1 %v227_v31  ;;  %v197_v41 = vmul.f32 %v144_v34, %v1589_v37  ;;  %v222_v37 = vadd.f32 %v1834_v22, %v210_v49  ;;  %v164_v55 = vsel %vm163_vm2, %v1386_v21, %v160_v53 }
 0x11a   :  { %499 = vmatmul.bf16.vlgmr.msra.gmra.mxu2 %v227_v31  ;;  %528 = vmatmul.bf16.vlgmr.msra.gmra.mxu3 %v227_v31  ;;  %v168_v42 = vmul.f32 0.5, %v167_v35  ;;  %v199_v9 = vmul.f32 %v164_v55, %v1587_v36 }
 0x11b   :  { %v209_v46 = vmul.f32 %v1827_v11, %v197_v41 }
 0x11c   :  { %v169_v48 = vsub.f32 1.5, %v168_v42  ;;  %v211_v57 = vmul.f32 %v1827_v11, %v199_v9 }
 0x11d   :  { %v221_v51 = vadd.f32 %v1834_v22, %v209_v46 }
 0x11e   :  { %v170_v52 = vmul.f32 %v1388_v24, %v169_v48  ;;  %v223_v59 = vadd.f32 %v1834_v22, %v211_v57 }
 0x11f   :  { %v228_v29 = vpack.c.bf16 %v222_v37, %v221_v51 }
 0x120   :  { %v174_v54 = vsel %vm173_vm1, %v1388_v24, %v170_v52  ;;  %v263_v24 = vld [vmem:[%s2460_s2] sm:$0xf] }
 0x121   :  { %v200_v56 = vmul.f32 %v174_v54, %v1603_v45  ;;  %v1390_v45 = vpop.eup %1389  ;;  %v1880_v30 = vperm.slane %v263_v24, 2  ;;  %v1882_v31 = vperm.slane %v263_v24, 3 }
 0x122   :  { %v176_v36 = vmul.f32 %v1390_v45, %v113_v63  ;;  %vm182_vm4 = vweird.f32 %v1390_v45 }
 0x123   :  { %v212_v33 = vmul.f32 %v1827_v11, %v200_v56  ;;  %vm183_vm5 = vmor %vm181_vm3, %vm182_vm4 }
 0x124   :  { %v177_v0 = vmul.f32 %v1390_v45, %v176_v36 }
 0x125   :  { %v224_v58 = vadd.f32 %v1834_v22, %v212_v33 }
 0x126   :  { %v178_v4 = vmul.f32 0.5, %v177_v0 }
 0x127   :  { %v229_v60 = vpack.c.bf16 %v224_v58, %v223_v59 }
 0x128   :  { %v179_v5 = vsub.f32 1.5, %v178_v4 }
 0x129   :  { %446 = vmatmul.bf16.gmra.mxu0 %v228_v29  ;;  %475 = vmatmul.bf16.gmra.mxu1 %v228_v29 }
 0x12a   :  { %504 = vmatmul.bf16.gmra.mxu2 %v228_v29  ;;  %533 = vmatmul.bf16.gmra.mxu3 %v228_v29  ;;  %v180_v7 = vmul.f32 %v1390_v45, %v179_v5 }
 0x12c   :  { %v184_v12 = vsel %vm183_vm5, %v1390_v45, %v180_v7 }
 0x12d   :  { %v201_v15 = vmul.f32 %v184_v12, %v1594_v40  ;;  %v1868_v40 = vperm.slane %v263_v24, 0 }
 0x12f   :  { %v213_v19 = vmul.f32 %v1827_v11, %v201_v15 }
 0x131   :  { %v225_v21 = vadd.f32 %v1834_v22, %v213_v19 }
 0x139   :  { %451 = vmatmul.bf16.gmra.mxu0 %v229_v60  ;;  %480 = vmatmul.bf16.gmra.mxu1 %v229_v60 }
 0x13a   :  { %509 = vmatmul.bf16.gmra.mxu2 %v229_v60  ;;  %538 = vmatmul.bf16.gmra.mxu3 %v229_v60 }
 0x174   :  { %v98_v1 = vpop.xlane.xlu0 %97 }
 0x175   :  { %v106_v2 = vmul.f32 %v98_v1, %v1567_v17 }
 0x177   :  { %v114_v3 = vadd.f32 1e-05, %v106_v2 }
 0x179   :  { %1391 = vrsqrt.f32 %v114_v3  ;;  %vm191_vm7 = vweird.f32 %v114_v3 }
 0x17f   :  { %v1392_v6 = vpop.eup %1391 }
 0x180   :  { %v186_v8 = vmul.f32 %v1392_v6, %v114_v3  ;;  %vm192_vm6 = vweird.f32 %v1392_v6 }
 0x181   :  { %vm193_vm8 = vmor %vm191_vm7, %vm192_vm6 }
 0x182   :  { %v187_v10 = vmul.f32 %v1392_v6, %v186_v8 }
 0x184   :  { %v188_v13 = vmul.f32 0.5, %v187_v10 }
 0x186   :  { %v189_v14 = vsub.f32 1.5, %v188_v13 }
 0x188   :  { %v190_v16 = vmul.f32 %v1392_v6, %v189_v14 }
 0x18a   :  { %v194_v17 = vsel %vm193_vm8, %v1392_v6, %v190_v16 }
 0x18b   :  { %v202_v18 = vmul.f32 %v194_v17, %v1807_v47  ;;  %v1870_v47 = vperm.slane %v263_v24, 1 }
 0x18d   :  { %v214_v20 = vmul.f32 %v1827_v11, %v202_v18 }
 0x18f   :  { %v226_v23 = vadd.f32 %v1834_v22, %v214_v20 }
 0x191   :  { %v230_v32 = vpack.c.bf16 %v226_v23, %v225_v21 }
 0x193   :  { %456 = vmatmul.bf16.gmra.mxu0 %v230_v32  ;;  %485 = vmatmul.bf16.gmra.mxu1 %v230_v32 }
 0x194   :  { %514 = vmatmul.bf16.gmra.mxu2 %v230_v32  ;;  %543 = vmatmul.bf16.gmra.mxu3 %v230_v32 }
 0x196   :  { %v442_v25 = vpop.f32.mrf.mxu0  ;;  %v471_v26 = vpop.f32.mrf.mxu1 }
 0x197   :  { %v1873_v11 = vadd.f32 %v442_v25, %v1868_v40  ;;  %v1876_v22 = vadd.f32 %v471_v26, %v1870_v47 }
 0x199   :  { %v549_v27 = vmul.f32 -1.702, %v1873_v11  ;;  %v550_v28 = vmul.f32 -1.702, %v1876_v22 }
 0x19b   :  { %v581_v34 = vmul.f32 1.442695, %v549_v27  ;;  %v583_v35 = vmul.f32 1.442695, %v550_v28 }
 0x19d   :  { %1393 = vpow2.f32 %v581_v34  ;;  %v500_v38 = vpop.f32.mrf.mxu2  ;;  %v529_v39 = vpop.f32.mrf.mxu3 }
 0x19e   :  { %1395 = vpow2.f32 %v583_v35  ;;  %v1885_v41 = vadd.f32 %v500_v38, %v1880_v30  ;;  %v1888_v42 = vadd.f32 %v529_v39, %v1882_v31  ;;  %v444_v43 = vpop.f32.mrf.mxu0  ;;  %v473_v44 = vpop.f32.mrf.mxu1 }
 0x19f   :  { %v1891_v46 = vadd.f32 %v444_v43, %v1868_v40  ;;  %v1894_v48 = vadd.f32 %v473_v44, %v1870_v47 }
 0x1a0   :  { %v551_v49 = vmul.f32 -1.702, %v1885_v41  ;;  %v552_v50 = vmul.f32 -1.702, %v1888_v42 }
 0x1a1   :  { %v553_v51 = vmul.f32 -1.702, %v1891_v46  ;;  %v554_v52 = vmul.f32 -1.702, %v1894_v48 }
 0x1a2   :  { %v585_v37 = vmul.f32 1.442695, %v551_v49  ;;  %v587_v53 = vmul.f32 1.442695, %v552_v50 }
 0x1a3   :  { %v1394_v29 = vpop.eup %1393  ;;  %v589_v56 = vmul.f32 1.442695, %v553_v51  ;;  %v591_v33 = vmul.f32 1.442695, %v554_v52 }
 0x1a4   :  { %v1396_v54 = vpop.eup %1395  ;;  %v645_v55 = vadd.f32 1.0, %v1394_v29  ;;  %1397 = vpow2.f32 %v585_v37 }
 0x1a5   :  { %v1900_v9 = vadd.f32 1.0, %v1396_v54  ;;  %1399 = vpow2.f32 %v587_v53  ;;  %v502_v57 = vpop.f32.mrf.mxu2  ;;  %v531_v59 = vpop.f32.mrf.mxu3 }
 0x1a6   :  { %1401 = vrcp.f32 %v645_v55  ;;  %v1904_v58 = vadd.f32 %v502_v57, %v1880_v30  ;;  %v686_v60 = vand.u32 2147483647, %v645_v55  ;;  %v688_v61 = vand.u32 2147483648, %v645_v55  ;;  %v447_v62 = vpop.f32.mrf.mxu0  ;;  %v476_v7 = vpop.f32.mrf.mxu1 }
 0x1a7   :  { %1403 = vrcp.f32 %v1900_v9  ;;  %v701_v45 = vand.u32 2147483647, %v1900_v9  ;;  %v703_v36 = vand.u32 2147483648, %v1900_v9  ;;  %v1912_v3 = vadd.f32 %v531_v59, %v1882_v31 }
 0x1a8   :  { %1405 = vpow2.f32 %v589_v56  ;;  %v555_v0 = vmul.f32 -1.702, %v1904_v58  ;;  %vm682_vm9 = vweird.f32 %v645_v55  ;;  %vm697_vm10 = vweird.f32 %v1900_v9 }
 0x1a9   :  { %1407 = vpow2.f32 %v591_v33  ;;  %v1918_v6 = vadd.f32 %v447_v62, %v1868_v40  ;;  %vm1920_vm11 = vcmp.eq.f32.partialorder %v686_v60, 8.507059e+37  ;;  %v689_v13 = vor.u32 1.1754944e-38, %v688_v61 }
 0x1aa   :  { %v1398_v63 = vpop.eup %1397  ;;  %vm1926_vm12 = vcmp.eq.f32.partialorder %v701_v45, 8.507059e+37  ;;  %v704_v17 = vor.u32 1.1754944e-38, %v703_v36  ;;  %v593_v18 = vmul.f32 1.442695, %v555_v0  ;;  %v556_v21 = vmul.f32 -1.702, %v1912_v3 }
 0x1ab   :  { %v1400_v1 = vpop.eup %1399  ;;  %v1909_v2 = vadd.f32 1.0, %v1398_v63  ;;  %v1933_v23 = vadd.f32 %v476_v7, %v1870_v47  ;;  %v557_v25 = vmul.f32 -1.702, %v1918_v6 }
 0x1ac   :  { %v1402_v4 = vpop.eup %1401  ;;  %v1915_v5 = vadd.f32 1.0, %v1400_v1  ;;  %v595_v29 = vmul.f32 1.442695, %v556_v21 }
 0x1ad   :  { %v1404_v8 = vpop.eup %1403  ;;  %v678_v10 = vmul.f32 %v1402_v4, %v645_v55  ;;  %1409 = vrcp.f32 %v1909_v2  ;;  %vm683_vm13 = vweird.f32 %v1402_v4  ;;  %v716_v24 = vand.u32 2147483647, %v1909_v2 }
 0x1ae   :  { %v1406_v14 = vpop.eup %1405  ;;  %v693_v15 = vmul.f32 %v1404_v8, %v1900_v9  ;;  %1411 = vrcp.f32 %v1915_v5  ;;  %v718_v27 = vand.u32 2147483648, %v1909_v2  ;;  %vm698_vm14 = vweird.f32 %v1404_v8  ;;  %vm684_vm0 = vmor %vm682_vm9, %vm683_vm13 }
 0x1af   :  { %v1408_v19 = vpop.eup %1407  ;;  %v679_v20 = vsub.f32 1.0, %v678_v10  ;;  %v1938_v28 = vadd.f32 1.0, %v1406_v14  ;;  %vm712_vm15 = vweird.f32 %v1909_v2  ;;  %1413 = vpow2.f32 %v593_v18  ;;  %vm699_vm3 = vmor %vm697_vm10, %vm698_vm14 }
 0x1b0   :  { %v694_v32 = vsub.f32 1.0, %v693_v15  ;;  %v1940_v34 = vadd.f32 1.0, %v1408_v19  ;;  %v731_v43 = vand.u32 2147483647, %v1915_v5  ;;  %v733_v44 = vand.u32 2147483648, %v1915_v5 }
 0x1b1   :  { %v680_v26 = vmul.f32 %v1402_v4, %v679_v20  ;;  %1415 = vrcp.f32 %v1938_v28  ;;  %vm1949_vm1 = vcmp.eq.f32.partialorder %v716_v24, 8.507059e+37  ;;  %vm727_vm2 = vweird.f32 %v1915_v5  ;;  %v505_v24 = vpop.f32.mrf.mxu2 }
 0x1b2   :  { %v695_v35 = vmul.f32 %v1404_v8, %v694_v32  ;;  %v719_v53 = vor.u32 1.1754944e-38, %v718_v27  ;;  %1417 = vrcp.f32 %v1940_v34  ;;  %vm1964_vm4 = vcmp.eq.f32.partialorder %v731_v43, 8.507059e+37  ;;  %v534_v43 = vpop.f32.mrf.mxu3 }
 0x1b3   :  { %v1410_v38 = vpop.eup %1409  ;;  %v681_v39 = vadd.f32 %v1402_v4, %v680_v26  ;;  %v734_v9 = vor.u32 1.1754944e-38, %v733_v44  ;;  %v746_v0 = vand.u32 2147483647, %v1938_v28  ;;  %1419 = vpow2.f32 %v595_v29 }
 0x1b4   :  { %v696_v49 = vadd.f32 %v1404_v8, %v695_v35  ;;  %v708_v50 = vmul.f32 %v1410_v38, %v1909_v2  ;;  %v1412_v52 = vpop.eup %1411  ;;  %vm713_vm5 = vweird.f32 %v1410_v38  ;;  %vm742_vm8 = vweird.f32 %v1938_v28 }
 0x1b5   :  { %v685_v37 = vsel %vm684_vm0, %v1402_v4, %v681_v39  ;;  %v723_v33 = vmul.f32 %v1412_v52, %v1915_v5  ;;  %v1414_v61 = vpop.eup %1413  ;;  %vm728_vm6 = vweird.f32 %v1412_v52  ;;  %vm714_vm7 = vmor %vm712_vm15, %vm713_vm5  ;;  %v597_v12 = vmul.f32 1.442695, %v557_v25 }
 0x1b6   :  { %v690_v54 = vsel %vm1920_vm11, %v689_v13, %v685_v37  ;;  %v700_v55 = vsel %vm699_vm3, %v1404_v8, %v696_v49  ;;  %v709_v56 = vsub.f32 1.0, %v708_v50  ;;  %v1970_v1 = vadd.f32 1.0, %v1414_v61  ;;  %vm729_vm9 = vmor %vm727_vm2, %vm728_vm6 }
 0x1b7   :  { %v691_v57 = vmul.f32 %v690_v54, %v1873_v11  ;;  %v705_v59 = vsel %vm1926_vm12, %v704_v17, %v700_v55  ;;  %v724_v45 = vsub.f32 1.0, %v723_v33  ;;  %v1416_v36 = vpop.eup %1415  ;;  %vm1987_vm11 = vcmp.eq.f32.partialorder %v746_v0, 8.507059e+37 }
 0x1b8   :  { %v706_v62 = vmul.f32 %v705_v59, %v1876_v22  ;;  %v710_v63 = vmul.f32 %v1410_v38, %v709_v56  ;;  %v738_v8 = vmul.f32 %v1416_v36, %v1938_v28  ;;  %v1418_v10 = vpop.eup %1417  ;;  %v748_v22 = vand.u32 2147483648, %v1938_v28 }
 0x1b9   :  { %v725_v7 = vmul.f32 %v1412_v52, %v724_v45  ;;  %1421 = vrcp.f32 %v1970_v1  ;;  %v753_v16 = vmul.f32 %v1418_v10, %v1940_v34  ;;  %vm743_vm10 = vweird.f32 %v1416_v36  ;;  %v1420_v25 = vpop.eup %1419 }
 0x1ba   :  { %v1157_v11 = vpack.c.bf16 %v706_v62, %v691_v57  ;;  %v711_v4 = vadd.f32 %v1410_v38, %v710_v63  ;;  %v739_v15 = vsub.f32 1.0, %v738_v8  ;;  %v761_v18 = vand.u32 2147483647, %v1940_v34  ;;  %vm744_vm13 = vmor %vm742_vm8, %vm743_vm10 }
 0x1bb   :  { %v726_v14 = vadd.f32 %v1412_v52, %v725_v7  ;;  %v754_v32 = vsub.f32 1.0, %v753_v16  ;;  %vm758_vm12 = vweird.f32 %v1418_v10  ;;  %v763_v5 = vand.u32 2147483648, %v1940_v34 }
 0x1bc   :  { %1173 = vst [vmem:[%s2461_s5] sm:$0xff] %v1157_v11  ;;  %v715_v13 = vsel %vm714_vm7, %v1410_v38, %v711_v4  ;;  %v740_v21 = vmul.f32 %v1416_v36, %v739_v15  ;;  %1423 = vpow2.f32 %v597_v12  ;;  %v1997_v39 = vadd.f32 1.0, %v1420_v25 }
 0x1bd   :  { %v720_v2 = vsel %vm1949_vm1, %v719_v53, %v715_v13  ;;  %v730_v20 = vsel %vm729_vm9, %v1412_v52, %v726_v14  ;;  %v755_v38 = vmul.f32 %v1418_v10, %v754_v32  ;;  %v749_v44 = vor.u32 1.1754944e-38, %v748_v22 }
 0x1be   :  { %v721_v19 = vmul.f32 %v720_v2, %v1885_v41  ;;  %v735_v26 = vsel %vm1964_vm4, %v734_v9, %v730_v20  ;;  %v741_v35 = vadd.f32 %v1416_v36, %v740_v21  ;;  %vm757_vm14 = vweird.f32 %v1940_v34  ;;  %v507_v21 = vpop.f32.mrf.mxu2 }
 0x1bf   :  { %v736_v27 = vmul.f32 %v735_v26, %v1888_v42  ;;  %v1999_v41 = vpop.eup %1421  ;;  %v558_v49 = vmul.f32 -1.702, %v1933_v23  ;;  %v2007_v50 = vadd.f32 %v505_v24, %v1880_v30  ;;  %v756_v52 = vadd.f32 %v1418_v10, %v755_v38  ;;  %vm759_vm15 = vmor %vm757_vm14, %vm758_vm12 }
 0x1c0   :  { %v745_v51 = vsel %vm744_vm13, %v1416_v36, %v741_v35  ;;  %v768_v37 = vmul.f32 %v1999_v41, %v1970_v1  ;;  %v764_v28 = vor.u32 1.1754944e-38, %v763_v5  ;;  %1425 = vrcp.f32 %v1997_v39  ;;  %v449_v36 = vpop.f32.mrf.mxu0  ;;  %v536_v5 = vpop.f32.mrf.mxu3 }
 0x1c1   :  { %v1158_v42 = vpack.c.bf16 %v736_v27, %v721_v19  ;;  %v750_v53 = vsel %vm1987_vm11, %v749_v44, %v745_v51  ;;  %v2016_v34 = vadd.f32 %v534_v43, %v1882_v31  ;;  %v760_v54 = vsel %vm759_vm15, %v1418_v10, %v756_v52  ;;  %v478_v10 = vpop.f32.mrf.mxu1 }
 0x1c2   :  { %v751_v29 = vmul.f32 %v750_v53, %v1891_v46  ;;  %vm762_vm0 = vcmp.eq.f32.partialorder %v761_v18, 8.507059e+37  ;;  %v769_v55 = vsub.f32 1.0, %v768_v37  ;;  %v1424_v56 = vpop.eup %1423  ;;  %v599_v57 = vmul.f32 1.442695, %v558_v49 }
 0x1c3   :  { %1174 = vst [vmem:[%s2461_s5 + $0x8] sm:$0xff] %v1158_v42  ;;  %v765_v33 = vsel %vm762_vm0, %v764_v28, %v760_v54  ;;  %v559_v59 = vmul.f32 -1.702, %v2007_v50  ;;  %v776_v61 = vand.u32 2147483647, %v1970_v1  ;;  %v2026_v62 = vadd.f32 1.0, %v1424_v56 }
 0x1c4   :  { %v766_v60 = vmul.f32 %v765_v33, %v1894_v48  ;;  %v770_v9 = vmul.f32 %v1999_v41, %v769_v55  ;;  %v778_v63 = vand.u32 2147483648, %v1970_v1  ;;  %1427 = vpow2.f32 %v599_v57 }
 0x1c5   :  { %v601_v46 = vmul.f32 1.442695, %v559_v59  ;;  %v560_v45 = vmul.f32 -1.702, %v2016_v34  ;;  %vm773_vm1 = vweird.f32 %v1999_v41  ;;  %1429 = vrcp.f32 %v2026_v62 }
 0x1c6   :  { %v1159_v0 = vpack.c.bf16 %v766_v60, %v751_v29  ;;  %v771_v11 = vadd.f32 %v1999_v41, %v770_v9  ;;  %v1426_v48 = vpop.eup %1425  ;;  %v791_v4 = vand.u32 2147483647, %v1997_v39  ;;  %v793_v7 = vand.u32 2147483648, %v1997_v39 }
 0x1c7   :  { %1431 = vpow2.f32 %v601_v46  ;;  %v603_v8 = vmul.f32 1.442695, %v560_v45  ;;  %vm772_vm2 = vweird.f32 %v1970_v1  ;;  %v783_v22 = vmul.f32 %v1426_v48, %v1997_v39 }
 0x1c8   :  { %1175 = vst [vmem:[%s2461_s5 + $0x10] sm:$0xff] %v1159_v0  ;;  %v2041_v12 = vadd.f32 %v449_v36, %v1868_v40  ;;  %vm2043_vm3 = vmor %vm772_vm2, %vm773_vm1  ;;  %vm2047_vm4 = vcmp.eq.f32.partialorder %v776_v61, 8.507059e+37  ;;  %v2056_v2 = vadd.f32 %v478_v10, %v1870_v47  ;;  %v779_v18 = vor.u32 1.1754944e-38, %v778_v63  ;;  %v452_v59 = vpop.f32.mrf.mxu0 }
 0x1c9   :  { %1433 = vpow2.f32 %v603_v8  ;;  %v775_v15 = vsel %vm2043_vm3, %v1999_v41, %v771_v11  ;;  %v784_v16 = vsub.f32 1.0, %v783_v22  ;;  %vm787_vm5 = vweird.f32 %v1997_v39 }
 0x1ca   :  { %v561_v1 = vmul.f32 -1.702, %v2041_v12  ;;  %v1428_v17 = vpop.eup %1427  ;;  %vm2059_vm6 = vcmp.eq.f32.partialorder %v791_v4, 8.507059e+37  ;;  %v794_v20 = vor.u32 1.1754944e-38, %v793_v7  ;;  %vm788_vm7 = vweird.f32 %v1426_v48 }
 0x1cb   :  { %v2063_v32 = vpop.eup %1429  ;;  %v785_v24 = vmul.f32 %v1426_v48, %v784_v16  ;;  %v2065_v25 = vadd.f32 1.0, %v1428_v17  ;;  %v780_v35 = vsel %vm2047_vm4, %v779_v18, %v775_v15  ;;  %vm802_vm8 = vweird.f32 %v2026_v62  ;;  %vm789_vm9 = vmor %vm787_vm5, %vm788_vm7 }
 0x1cc   :  { %v605_v26 = vmul.f32 1.442695, %v561_v1  ;;  %v798_v38 = vmul.f32 %v2063_v32, %v2026_v62  ;;  %v806_v43 = vand.u32 2147483647, %v2026_v62  ;;  %v808_v41 = vand.u32 2147483648, %v2026_v62 }
 0x1cd   :  { %v1432_v27 = vpop.eup %1431  ;;  %v786_v44 = vadd.f32 %v1426_v48, %v785_v24  ;;  %1435 = vrcp.f32 %v2065_v25  ;;  %v562_v49 = vmul.f32 -1.702, %v2056_v2  ;;  %v2077_v42 = vadd.f32 %v507_v21, %v1880_v30 }
 0x1ce   :  { %v799_v52 = vsub.f32 1.0, %v798_v38  ;;  %v2082_v37 = vadd.f32 1.0, %v1432_v27  ;;  %1437 = vpow2.f32 %v605_v26  ;;  %v2085_v53 = vadd.f32 %v536_v5, %v1882_v31 }
 0x1cf   :  { %v1434_v51 = vpop.eup %1433  ;;  %v781_v28 = vmul.f32 %v780_v35, %v1904_v58  ;;  %v790_v29 = vsel %vm789_vm9, %v1426_v48, %v786_v44  ;;  %v821_v54 = vand.u32 2147483647, %v2065_v25  ;;  %vm2094_vm10 = vcmp.eq.f32.partialorder %v806_v43, 8.507059e+37  ;;  %v481_v58 = vpop.f32.mrf.mxu1 }
 0x1d0   :  { %v2089_v55 = vadd.f32 1.0, %v1434_v51  ;;  %v795_v56 = vsel %vm2059_vm6, %v794_v20, %v790_v29  ;;  %v800_v39 = vmul.f32 %v2063_v32, %v799_v52  ;;  %v823_v57 = vand.u32 2147483648, %v2065_v25 }
 0x1d1   :  { %1439 = vrcp.f32 %v2082_v37  ;;  %v796_v60 = vmul.f32 %v795_v56, %v1912_v3  ;;  %vm803_vm11 = vweird.f32 %v2063_v32  ;;  %v809_v9 = vor.u32 1.1754944e-38, %v808_v41 }
 0x1d2   :  { %v607_v61 = vmul.f32 1.442695, %v562_v49  ;;  %v801_v63 = vadd.f32 %v2063_v32, %v800_v39  ;;  %1441 = vrcp.f32 %v2089_v55  ;;  %v563_v46 = vmul.f32 -1.702, %v2077_v42  ;;  %vm2126_vm14 = vmor %vm802_vm8, %vm803_vm11 }
 0x1d3   :  { %v564_v45 = vmul.f32 -1.702, %v2085_v53  ;;  %v1436_v36 = vpop.eup %1435  ;;  %v1160_v0 = vpack.c.bf16 %v796_v60, %v781_v28  ;;  %vm817_vm12 = vweird.f32 %v2065_v25  ;;  %v2108_v11 = vadd.f32 %v452_v59, %v1868_v40 }
 0x1d4   :  { %v2111_v3 = vadd.f32 %v481_v58, %v1870_v47  ;;  %v1438_v48 = vpop.eup %1437  ;;  %v813_v4 = vmul.f32 %v1436_v36, %v2065_v25  ;;  %vm2114_vm13 = vcmp.eq.f32.partialorder %v821_v54, 8.507059e+37  ;;  %v824_v8 = vor.u32 1.1754944e-38, %v823_v57  ;;  %v510_v25 = vpop.f32.mrf.mxu2 }
 0x1d5   :  { %v836_v10 = vand.u32 2147483647, %v2082_v37  ;;  %1176 = vst [vmem:[%s2461_s5 + $0x18] sm:$0xff] %v1160_v0  ;;  %v838_v13 = vand.u32 2147483648, %v2082_v37  ;;  %v851_v14 = vand.u32 2147483647, %v2089_v55  ;;  %1443 = vpow2.f32 %v607_v61 }
 0x1d6   :  { %v2132_v15 = vadd.f32 1.0, %v1438_v48  ;;  %v805_v1 = vsel %vm2126_vm14, %v2063_v32, %v801_v63  ;;  %v814_v17 = vsub.f32 1.0, %v813_v4  ;;  %v609_v18 = vmul.f32 1.442695, %v563_v46 }
 0x1d7   :  { %v1440_v16 = vpop.eup %1439  ;;  %v611_v19 = vmul.f32 1.442695, %v564_v45  ;;  %vm832_vm15 = vweird.f32 %v2082_v37  ;;  %v853_v20 = vand.u32 2147483648, %v2089_v55  ;;  %vm818_vm0 = vweird.f32 %v1436_v36 }
 0x1d8   :  { %v828_v62 = vmul.f32 %v1440_v16, %v2082_v37  ;;  %1445 = vrcp.f32 %v2132_v15  ;;  %v1442_v21 = vpop.eup %1441  ;;  %v815_v24 = vmul.f32 %v1436_v36, %v814_v17  ;;  %vm847_vm1 = vweird.f32 %v2089_v55  ;;  %vm819_vm4 = vmor %vm817_vm12, %vm818_vm0 }
 0x1d9   :  { %1447 = vpow2.f32 %v609_v18  ;;  %v810_v32 = vsel %vm2094_vm10, %v809_v9, %v805_v1  ;;  %v843_v5 = vmul.f32 %v1442_v21, %v2089_v55  ;;  %vm2145_vm2 = vcmp.eq.f32.partialorder %v836_v10, 8.507059e+37 }
 0x1da   :  { %v829_v26 = vsub.f32 1.0, %v828_v62  ;;  %1449 = vpow2.f32 %v611_v19  ;;  %v816_v27 = vadd.f32 %v1436_v36, %v815_v24  ;;  %v839_v38 = vor.u32 1.1754944e-38, %v838_v13  ;;  %v539_v13 = vpop.f32.mrf.mxu3 }
 0x1db   :  { %vm2149_vm3 = vcmp.eq.f32.partialorder %v851_v14, 8.507059e+37  ;;  %v1444_v41 = vpop.eup %1443  ;;  %vm833_vm5 = vweird.f32 %v1440_v16  ;;  %v844_v49 = vsub.f32 1.0, %v843_v5  ;;  %v854_v51 = vor.u32 1.1754944e-38, %v853_v20 }
 0x1dc   :  { %v830_v44 = vmul.f32 %v1440_v16, %v829_v26  ;;  %v811_v52 = vmul.f32 %v810_v32, %v1918_v6  ;;  %v820_v28 = vsel %vm819_vm4, %v1436_v36, %v816_v27  ;;  %v866_v29 = vand.u32 2147483647, %v2132_v15  ;;  %vm834_vm7 = vmor %vm832_vm15, %vm833_vm5 }
 0x1dd   :  { %v2157_v54 = vadd.f32 1.0, %v1444_v41  ;;  %v825_v39 = vsel %vm2114_vm13, %v824_v8, %v820_v28  ;;  %v845_v57 = vmul.f32 %v1442_v21, %v844_v49  ;;  %vm848_vm6 = vweird.f32 %v1442_v21 }
 0x1de   :  { %v1446_v56 = vpop.eup %1445  ;;  %v831_v33 = vadd.f32 %v1440_v16, %v830_v44  ;;  %v826_v58 = vmul.f32 %v825_v39, %v1933_v23  ;;  %v868_v60 = vand.u32 2147483648, %v2132_v15  ;;  %v565_v46 = vmul.f32 -1.702, %v2108_v11  ;;  %vm849_vm8 = vmor %vm847_vm1, %vm848_vm6 }
 0x1df   :  { %v1448_v59 = vpop.eup %1447  ;;  %v858_v6 = vmul.f32 %v1446_v56, %v2132_v15  ;;  %1451 = vrcp.f32 %v2157_v54  ;;  %v846_v63 = vadd.f32 %v1442_v21, %v845_v57  ;;  %v566_v45 = vmul.f32 -1.702, %v2111_v3 }
 0x1e0   :  { %v1450_v9 = vpop.eup %1449  ;;  %v835_v61 = vsel %vm834_vm7, %v1440_v16, %v831_v33  ;;  %v1161_v36 = vpack.c.bf16 %v826_v58, %v811_v52  ;;  %v2176_v0 = vadd.f32 %v510_v25, %v1880_v30  ;;  %vm863_vm9 = vweird.f32 %v1446_v56 }
 0x1e1   :  { %v840_v23 = vsel %vm2145_vm2, %v839_v38, %v835_v61  ;;  %v859_v37 = vsub.f32 1.0, %v858_v6  ;;  %v850_v4 = vsel %vm849_vm8, %v1442_v21, %v846_v63  ;;  %v2179_v7 = vadd.f32 1.0, %v1448_v59 }
 0x1e2   :  { %v841_v48 = vmul.f32 %v840_v23, %v2007_v50  ;;  %1177 = vst [vmem:[%s2461_s5 + $0x20] sm:$0xff] %v1161_v36  ;;  %v855_v8 = vsel %vm2149_vm3, %v854_v51, %v850_v4  ;;  %v881_v55 = vand.u32 2147483647, %v2157_v54  ;;  %v2187_v22 = vadd.f32 1.0, %v1450_v9  ;;  %v483_v23 = vpop.f32.mrf.mxu1 }
 0x1e3   :  { %v860_v10 = vmul.f32 %v1446_v56, %v859_v37  ;;  %v856_v14 = vmul.f32 %v855_v8, %v2016_v34  ;;  %v883_v50 = vand.u32 2147483648, %v2157_v54  ;;  %1453 = vrcp.f32 %v2179_v7  ;;  %v512_v37 = vpop.f32.mrf.mxu2 }
 0x1e4   :  { %v613_v16 = vmul.f32 1.442695, %v565_v46  ;;  %vm862_vm10 = vweird.f32 %v2132_v15  ;;  %1455 = vrcp.f32 %v2187_v22  ;;  %v615_v18 = vmul.f32 1.442695, %v566_v45  ;;  %v454_v15 = vpop.f32.mrf.mxu0 }
 0x1e5   :  { %v1452_v1 = vpop.eup %1451  ;;  %v861_v17 = vadd.f32 %v1446_v56, %v860_v10  ;;  %v1162_v19 = vpack.c.bf16 %v856_v14, %v841_v48  ;;  %vm864_vm11 = vmor %vm862_vm10, %vm863_vm9  ;;  %vm867_vm12 = vcmp.eq.f32.partialorder %v866_v29, 8.507059e+37  ;;  %v2197_v34 = vadd.f32 %v539_v13, %v1882_v31 }
 0x1e6   :  { %v873_v62 = vmul.f32 %v1452_v1, %v2157_v54  ;;  %v869_v21 = vor.u32 1.1754944e-38, %v868_v60  ;;  %vm877_vm13 = vweird.f32 %v2157_v54  ;;  %vm2200_vm14 = vcmp.eq.f32.partialorder %v881_v55, 8.507059e+37 }
 0x1e7   :  { %v865_v20 = vsel %vm864_vm11, %v1446_v56, %v861_v17  ;;  %1178 = vst [vmem:[%s2461_s5 + $0x28] sm:$0xff] %v1162_v19  ;;  %v884_v26 = vor.u32 1.1754944e-38, %v883_v50  ;;  %1457 = vpow2.f32 %v613_v16  ;;  %v567_v5 = vmul.f32 -1.702, %v2176_v0 }
 0x1e8   :  { %v874_v32 = vsub.f32 1.0, %v873_v62  ;;  %v870_v27 = vsel %vm867_vm12, %v869_v21, %v865_v20  ;;  %vm878_vm15 = vweird.f32 %v1452_v1  ;;  %vm892_vm0 = vweird.f32 %v2179_v7 }
 0x1e9   :  { %1459 = vpow2.f32 %v615_v18  ;;  %v1454_v35 = vpop.eup %1453  ;;  %v617_v43 = vmul.f32 1.442695, %v567_v5  ;;  %v568_v41 = vmul.f32 -1.702, %v2197_v34  ;;  %v2211_v44 = vadd.f32 %v454_v15, %v1868_v40  ;;  %vm879_vm2 = vmor %vm877_vm13, %vm878_vm15 }
 0x1ea   :  { %v875_v38 = vmul.f32 %v1452_v1, %v874_v32  ;;  %v1456_v49 = vpop.eup %1455  ;;  %v888_v51 = vmul.f32 %v1454_v35, %v2179_v7  ;;  %v896_v52 = vand.u32 2147483647, %v2179_v7  ;;  %v898_v28 = vand.u32 2147483648, %v2179_v7  ;;  %v541_v32 = vpop.f32.mrf.mxu3 }
 0x1eb   :  { %vm907_vm1 = vweird.f32 %v2187_v22  ;;  %v903_v56 = vmul.f32 %v1456_v49, %v2187_v22  ;;  %v911_v39 = vand.u32 2147483647, %v2187_v22  ;;  %1461 = vpow2.f32 %v617_v43 }
 0x1ec   :  { %v876_v29 = vadd.f32 %v1452_v1, %v875_v38  ;;  %v871_v33 = vmul.f32 %v870_v27, %v2041_v12  ;;  %v889_v57 = vsub.f32 1.0, %v888_v51  ;;  %v913_v25 = vand.u32 2147483648, %v2187_v22 }
 0x1ed   :  { %v619_v59 = vmul.f32 1.442695, %v568_v41  ;;  %v1458_v58 = vpop.eup %1457  ;;  %vm893_vm3 = vweird.f32 %v1454_v35  ;;  %v904_v60 = vsub.f32 1.0, %v903_v56  ;;  %v569_v9 = vmul.f32 -1.702, %v2211_v44 }
 0x1ee   :  { %v880_v6 = vsel %vm879_vm2, %v1452_v1, %v876_v29  ;;  %v890_v46 = vmul.f32 %v1454_v35, %v889_v57  ;;  %v2227_v12 = vadd.f32 1.0, %v1458_v58  ;;  %vm908_vm4 = vweird.f32 %v1456_v49  ;;  %vm894_vm6 = vmor %vm892_vm0, %vm893_vm3 }
 0x1ef   :  { %v1460_v61 = vpop.eup %1459  ;;  %v885_v63 = vsel %vm2200_vm14, %v884_v26, %v880_v6  ;;  %1463 = vpow2.f32 %v619_v59  ;;  %v905_v45 = vmul.f32 %v1456_v49, %v904_v60  ;;  %vm897_vm5 = vcmp.eq.f32.partialorder %v896_v52, 8.507059e+37  ;;  %vm909_vm7 = vmor %vm907_vm1, %vm908_vm4 }
 0x1f0   :  { %v886_v54 = vmul.f32 %v885_v63, %v2056_v2  ;;  %v2230_v36 = vadd.f32 1.0, %v1460_v61  ;;  %v891_v48 = vadd.f32 %v1454_v35, %v890_v46  ;;  %v899_v4 = vor.u32 1.1754944e-38, %v898_v28 }
 0x1f1   :  { %1465 = vrcp.f32 %v2227_v12  ;;  %v1462_v8 = vpop.eup %1461  ;;  %v906_v55 = vadd.f32 %v1456_v49, %v905_v45  ;;  %v621_v2 = vmul.f32 1.442695, %v569_v9  ;;  %v914_v14 = vor.u32 1.1754944e-38, %v913_v25 }
 0x1f2   :  { %v1163_v10 = vpack.c.bf16 %v886_v54, %v871_v33  ;;  %1467 = vrcp.f32 %v2230_v36  ;;  %v895_v13 = vsel %vm894_vm6, %v1454_v35, %v891_v48  ;;  %v2241_v50 = vadd.f32 %v483_v23, %v1870_v47 }
 0x1f3   :  { %v2244_v16 = vadd.f32 %v512_v37, %v1880_v30  ;;  %v900_v7 = vsel %vm897_vm5, %v899_v4, %v895_v13  ;;  %v910_v1 = vsel %vm909_vm7, %v1456_v49, %v906_v55  ;;  %vm912_vm8 = vcmp.eq.f32.partialorder %v911_v39, 8.507059e+37 }
 0x1f4   :  { %1179 = vst [vmem:[%s2461_s5 + $0x30] sm:$0xff] %v1163_v10  ;;  %v926_v17 = vand.u32 2147483647, %v2227_v12  ;;  %v901_v22 = vmul.f32 %v900_v7, %v2077_v42  ;;  %v915_v19 = vsel %vm912_vm8, %v914_v14, %v910_v1  ;;  %v928_v62 = vand.u32 2147483648, %v2227_v12 }
 0x1f5   :  { %v1464_v18 = vpop.eup %1463  ;;  %v2252_v20 = vadd.f32 1.0, %v1462_v8  ;;  %v916_v21 = vmul.f32 %v915_v19, %v2085_v53  ;;  %v941_v24 = vand.u32 2147483647, %v2230_v36  ;;  %1469 = vpow2.f32 %v621_v2 }
 0x1f6   :  { %v2256_v15 = vadd.f32 1.0, %v1464_v18  ;;  %v943_v5 = vand.u32 2147483648, %v2230_v36  ;;  %v570_v42 = vmul.f32 -1.702, %v2241_v50  ;;  %v571_v27 = vmul.f32 -1.702, %v2244_v16 }
 0x1f7   :  { %v1466_v26 = vpop.eup %1465  ;;  %1471 = vrcp.f32 %v2252_v20  ;;  %v1164_v38 = vpack.c.bf16 %v916_v21, %v901_v22  ;;  %vm922_vm9 = vweird.f32 %v2227_v12  ;;  %vm2265_vm10 = vcmp.eq.f32.partialorder %v926_v17, 8.507059e+37 }
 0x1f8   :  { %v1468_v35 = vpop.eup %1467  ;;  %v918_v43 = vmul.f32 %v1466_v26, %v2227_v12  ;;  %1473 = vrcp.f32 %v2256_v15  ;;  %v2271_v49 = vadd.f32 %v541_v32, %v1882_v31  ;;  %v929_v52 = vor.u32 1.1754944e-38, %v928_v62 }
 0x1f9   :  { %v933_v41 = vmul.f32 %v1468_v35, %v2230_v36  ;;  %1180 = vst [vmem:[%s2461_s5 + $0x38] sm:$0xff] %v1164_v38  ;;  %vm937_vm11 = vweird.f32 %v2230_v36  ;;  %vm2277_vm12 = vcmp.eq.f32.partialorder %v941_v24, 8.507059e+37  ;;  %v944_v56 = vor.u32 1.1754944e-38, %v943_v5 }
 0x1fa   :  { %v919_v51 = vsub.f32 1.0, %v918_v43  ;;  %v623_v39 = vmul.f32 1.442695, %v570_v42  ;;  %v625_v33 = vmul.f32 1.442695, %v571_v27  ;;  %vm923_vm13 = vweird.f32 %v1466_v26 }
 0x1fb   :  { %v934_v29 = vsub.f32 1.0, %v933_v41  ;;  %v1470_v57 = vpop.eup %1469  ;;  %vm952_vm14 = vweird.f32 %v2252_v20  ;;  %v956_v59 = vand.u32 2147483647, %v2252_v20  ;;  %vm938_vm15 = vweird.f32 %v1468_v35  ;;  %vm924_vm0 = vmor %vm922_vm9, %vm923_vm13 }
 0x1fc   :  { %v920_v25 = vmul.f32 %v1466_v26, %v919_v51  ;;  %v2283_v60 = vadd.f32 1.0, %v1470_v57  ;;  %1475 = vpow2.f32 %v623_v39  ;;  %v958_v46 = vand.u32 2147483648, %v2252_v20  ;;  %vm939_vm1 = vmor %vm937_vm11, %vm938_vm15 }
 0x1fd   :  { %v1472_v58 = vpop.eup %1471  ;;  %v935_v6 = vmul.f32 %v1468_v35, %v934_v29  ;;  %1477 = vpow2.f32 %v625_v33  ;;  %v572_v23 = vmul.f32 -1.702, %v2271_v49  ;;  %vm2294_vm2 = vcmp.eq.f32.partialorder %v956_v59, 8.507059e+37 }
 0x1fe   :  { %v1474_v9 = vpop.eup %1473  ;;  %v921_v61 = vadd.f32 %v1466_v26, %v920_v25  ;;  %v948_v63 = vmul.f32 %v1472_v58, %v2252_v20  ;;  %1479 = vrcp.f32 %v2283_v60  ;;  %v971_v8 = vand.u32 2147483647, %v2256_v15 }
 0x1ff   :  { %v936_v54 = vadd.f32 %v1468_v35, %v935_v6  ;;  %v963_v45 = vmul.f32 %v1474_v9, %v2256_v15  ;;  %v973_v2 = vand.u32 2147483648, %v2256_v15  ;;  %vm953_vm3 = vweird.f32 %v1472_v58 }
 0x200   :  { %v925_v37 = vsel %vm924_vm0, %v1466_v26, %v921_v61  ;;  %v949_v48 = vsub.f32 1.0, %v948_v63  ;;  %vm968_vm4 = vweird.f32 %v1474_v9  ;;  %v627_v18 = vmul.f32 1.442695, %v572_v23  ;;  %vm954_vm6 = vmor %vm952_vm14, %vm953_vm3 }
 0x201   :  { %v930_v12 = vsel %vm2265_vm10, %v929_v52, %v925_v37  ;;  %v940_v10 = vsel %vm939_vm1, %v1468_v35, %v936_v54  ;;  %v964_v55 = vsub.f32 1.0, %v963_v45  ;;  %v959_v62 = vor.u32 1.1754944e-38, %v958_v46 }
 0x202   :  { %v931_v13 = vmul.f32 %v930_v12, %v2108_v11  ;;  %v945_v36 = vsel %vm2277_vm12, %v944_v56, %v940_v10  ;;  %v950_v14 = vmul.f32 %v1472_v58, %v949_v48  ;;  %v1476_v7 = vpop.eup %1475  ;;  %vm967_vm5 = vweird.f32 %v2256_v15 }
 0x203   :  { %v946_v1 = vmul.f32 %v945_v36, %v2111_v3  ;;  %v965_v17 = vmul.f32 %v1474_v9, %v964_v55  ;;  %v1478_v22 = vpop.eup %1477  ;;  %v666_v21 = vadd.f32 1.0, %v1476_v7  ;;  %1481 = vpow2.f32 %v627_v18  ;;  %vm969_vm7 = vmor %vm967_vm5, %vm968_vm4 }
 0x204   :  { %v951_v19 = vadd.f32 %v1472_v58, %v950_v14  ;;  %v1480_v24 = vpop.eup %1479  ;;  %v2309_v26 = vadd.f32 1.0, %v1478_v22  ;;  %v974_v3 = vor.u32 1.1754944e-38, %v973_v2  ;;  %vm972_vm8 = vcmp.eq.f32.partialorder %v971_v8, 8.507059e+37 }
 0x205   :  { %v1165_v32 = vpack.c.bf16 %v946_v1, %v931_v13  ;;  %v966_v11 = vadd.f32 %v1474_v9, %v965_v17  ;;  %v978_v42 = vmul.f32 %v1480_v24, %v2283_v60  ;;  %1483 = vrcp.f32 %v666_v21 }
 0x206   :  { %v955_v5 = vsel %vm954_vm6, %v1472_v58, %v951_v19  ;;  %1485 = vrcp.f32 %v2309_v26  ;;  %v986_v41 = vand.u32 2147483647, %v2283_v60  ;;  %vm983_vm9 = vweird.f32 %v1480_v24 }
 0x207   :  { %1181 = vst [vmem:[%s2461_s5 + $0x40] sm:$0xff] %v1165_v32  ;;  %v960_v15 = vsel %vm2294_vm2, %v959_v62, %v955_v5  ;;  %v970_v27 = vsel %vm969_vm7, %v1474_v9, %v966_v11  ;;  %v979_v38 = vsub.f32 1.0, %v978_v42  ;;  %v988_v28 = vand.u32 2147483648, %v2283_v60 }
 0x208   :  { %v961_v20 = vmul.f32 %v960_v15, %v2176_v0  ;;  %v975_v35 = vsel %vm972_vm8, %v974_v3, %v970_v27  ;;  %vm982_vm10 = vweird.f32 %v2283_v60  ;;  %vm2332_vm12 = vcmp.eq.f32.partialorder %v986_v41, 8.507059e+37 }
 0x209   :  { %v976_v43 = vmul.f32 %v975_v35, %v2197_v34  ;;  %v980_v53 = vmul.f32 %v1480_v24, %v979_v38  ;;  %v1482_v51 = vpop.eup %1481  ;;  %vm2328_vm11 = vmor %vm982_vm10, %vm983_vm9  ;;  %v1001_v25 = vand.u32 2147483647, %v666_v21  ;;  %v989_v6 = vor.u32 1.1754944e-38, %v988_v28 }
 0x20a   :  { %v2322_v39 = vadd.f32 1.0, %v1482_v51  ;;  %vm997_vm13 = vweird.f32 %v666_v21  ;;  %v1003_v63 = vand.u32 2147483648, %v666_v21  ;;  %v1016_v54 = vand.u32 2147483647, %v2309_v26 }
 0x20b   :  { %v1166_v52 = vpack.c.bf16 %v976_v43, %v961_v20  ;;  %v1484_v29 = vpop.eup %1483  ;;  %v981_v56 = vadd.f32 %v1480_v24, %v980_v53  ;;  %vm2350_vm15 = vcmp.eq.f32.partialorder %v1001_v25, 8.507059e+37  ;;  %v1018_v12 = vand.u32 2147483648, %v2309_v26 }
 0x20c   :  { %v993_v0 = vmul.f32 %v1484_v29, %v666_v21  ;;  %1487 = vrcp.f32 %v2322_v39  ;;  %v1486_v59 = vpop.eup %1485  ;;  %vm998_vm14 = vweird.f32 %v1484_v29  ;;  %vm1012_vm0 = vweird.f32 %v2309_v26 }
 0x20d   :  { %1182 = vst [vmem:[%s2461_s5 + $0x48] sm:$0xff] %v1166_v52  ;;  %v985_v58 = vsel %vm2328_vm11, %v1480_v24, %v981_v56  ;;  %v1008_v46 = vmul.f32 %v1486_v59, %v2309_v26  ;;  %vm999_vm1 = vmor %vm997_vm13, %vm998_vm14  ;;  %v1004_v36 = vor.u32 1.1754944e-38, %v1003_v63  ;;  %vm1013_vm2 = vweird.f32 %v1486_v59 }
 0x20e   :  { %v994_v9 = vsub.f32 1.0, %v993_v0  ;;  %v990_v48 = vsel %vm2332_vm12, %v989_v6, %v985_v58  ;;  %vm2358_vm3 = vcmp.eq.f32.partialorder %v1016_v54, 8.507059e+37  ;;  %v1019_v62 = vor.u32 1.1754944e-38, %v1018_v12  ;;  %vm1014_vm4 = vmor %vm1012_vm0, %vm1013_vm2 }
 0x20f   :  { %v1009_v8 = vsub.f32 1.0, %v1008_v46  ;;  %v991_v1 = vmul.f32 %v990_v48, %v2211_v44  ;;  %v1031_v5 = vand.u32 2147483647, %v2322_v39  ;;  %v1033_v15 = vand.u32 2147483648, %v2322_v39 }
 0x210   :  { %v457_v34 = vpop.f32.mrf.mxu0  ;;  %v486_v61 = vpop.f32.mrf.mxu1  ;;  %v995_v45 = vmul.f32 %v1484_v29, %v994_v9  ;;  %vm1027_vm6 = vweird.f32 %v2322_v39 }
 0x211   :  { %v2340_v60 = vadd.f32 %v457_v34, %v1868_v40  ;;  %v2346_v37 = vadd.f32 %v486_v61, %v1870_v47  ;;  %v1010_v14 = vmul.f32 %v1486_v59, %v1009_v8  ;;  %v1034_v51 = vor.u32 1.1754944e-38, %v1033_v15 }
 0x212   :  { %v996_v10 = vadd.f32 %v1484_v29, %v995_v45  ;;  %v1488_v13 = vpop.eup %1487  ;;  %vm1032_vm8 = vcmp.eq.f32.partialorder %v1031_v5, 8.507059e+37 }
 0x213   :  { %v573_v23 = vmul.f32 -1.702, %v2340_v60  ;;  %v574_v2 = vmul.f32 -1.702, %v2346_v37  ;;  %v1023_v18 = vmul.f32 %v1488_v13, %v2322_v39  ;;  %v1011_v19 = vadd.f32 %v1486_v59, %v1010_v14 }
 0x214   :  { %v1000_v17 = vsel %vm999_vm1, %v1484_v29, %v996_v10  ;;  %vm1028_vm5 = vweird.f32 %v1488_v13 }
 0x215   :  { %v629_v55 = vmul.f32 1.442695, %v573_v23  ;;  %v1005_v22 = vsel %vm2350_vm15, %v1004_v36, %v1000_v17  ;;  %v631_v21 = vmul.f32 1.442695, %v574_v2  ;;  %v1024_v11 = vsub.f32 1.0, %v1023_v18  ;;  %vm1029_vm7 = vmor %vm1027_vm6, %vm1028_vm5 }
 0x216   :  { %v1006_v32 = vmul.f32 %v1005_v22, %v2241_v50  ;;  %v1015_v42 = vsel %vm1014_vm4, %v1486_v59, %v1011_v19 }
 0x217   :  { %1489 = vpow2.f32 %v629_v55  ;;  %v515_v24 = vpop.f32.mrf.mxu2  ;;  %v544_v3 = vpop.f32.mrf.mxu3  ;;  %v1025_v35 = vmul.f32 %v1488_v13, %v1024_v11  ;;  %v1020_v26 = vsel %vm2358_vm3, %v1019_v62, %v1015_v42 }
 0x218   :  { %v2371_v44 = vadd.f32 %v515_v24, %v1880_v30  ;;  %1491 = vpow2.f32 %v631_v21  ;;  %v2375_v27 = vadd.f32 %v544_v3, %v1882_v31  ;;  %v1167_v20 = vpack.c.bf16 %v1006_v32, %v991_v1  ;;  %v459_v33 = vpop.f32.mrf.mxu0  ;;  %v488_v58 = vpop.f32.mrf.mxu1 }
 0x219   :  { %v1026_v53 = vadd.f32 %v1488_v13, %v1025_v35  ;;  %v1021_v29 = vmul.f32 %v1020_v26, %v2244_v16  ;;  %v2388_v39 = vadd.f32 %v459_v33, %v1868_v40  ;;  %v2392_v16 = vadd.f32 %v488_v58, %v1870_v47 }
 0x21a   :  { %v575_v50 = vmul.f32 -1.702, %v2371_v44  ;;  %v576_v38 = vmul.f32 -1.702, %v2375_v27  ;;  %1183 = vst [vmem:[%s2461_s5 + $0x50] sm:$0xff] %v1167_v20 }
 0x21b   :  { %v1030_v56 = vsel %vm1029_vm7, %v1488_v13, %v1026_v53  ;;  %v577_v6 = vmul.f32 -1.702, %v2388_v39  ;;  %v578_v54 = vmul.f32 -1.702, %v2392_v16 }
 0x21c   :  { %v633_v41 = vmul.f32 1.442695, %v575_v50  ;;  %v635_v28 = vmul.f32 1.442695, %v576_v38  ;;  %v1035_v34 = vsel %vm1032_vm8, %v1034_v51, %v1030_v56 }
 0x21d   :  { %v1490_v43 = vpop.eup %1489  ;;  %v1036_v57 = vmul.f32 %v1035_v34, %v2271_v49  ;;  %v637_v63 = vmul.f32 1.442695, %v577_v6  ;;  %v639_v8 = vmul.f32 1.442695, %v578_v54 }
 0x21e   :  { %v669_v52 = vadd.f32 1.0, %v1490_v43  ;;  %1493 = vpow2.f32 %v633_v41  ;;  %v1492_v0 = vpop.eup %1491 }
 0x21f   :  { %v670_v25 = vadd.f32 1.0, %v1492_v0  ;;  %v1168_v59 = vpack.c.bf16 %v1036_v57, %v1021_v29  ;;  %v517_v13 = vpop.f32.mrf.mxu2  ;;  %v546_v11 = vpop.f32.mrf.mxu3 }
 0x220   :  { %1495 = vrcp.f32 %v669_v52  ;;  %v1046_v45 = vand.u32 2147483647, %v669_v52  ;;  %v1048_v23 = vand.u32 2147483648, %v669_v52  ;;  %vm1042_vm10 = vweird.f32 %v669_v52 }
 0x221   :  { %1497 = vpow2.f32 %v635_v28  ;;  %1184 = vst [vmem:[%s2461_s5 + $0x58] sm:$0xff] %v1168_v59  ;;  %v1061_v10 = vand.u32 2147483647, %v670_v25  ;;  %v1063_v2 = vand.u32 2147483648, %v670_v25  ;;  %v2405_v14 = vadd.f32 %v517_v13, %v1880_v30 }
 0x222   :  { %1499 = vrcp.f32 %v670_v25  ;;  %vm1047_vm11 = vcmp.eq.f32.partialorder %v1046_v45, 8.507059e+37  ;;  %v1049_v1 = vor.u32 1.1754944e-38, %v1048_v23  ;;  %vm1057_vm12 = vweird.f32 %v670_v25 }
 0x223   :  { %vm2407_vm15 = vcmp.eq.f32.partialorder %v1061_v10, 8.507059e+37  ;;  %v579_v19 = vmul.f32 -1.702, %v2405_v14  ;;  %v1064_v24 = vor.u32 1.1754944e-38, %v1063_v2  ;;  %v2420_v26 = vadd.f32 %v546_v11, %v1882_v31 }
 0x224   :  { %v1494_v9 = vpop.eup %1493 }
 0x225   :  { %v2397_v49 = vadd.f32 1.0, %v1494_v9  ;;  %v641_v50 = vmul.f32 1.442695, %v579_v19  ;;  %v580_v33 = vmul.f32 -1.702, %v2420_v26 }
 0x226   :  { %v1496_v61 = vpop.eup %1495 }
 0x227   :  { %v1498_v46 = vpop.eup %1497  ;;  %v1038_v40 = vmul.f32 %v1496_v61, %v669_v52  ;;  %1501 = vrcp.f32 %v2397_v49  ;;  %vm1043_vm9 = vweird.f32 %v1496_v61  ;;  %v1078_v32 = vand.u32 2147483648, %v2397_v49 }
 0x228   :  { %v1500_v48 = vpop.eup %1499  ;;  %v2401_v4 = vadd.f32 1.0, %v1498_v46  ;;  %1503 = vpow2.f32 %v637_v63  ;;  %vm1044_vm13 = vmor %vm1042_vm10, %vm1043_vm9  ;;  %vm1072_vm0 = vweird.f32 %v2397_v49  ;;  %v1076_v35 = vand.u32 2147483647, %v2397_v49 }
 0x229   :  { %v1039_v47 = vsub.f32 1.0, %v1038_v40  ;;  %v1053_v12 = vmul.f32 %v1500_v48, %v670_v25  ;;  %vm1058_vm14 = vweird.f32 %v1500_v48  ;;  %v1079_v28 = vor.u32 1.1754944e-38, %v1078_v32 }
 0x22a   :  { %1505 = vrcp.f32 %v2401_v4  ;;  %vm1059_vm1 = vmor %vm1057_vm12, %vm1058_vm14  ;;  %v1091_v31 = vand.u32 2147483647, %v2401_v4  ;;  %vm1077_vm5 = vcmp.eq.f32.partialorder %v1076_v35, 8.507059e+37  ;;  %vm1087_vm6 = vweird.f32 %v2401_v4 }
 0x22b   :  { %v1040_v55 = vmul.f32 %v1496_v61, %v1039_v47  ;;  %v1054_v36 = vsub.f32 1.0, %v1053_v12  ;;  %1507 = vpow2.f32 %v639_v8  ;;  %v643_v9 = vmul.f32 1.442695, %v580_v33 }
 0x22c   :  { %vm1092_vm8 = vcmp.eq.f32.partialorder %v1091_v31, 8.507059e+37 }
 0x22d   :  { %v1041_v7 = vadd.f32 %v1496_v61, %v1040_v55  ;;  %v1502_v17 = vpop.eup %1501  ;;  %v1055_v18 = vmul.f32 %v1500_v48, %v1054_v36 }
 0x22e   :  { %v1504_v62 = vpop.eup %1503  ;;  %v1068_v30 = vmul.f32 %v1502_v17, %v2397_v49  ;;  %vm1073_vm2 = vweird.f32 %v1502_v17 }
 0x22f   :  { %v1045_v21 = vsel %vm1044_vm13, %v1496_v61, %v1041_v7  ;;  %v1056_v3 = vadd.f32 %v1500_v48, %v1055_v18  ;;  %v2415_v42 = vadd.f32 1.0, %v1504_v62  ;;  %vm1074_vm3 = vmor %vm1072_vm0, %vm1073_vm2 }
 0x230   :  { %v1050_v5 = vsel %vm1047_vm11, %v1049_v1, %v1045_v21  ;;  %v1506_v15 = vpop.eup %1505  ;;  %v1069_v20 = vsub.f32 1.0, %v1068_v30 }
 0x231   :  { %v1508_v38 = vpop.eup %1507  ;;  %v1051_v43 = vmul.f32 %v1050_v5, %v2340_v60  ;;  %v1060_v53 = vsel %vm1059_vm1, %v1500_v48, %v1056_v3  ;;  %v1083_v41 = vmul.f32 %v1506_v15, %v2401_v4  ;;  %1509 = vrcp.f32 %v2415_v42 }
 0x232   :  { %v1065_v51 = vsel %vm2407_vm15, %v1064_v24, %v1060_v53  ;;  %v1070_v52 = vmul.f32 %v1502_v17, %v1069_v20  ;;  %v674_v0 = vadd.f32 1.0, %v1508_v38  ;;  %v1093_v60 = vand.u32 2147483648, %v2401_v4 }
 0x233   :  { %v1066_v29 = vmul.f32 %v1065_v51, %v2346_v37  ;;  %v1084_v56 = vsub.f32 1.0, %v1083_v41  ;;  %1511 = vpow2.f32 %v641_v50  ;;  %vm1088_vm4 = vweird.f32 %v1506_v15 }
 0x234   :  { %v1071_v34 = vadd.f32 %v1502_v17, %v1070_v52  ;;  %1513 = vrcp.f32 %v674_v0  ;;  %vm1089_vm7 = vmor %vm1087_vm6, %vm1088_vm4  ;;  %v1094_v61 = vor.u32 1.1754944e-38, %v1093_v60  ;;  %v1106_v47 = vand.u32 2147483647, %v2415_v42 }
 0x235   :  { %v1169_v57 = vpack.c.bf16 %v1066_v29, %v1051_v43  ;;  %v1085_v25 = vmul.f32 %v1506_v15, %v1084_v56  ;;  %1515 = vpow2.f32 %v643_v9  ;;  %v1108_v4 = vand.u32 2147483648, %v2415_v42 }
 0x236   :  { %v1075_v59 = vsel %vm1074_vm3, %v1502_v17, %v1071_v34  ;;  %vm1102_vm10 = vweird.f32 %v2415_v42  ;;  %vm1107_vm12 = vcmp.eq.f32.partialorder %v1106_v47, 8.507059e+37  ;;  %v1121_v36 = vand.u32 2147483647, %v674_v0 }
 0x237   :  { %v1510_v37 = vpop.eup %1509  ;;  %1185 = vst [vmem:[%s2461_s5 + $0x60] sm:$0xff] %v1169_v57  ;;  %v1080_v58 = vsel %vm1077_vm5, %v1079_v28, %v1075_v59  ;;  %v1086_v6 = vadd.f32 %v1506_v15, %v1085_v25  ;;  %v1123_v7 = vand.u32 2147483648, %v674_v0  ;;  %vm1117_vm14 = vweird.f32 %v674_v0 }
 0x238   :  { %v1098_v49 = vmul.f32 %v1510_v37, %v2415_v42  ;;  %v1081_v63 = vmul.f32 %v1080_v58, %v2371_v44  ;;  %vm1103_vm9 = vweird.f32 %v1510_v37  ;;  %vm1122_vm0 = vcmp.eq.f32.partialorder %v1121_v36, 8.507059e+37 }
 0x239   :  { %v1090_v46 = vsel %vm1089_vm7, %v1506_v15, %v1086_v6  ;;  %v1512_v40 = vpop.eup %1511  ;;  %vm1104_vm11 = vmor %vm1102_vm10, %vm1103_vm9  ;;  %v1124_v21 = vor.u32 1.1754944e-38, %v1123_v7 }
 0x23a   :  { %v1095_v54 = vsel %vm1092_vm8, %v1094_v61, %v1090_v46  ;;  %v1099_v45 = vsub.f32 1.0, %v1098_v49  ;;  %v1514_v23 = vpop.eup %1513  ;;  %v675_v8 = vadd.f32 1.0, %v1512_v40 }
 0x23b   :  { %v1096_v48 = vmul.f32 %v1095_v54, %v2375_v27  ;;  %v1113_v10 = vmul.f32 %v1514_v23, %v674_v0  ;;  %v1516_v13 = vpop.eup %1515  ;;  %v1109_v27 = vor.u32 1.1754944e-38, %v1108_v4  ;;  %vm1118_vm13 = vweird.f32 %v1514_v23 }
 0x23c   :  { %v1100_v12 = vmul.f32 %v1510_v37, %v1099_v45  ;;  %1517 = vrcp.f32 %v675_v8  ;;  %v676_v18 = vadd.f32 1.0, %v1516_v13  ;;  %vm1119_vm15 = vmor %vm1117_vm14, %vm1118_vm13  ;;  %v1138_v35 = vand.u32 2147483648, %v675_v8 }
 0x23d   :  { %v1170_v55 = vpack.c.bf16 %v1096_v48, %v1081_v63  ;;  %v1114_v2 = vsub.f32 1.0, %v1113_v10  ;;  %v1136_v50 = vand.u32 2147483647, %v675_v8  ;;  %vm1132_vm2 = vweird.f32 %v675_v8 }
 0x23e   :  { %v1101_v44 = vadd.f32 %v1510_v37, %v1100_v12  ;;  %1519 = vrcp.f32 %v676_v18  ;;  %v1139_v41 = vor.u32 1.1754944e-38, %v1138_v35  ;;  %v1153_v51 = vand.u32 2147483648, %v676_v18 }
 0x23f   :  { %1186 = vst [vmem:[%s2461_s5 + $0x68] sm:$0xff] %v1170_v55  ;;  %v1115_v17 = vmul.f32 %v1514_v23, %v1114_v2  ;;  %vm1137_vm4 = vcmp.eq.f32.partialorder %v1136_v50, 8.507059e+37  ;;  %v1151_v52 = vand.u32 2147483647, %v676_v18  ;;  %vm1147_vm6 = vweird.f32 %v676_v18 }
 0x240   :  { %v1105_v1 = vsel %vm1104_vm11, %v1510_v37, %v1101_v44  ;;  %v1154_v56 = vor.u32 1.1754944e-38, %v1153_v51 }
 0x241   :  { %v1110_v22 = vsel %vm1107_vm12, %v1109_v27, %v1105_v1  ;;  %v1116_v19 = vadd.f32 %v1514_v23, %v1115_v17  ;;  %vm1152_vm8 = vcmp.eq.f32.partialorder %v1151_v52, 8.507059e+37 }
 0x242   :  { %v1518_v62 = vpop.eup %1517  ;;  %v1111_v24 = vmul.f32 %v1110_v22, %v2388_v39 }
 0x243   :  { %v1120_v30 = vsel %vm1119_vm15, %v1514_v23, %v1116_v19  ;;  %v1128_v32 = vmul.f32 %v1518_v62, %v675_v8  ;;  %vm1133_vm1 = vweird.f32 %v1518_v62 }
 0x244   :  { %v1125_v11 = vsel %vm1122_vm0, %v1124_v21, %v1120_v30  ;;  %v1520_v42 = vpop.eup %1519  ;;  %vm1134_vm3 = vmor %vm1132_vm2, %vm1133_vm1 }
 0x245   :  { %v1126_v5 = vmul.f32 %v1125_v11, %v2392_v16  ;;  %v1129_v3 = vsub.f32 1.0, %v1128_v32  ;;  %v1143_v38 = vmul.f32 %v1520_v42, %v676_v18  ;;  %vm1148_vm5 = vweird.f32 %v1520_v42 }
 0x246   :  { %vm1149_vm7 = vmor %vm1147_vm6, %vm1148_vm5 }
 0x247   :  { %v1171_v15 = vpack.c.bf16 %v1126_v5, %v1111_v24  ;;  %v1130_v20 = vmul.f32 %v1518_v62, %v1129_v3  ;;  %v1144_v39 = vsub.f32 1.0, %v1143_v38 }
 0x249   :  { %1187 = vst [vmem:[%s2461_s5 + $0x70] sm:$0xff] %v1171_v15  ;;  %v1131_v43 = vadd.f32 %v1518_v62, %v1130_v20  ;;  %v1145_v16 = vmul.f32 %v1520_v42, %v1144_v39 }
 0x24b   :  { %v1135_v53 = vsel %vm1134_vm3, %v1518_v62, %v1131_v43  ;;  %v1146_v29 = vadd.f32 %v1520_v42, %v1145_v16 }
 0x24c   :  { %v1140_v28 = vsel %vm1137_vm4, %v1139_v41, %v1135_v53 }
 0x24d   :  { %v1141_v31 = vmul.f32 %v1140_v28, %v2405_v14  ;;  %v1150_v0 = vsel %vm1149_vm7, %v1520_v42, %v1146_v29 }
 0x24e   :  { %v1155_v34 = vsel %vm1152_vm8, %v1154_v56, %v1150_v0 }
 0x24f   :  { %v1156_v60 = vmul.f32 %v1155_v34, %v2420_v26 }
 0x251   :  { %v1172_v33 = vpack.c.bf16 %v1156_v60, %v1141_v31 }
 0x253   :  { %1188 = vst [vmem:[%s2461_s5 + $0x78] sm:$0xff] %v1172_v33 }

// kernel: vision_transformer_forward.25
= control target key start
LH: loop header
LB: loop body
LE: loop exit
PB: predicated region body
PF: predicated region fallthrough
CT: control target
= control target key end

     0   :  { %v226_v3 = vmov 128.0   ;;  %s299_s0 = inlined_call_operand.vmem [shape: bf16[16,128], index: 0, kind: input, shape index: {}]   ;;  %s300_s3 = inlined_call_operand.vmem [shape: f32[1,128], index: 3, kind: input, shape index: {}]   ;;  %s301_s4 = inlined_call_operand.vmem [shape: f32[1,128], index: 4, kind: input, shape index: {}]   ;;  %s302_s2 = inlined_call_operand.vmem [shape: f32[1,128], index: 2, kind: input, shape index: {}]   ;;  %s303_s1 = inlined_call_operand.vmem [shape: bf16[128,128], index: 1, kind: input, shape index: {}]   ;;  %s304_s5 = inlined_call_operand.vmem [shape: f32[16,128], index: 5, kind: output, shape index: {}]  }
   0x1   :  { %v213_v0 = vld [vmem:[%s299_s0] sm:$0xff]   ;;  %220 = vrcp.f32 %v226_v3  ;;  %v211_v18 = vld [vmem:[%s303_s1 + $0x38] sm:$0xff]  ;;  %v210_v19 = vld [vmem:[%s303_s1 + $0x30] sm:$0xff] }
   0x2   :  { %v214_v1 = vunpack.c.l.bf16 %v213_v0  ;;  %v215_v2 = vunpack.c.h.bf16 %v213_v0  ;;  %152 = vmatpush.bf16.msra.mxu0 %v211_v18  ;;  %v209_v20 = vld [vmem:[%s303_s1 + $0x28] sm:$0xff]  ;;  %v208_v21 = vld [vmem:[%s303_s1 + $0x20] sm:$0xff]  ;;  %v207_v22 = vld [vmem:[%s303_s1 + $0x18] sm:$0xff] }
   0x3   :  { %v206_v23 = vld [vmem:[%s303_s1 + $0x10] sm:$0xff]  ;;  %v205_v24 = vld [vmem:[%s303_s1 + $0x8] sm:$0xff]  ;;  %v204_v26 = vld [vmem:[%s303_s1] sm:$0xff] }
   0x4   :  { %24 = vadd.xlane.f32.xlu0 %v214_v1  ;;  %v217_v45 = vld [vmem:[%s300_s3] ss:$0 sm:$0xff] }
   0x5   :  { %v218_v50 = vld [vmem:[%s301_s4] ss:$0 sm:$0xff] }
   0x6   :  { %153 = vmatpush.bf16.msra.mxu0 %v210_v19  ;;  %v219_v55 = vld [vmem:[%s302_s2] ss:$0 sm:$0xff] }
   0x7   :  { %v221_v4 = vpop.eup %220 }
   0x8   :  { %v29_v5 = vmul.f32 128.0, %v221_v4  ;;  %vm33_vm0 = vweird.f32 %v221_v4 }
   0xa   :  { %v30_v6 = vsub.f32 1.0, %v29_v5  ;;  %154 = vmatpush.bf16.msra.mxu0 %v209_v20 }
   0xc   :  { %26 = vadd.xlane.f32.xlu0 %v215_v2  ;;  %v31_v7 = vmul.f32 %v221_v4, %v30_v6 }
   0xe   :  { %v32_v8 = vadd.f32 %v221_v4, %v31_v7  ;;  %155 = vmatpush.bf16.msra.mxu0 %v208_v21 }
  0x10   :  { %v34_v9 = vsel %vm33_vm0, %v221_v4, %v32_v8 }
  0x12   :  { %156 = vmatpush.bf16.msra.mxu0 %v207_v22 }
  0x16   :  { %157 = vmatpush.bf16.msra.mxu0 %v206_v23 }
  0x1a   :  { %158 = vmatpush.bf16.msra.mxu0 %v205_v24 }
  0x1e   :  { %159 = vmatpush.bf16.msra.mxu0 %v204_v26 }
  0x77   :  { %v25_v10 = vpop.xlane.xlu0 %24 }
  0x78   :  { %v35_v11 = vmul.f32 %v34_v9, %v25_v10 }
  0x7a   :  { %v37_v12 = vsub.f32 %v214_v1, %v35_v11 }
  0x7c   :  { %v39_v13 = vmul.f32 %v37_v12, %v37_v12 }
  0x7e   :  { %41 = vadd.xlane.f32.xlu1 %v39_v13 }
  0x7f   :  { %v27_v14 = vpop.xlane.xlu0 %26 }
  0x80   :  { %v36_v15 = vmul.f32 %v34_v9, %v27_v14 }
  0x82   :  { %v38_v16 = vsub.f32 %v215_v2, %v36_v15 }
  0x84   :  { %v40_v17 = vmul.f32 %v38_v16, %v38_v16 }
  0x86   :  { %43 = vadd.xlane.f32.xlu1 %v40_v17 }
  0xf1   :  { %v42_v25 = vpop.xlane.xlu1 %41 }
  0xf2   :  { %v45_v27 = vmul.f32 %v42_v25, %v34_v9 }
  0xf4   :  { %v47_v28 = vadd.f32 1e-05, %v45_v27 }
  0xf6   :  { %222 = vrsqrt.f32 %v47_v28  ;;  %vm55_vm2 = vweird.f32 %v47_v28 }
  0xf9   :  { %v44_v29 = vpop.xlane.xlu1 %43 }
  0xfa   :  { %v46_v30 = vmul.f32 %v44_v29, %v34_v9 }
  0xfc   :  { %v223_v31 = vpop.eup %222  ;;  %v48_v32 = vadd.f32 1e-05, %v46_v30 }
  0xfd   :  { %v50_v33 = vmul.f32 %v223_v31, %v47_v28  ;;  %vm56_vm1 = vweird.f32 %v223_v31 }
  0xfe   :  { %224 = vrsqrt.f32 %v48_v32  ;;  %vm57_vm3 = vmor %vm55_vm2, %vm56_vm1  ;;  %vm65_vm5 = vweird.f32 %v48_v32 }
  0xff   :  { %v51_v34 = vmul.f32 %v223_v31, %v50_v33 }
 0x101   :  { %v52_v35 = vmul.f32 0.5, %v51_v34 }
 0x103   :  { %v53_v36 = vsub.f32 1.5, %v52_v35 }
 0x104   :  { %v225_v37 = vpop.eup %224 }
 0x105   :  { %v54_v38 = vmul.f32 %v223_v31, %v53_v36  ;;  %v60_v39 = vmul.f32 %v225_v37, %v48_v32  ;;  %vm66_vm4 = vweird.f32 %v225_v37 }
 0x106   :  { %vm67_vm6 = vmor %vm65_vm5, %vm66_vm4 }
 0x107   :  { %v61_v40 = vmul.f32 %v225_v37, %v60_v39  ;;  %v58_v42 = vsel %vm57_vm3, %v223_v31, %v54_v38 }
 0x108   :  { %v69_v44 = vmul.f32 %v58_v42, %v37_v12 }
 0x109   :  { %v62_v41 = vmul.f32 0.5, %v61_v40 }
 0x10a   :  { %v75_v49 = vmul.f32 %v217_v45, %v69_v44 }
 0x10b   :  { %v63_v43 = vsub.f32 1.5, %v62_v41 }
 0x10c   :  { %v81_v52 = vadd.f32 %v218_v50, %v75_v49 }
 0x10d   :  { %v64_v46 = vmul.f32 %v225_v37, %v63_v43 }
 0x10f   :  { %v68_v47 = vsel %vm67_vm6, %v225_v37, %v64_v46 }
 0x110   :  { %v70_v48 = vmul.f32 %v68_v47, %v38_v16 }
 0x112   :  { %v76_v51 = vmul.f32 %v217_v45, %v70_v48 }
 0x114   :  { %v82_v53 = vadd.f32 %v218_v50, %v76_v51 }
 0x116   :  { %v83_v54 = vpack.c.bf16 %v82_v53, %v81_v52 }
 0x118   :  { %160 = vmatmul.bf16.vlgmr.msra.gmra.mxu0 %v83_v54 }
 0x195   :  { %v161_v56 = vpop.f32.mrf.mxu0 }
 0x196   :  { %v162_v57 = vadd.f32 %v219_v55, %v161_v56 }
 0x198   :  { %166 = vst [vmem:[%s304_s5] sm:$0xff] %v162_v57 }
 0x19d   :  { %v163_v58 = vpop.f32.mrf.mxu0 }
 0x19e   :  { %v164_v59 = vadd.f32 %v219_v55, %v163_v58 }
 0x1a0   :  { %167 = vst [vmem:[%s304_s5 + $0x8] sm:$0xff] %v164_v59 }

</bundles_post_ra>
